<compile_context>
chip_gen: v7x
topology: tpu7x:2x2x1
jax: 0.10.0
libtpu: 0.0.40
codegen_flags: <defaults>
</compile_context>

<pallas_src>
import math
import functools

import jax
import jax.numpy as jnp
from jax.experimental import pallas as pl
from jax.experimental.pallas import tpu as pltpu


# ----------------------------- parameter init -----------------------------

def xavier_uniform(key, out_dim, in_dim):
    a = math.sqrt(6.0 / (in_dim + out_dim))
    return jax.random.uniform(key, (out_dim, in_dim), jnp.float32, -a, a)


def sinusoidal_pe(seq_len, d_model):
    pos = jnp.arange(seq_len, dtype=jnp.float32)[:, None]
    i = jnp.arange(0, d_model, 2, dtype=jnp.float32)
    div = jnp.exp(-math.log(10000.0) * i / d_model)
    pe = jnp.zeros((seq_len, d_model), jnp.float32)
    pe = pe.at[:, 0::2].set(jnp.sin(pos * div))
    pe = pe.at[:, 1::2].set(jnp.cos(pos * div))
    return pe


def init_params(key, d_model, n_head, d_ffn, num_layers, d_input, d_output,
                mxu_dtype=jnp.bfloat16):
    """Weights feeding the MXU are stored bf16 (f32 accumulation at the dot);
    LayerNorm/bias/output-head params stay f32."""
    d_k = d_model // n_head
    inv_sqrt_dk = 1.0 / math.sqrt(d_k)
    keys = jax.random.split(key, 2 + num_layers)
    names = ("g1", "b1", "wq", "bq", "wk", "bk", "wv", "bv", "wo", "bo",
             "g2", "b2", "w1", "bf1", "w2", "bf2")
    st = {n: [] for n in names}
    for li in range(num_layers):
        lk = jax.random.split(keys[2 + li], 6)
        wq = xavier_uniform(lk[0], d_model, d_model)
        wk = xavier_uniform(lk[1], d_model, d_model)
        wv = xavier_uniform(lk[2], d_model, d_model)
        wo = xavier_uniform(lk[3], d_model, d_model)
        w1 = xavier_uniform(lk[4], d_ffn, d_model)
        w2 = xavier_uniform(lk[5], d_model, d_ffn)
        st["g1"].append(jnp.ones((1, d_model), jnp.float32))
        st["b1"].append(jnp.zeros((1, d_model), jnp.float32))
        # Pre-transposed to (in, out); 1/sqrt(d_k) folded into W_Q (its bias is
        # zero, so the fold leaves the bias untouched).
        st["wq"].append((wq.T * inv_sqrt_dk).astype(mxu_dtype))
        st["bq"].append(jnp.zeros((1, d_model), jnp.float32))
        st["wk"].append(wk.T.astype(mxu_dtype))
        st["bk"].append(jnp.zeros((1, d_model), jnp.float32))
        st["wv"].append(wv.T.astype(mxu_dtype))
        st["bv"].append(jnp.zeros((1, d_model), jnp.float32))
        st["wo"].append(wo.T.astype(mxu_dtype))
        st["bo"].append(jnp.zeros((1, d_model), jnp.float32))
        st["g2"].append(jnp.ones((1, d_model), jnp.float32))
        st["b2"].append(jnp.zeros((1, d_model), jnp.float32))
        st["w1"].append(w1.T.astype(mxu_dtype))                     # (d_model, d_ffn)
        st["bf1"].append(jnp.zeros((1, d_ffn), jnp.float32))
        st["w2"].append(w2.T.astype(mxu_dtype))                     # (d_ffn, d_model)
        st["bf2"].append(jnp.zeros((1, d_model), jnp.float32))
    params = {n: jnp.stack(v) for n, v in st.items()}
    params["emb_w_t"] = xavier_uniform(keys[0], d_model, d_input).T.astype(mxu_dtype)
    params["emb_b"] = jnp.zeros((1, d_model), jnp.float32)
    params["out_w_t"] = xavier_uniform(keys[1], d_output, d_model).T   # f32 head
    params["out_b"] = jnp.zeros((1, d_output), jnp.float32)
    return params


# ------------------------------- kernels ----------------------------------

def _layer_norm(x, g, b, eps=1e-5):
    mu = jnp.mean(x, axis=-1, keepdims=True)
    var = jnp.mean(jnp.square(x - mu), axis=-1, keepdims=True)
    return (x - mu) * jax.lax.rsqrt(var + eps) * g + b


def fused_encoder_kernel(x_ref, pe_ref, embw_ref,
                         g1_ref, b1_ref,
                         wq_ref, bq_ref, wk_ref, bk_ref, wv_ref, bv_ref,
                         wo_ref, bo_ref, g2_ref, b2_ref,
                         w1_ref, bf1_ref, w2_ref, bf2_ref,
                         psum_ref, *,
                         num_layers, n_head, d_k, d_block, g_blocks,
                         sums_per_step, compute_dtype):
    f32 = jnp.float32
    d_model = n_head * d_k
    n_rows = g_blocks * d_block

    # ---- embedding; embedding bias is pre-folded into the PE slab ----
    h = (jnp.dot(x_ref[...].astype(compute_dtype), embw_ref[...],
                 preferred_element_type=f32) + pe_ref[...])          # (n_rows, d_model) f32

    # ---- encoder layers, unrolled; activations stay resident in VMEM ----
    # TODO(synk): for deep stacks (>4 layers) switch to lax.fori_loop with
    # dynamic ref[li] indexing to bound code size and live ranges.
    for li in range(num_layers):
        # --- block-local multi-head self-attention (pre-norm, residual) ---
        xn = _layer_norm(h, g1_ref[li], b1_ref[li]).astype(compute_dtype)
        q = jnp.dot(xn, wq_ref[li], preferred_element_type=f32) + bq_ref[li]
        k = jnp.dot(xn, wk_ref[li], preferred_element_type=f32) + bk_ref[li]
        v = jnp.dot(xn, wv_ref[li], preferred_element_type=f32) + bv_ref[li]

        def to_heads(t):
            # (n_rows, d_model) -> (n_head * g_blocks, d_block, d_k), head-major batch.
            t3 = t.reshape(g_blocks, d_block, d_model)
            return jnp.concatenate(
                [t3[:, :, hh * d_k:(hh + 1) * d_k] for hh in range(n_head)],
                axis=0).astype(compute_dtype)

        qh = to_heads(q)
        kh = to_heads(k)
        vh = to_heads(v)
        # One batched score einsum + one batched context einsum over all
        # (block, head) pairs (1/sqrt(d_k) already folded into W_Q).
        s = jnp.einsum('bqd,bkd->bqk', qh, kh, preferred_element_type=f32)
        s = s - jnp.max(s, axis=-1, keepdims=True)
        e = jnp.exp(s)
        p = e * pl.reciprocal(jnp.sum(e, axis=-1, keepdims=True), approx=True)
        ctx = jnp.einsum('bqk,bkd->bqd', p.astype(compute_dtype), vh,
                         preferred_element_type=f32)
        # Heads back onto the lane axis -> a single full-K W_O matmul.
        ctx = jnp.concatenate(
            [ctx[hh * g_blocks:(hh + 1) * g_blocks].reshape(n_rows, d_k)
             for hh in range(n_head)], axis=1)
        attn = (jnp.dot(ctx.astype(compute_dtype), wo_ref[li],
                        preferred_element_type=f32) + bo_ref[li])
        h = h + attn

        # --- position-wise FFN (pre-norm, residual) ---
        xn2 = _layer_norm(h, g2_ref[li], b2_ref[li]).astype(compute_dtype)
        hid = jnp.maximum(
            jnp.dot(xn2, w1_ref[li], preferred_element_type=f32) + bf1_ref[li],
            0.0)
        ff = (jnp.dot(hid.astype(compute_dtype), w2_ref[li],
                      preferred_element_type=f32) + bf2_ref[li])
        h = h + ff

    # ---- pooled partial sums; only these go back to HBM ----
    group = n_rows // sums_per_step
    parts = [jnp.sum(h[i * group:(i + 1) * group], axis=0, keepdims=True)
             for i in range(sums_per_step)]
    psum_ref[0] = jnp.concatenate(parts, axis=0)                     # (sums_per_step, d_model)


def head_kernel(psum_ref, w_ref, b_ref, o_ref, *, inv_seq):
    # psum: (batch, steps_per_batch, d_model) partial sums -> mean over seq.
    pooled = jnp.sum(psum_ref[...], axis=1) * inv_seq                # (batch, d_model)
    o_ref[...] = (jnp.dot(pooled, w_ref[...],
                          preferred_element_type=jnp.float32) + b_ref[...])


# ------------------------------- wrapper -----------------------------------

def _choose_tiling(batch, seq, d_block, target_rows):
    """Rows per grid step.  Short sequences: pack whole batch elements per
    step (up to target_rows) while leaving >= 2 grid steps when possible so
    both v7x TensorCores get work.  Long sequences: split each sequence into
    block-aligned chunks of <= target_rows rows."""
    if seq <= target_rows:
        divisors = [m for m in range(1, batch + 1)
                    if batch % m == 0 and m * seq <= target_rows]
        two_step = [m for m in divisors if batch // m >= 2]
        m = max(two_step) if two_step else max(divisors)
        return m * seq
    blocks = seq // d_block
    g = 1
    for cand in range(1, blocks + 1):
        if blocks % cand == 0 and cand * d_block <= target_rows:
            g = cand
    return g * d_block


def _pick_vmem_limit(footprint_bytes):
    """Size the VMEM limit from the real footprint, clamped to this chip's
    capacity (128 MiB on v5e/v6e, 64 MiB/TC on v7x)."""
    try:
        cap = int(pltpu.get_tpu_info().vmem_capacity_bytes)
    except Exception:
        cap = 64 * 1024 * 1024
    want = 2 * int(footprint_bytes) + (16 << 20)
    return int(max(32 << 20, min(want, int(cap * 0.875))))


def local_hba_transformer(x, params, *, d_block, d_model, n_head,
                          target_rows_per_step=512):
    batch, seq, d_input = x.shape
    assert seq % d_block == 0, "seq must be a multiple of d_block"

    rows = _choose_tiling(batch, seq, d_block, target_rows_per_step)
    assert rows % 8 == 0, "rows per grid step must be sublane-aligned"
    num_steps = (batch * seq) // rows
    g_blocks = rows // d_block
    sums_per_step = max(1, rows // seq)           # whole batch elems per step
    steps_per_batch = max(1, seq // rows)         # chunks per batch elem

    num_layers = params["wq"].shape[0]
    d_ffn = params["w1"].shape[-1]
    d_output = params["out_w_t"].shape[1]

    x_flat = x.reshape(batch * seq, d_input)
    # PE table with the embedding bias folded in; tiled to rows when a grid
    # step spans several batch elements (tiny, done once).
    pe = sinusoidal_pe(seq, d_model) + params["emb_b"]
    if rows > seq:
        pe = jnp.tile(pe, (rows // seq, 1))
    pe_steps = pe.shape[0] // rows

    weight_names = ("emb_w_t", "g1", "b1", "wq", "bq", "wk", "bk", "wv", "bv",
                    "wo", "bo", "g2", "b2", "w1", "bf1", "w2", "bf2")
    weights = tuple(params[n] for n in weight_names)
    weight_bytes = sum(int(w.size) * jnp.dtype(w.dtype).itemsize for w in weights)

    kern = functools.partial(
        fused_encoder_kernel,
        num_layers=num_layers, n_head=n_head, d_k=d_model // n_head,
        d_block=d_block, g_blocks=g_blocks, sums_per_step=sums_per_step,
        compute_dtype=params["wq"].dtype)

    def run(single_buffer_weights):
        def weight_spec(a):
            nd = a.ndim
            if single_buffer_weights:
                # Grid-invariant weights: no need for double buffering.
                return pl.BlockSpec(a.shape, lambda i, _n=nd: (0,) * _n,
                                    pipeline_mode=pl.Buffered(buffer_count=1))
            return pl.BlockSpec(a.shape, lambda i, _n=nd: (0,) * _n)

        in_specs = [
            pl.BlockSpec((rows, d_input), lambda i: (i, 0)),                 # x tile
            pl.BlockSpec((rows, d_model), lambda i: (i % pe_steps, 0)),      # PE tile
        ] + [weight_spec(w) for w in weights]

        wbufs = 1 if single_buffer_weights else 2
        tmp_bytes = (rows * (8 * d_model + 2 * d_ffn) * 4
                     + 2 * n_head * g_blocks * d_block * d_block * 4)
        io_bytes = 2 * rows * (d_input + d_model) * 4 + 2 * sums_per_step * d_model * 4
        vmem_limit = _pick_vmem_limit(weight_bytes * wbufs + tmp_bytes + io_bytes)

        return pl.pallas_call(
            kern,
            grid=(num_steps,),
            in_specs=in_specs,
            out_specs=pl.BlockSpec((1, sums_per_step, d_model),
                                   lambda i: (i, 0, 0)),
            out_shape=jax.ShapeDtypeStruct((num_steps, sums_per_step, d_model),
                                           jnp.float32),
            compiler_params=pltpu.CompilerParams(
                dimension_semantics=("parallel",),
                vmem_limit_bytes=vmem_limit),
        )(x_flat, pe, *weights)

    try:
        psum = jax.block_until_ready(run(single_buffer_weights=True))
    except Exception:
        # pl.Buffered(1) on weight specs not supported -> default buffering.
        psum = run(single_buffer_weights=False)

    # ---- mean-pool over sequence + output projection (tiny head kernel) ----
    psum_b = psum.reshape(batch, steps_per_batch, d_model)
    out = pl.pallas_call(
        functools.partial(head_kernel, inv_seq=1.0 / seq),
        out_shape=jax.ShapeDtypeStruct((batch, d_output), jnp.float32),
    )(psum_b, params["out_w_t"], params["out_b"])
    return out


# --------------------------- pure-JAX reference -----------------------------

def reference_forward(x, params, *, d_block, d_model, n_head):
    batch, seq, d_input = x.shape
    d_k = d_model // n_head
    W = lambda name: params[name].astype(jnp.float32)
    h = x.reshape(batch * seq, d_input) @ W("emb_w_t") + params["emb_b"]
    h = h + jnp.tile(sinusoidal_pe(seq, d_model), (batch, 1))
    h = h.reshape(-1, d_block, d_model)
    nb = h.shape[0]
    for li in range(params["wq"].shape[0]):
        xn = _layer_norm(h, params["g1"][li], params["b1"][li])
        q = xn @ W("wq")[li] + params["bq"][li]   # 1/sqrt(d_k) already folded in
        k = xn @ W("wk")[li] + params["bk"][li]
        v = xn @ W("wv")[li] + params["bv"][li]

        def split(t):
            return t.reshape(nb, d_block, n_head, d_k).transpose(0, 2, 1, 3)

        qh, kh, vh = split(q), split(k), split(v)
        s = qh @ kh.transpose(0, 1, 3, 2)
        ctx = jax.nn.softmax(s, axis=-1) @ vh
        ctx = ctx.transpose(0, 2, 1, 3).reshape(nb, d_block, d_model)
        h = h + ctx @ W("wo")[li] + params["bo"][li]
        xn2 = _layer_norm(h, params["g2"][li], params["b2"][li])
        ff = (jnp.maximum(xn2 @ W("w1")[li] + params["bf1"][li], 0.0)
              @ W("w2")[li] + params["bf2"][li])
        h = h + ff
    h = h.reshape(batch, seq, d_model)
    return h.mean(axis=1) @ params["out_w_t"] + params["out_b"]


# --------------------------------- main ------------------------------------

if __name__ == "__main__":
    d_model, n_head, d_ffn = 32, 4, 64
    num_encoder_layers = 2
    d_input, d_output, d_block = 4, 8, 8
    batch, seq = 2, 16

    key = jax.random.PRNGKey(0)
    pkey, xkey = jax.random.split(key)
    params = init_params(pkey, d_model, n_head, d_ffn,
                         num_encoder_layers, d_input, d_output)
    x = jax.random.normal(xkey, (batch, seq, d_input), jnp.float32)

    out = local_hba_transformer(x, params, d_block=d_block,
                                d_model=d_model, n_head=n_head)
    out = jax.block_until_ready(out)
    assert out.shape == (batch, d_output)

    # Loose-tolerance check vs a pure-f32 JAX reference (kernel casts MXU
    # operands to bf16; accumulation is f32 via preferred_element_type).
    ref = reference_forward(x, params, d_block=d_block,
                            d_model=d_model, n_head=n_head)
    err = float(jnp.max(jnp.abs(out - ref)))
    assert jnp.allclose(out, ref, atol=5e-2, rtol=5e-2), err

    print("KERNEL_OK")
</pallas_src>

<mosaic_0001>
module attributes {stable_mosaic.version = 11 : i64} {
  func.func @fused_encoder_kernel(%arg0: i32, %arg1: memref<16x4xf32, #tpu.memory_space<vmem>>, %arg2: memref<16x32xf32, #tpu.memory_space<vmem>>, %arg3: memref<4x32xbf16, #tpu.memory_space<vmem>>, %arg4: memref<2x1x32xf32, #tpu.memory_space<vmem>>, %arg5: memref<2x1x32xf32, #tpu.memory_space<vmem>>, %arg6: memref<2x32x32xbf16, #tpu.memory_space<vmem>>, %arg7: memref<2x1x32xf32, #tpu.memory_space<vmem>>, %arg8: memref<2x32x32xbf16, #tpu.memory_space<vmem>>, %arg9: memref<2x1x32xf32, #tpu.memory_space<vmem>>, %arg10: memref<2x32x32xbf16, #tpu.memory_space<vmem>>, %arg11: memref<2x1x32xf32, #tpu.memory_space<vmem>>, %arg12: memref<2x32x32xbf16, #tpu.memory_space<vmem>>, %arg13: memref<2x1x32xf32, #tpu.memory_space<vmem>>, %arg14: memref<2x1x32xf32, #tpu.memory_space<vmem>>, %arg15: memref<2x1x32xf32, #tpu.memory_space<vmem>>, %arg16: memref<2x32x64xbf16, #tpu.memory_space<vmem>>, %arg17: memref<2x1x64xf32, #tpu.memory_space<vmem>>, %arg18: memref<2x64x32xbf16, #tpu.memory_space<vmem>>, %arg19: memref<2x1x32xf32, #tpu.memory_space<vmem>>, %arg20: memref<1x1x32xf32, #tpu.memory_space<vmem>>) attributes {dimension_semantics = [#tpu.dimension_semantics<parallel>], iteration_bounds = array<i64: 2>, scalar_prefetch = 0 : i64, scratch_operands = 0 : i64, tpu.core_type = #tpu.core_type<tc>, window_params = [{transform_indices = @transform_0, window_bounds = array<i64: 16, 4>}, {transform_indices = @transform_1, window_bounds = array<i64: 16, 32>}, {pipeline_mode = #tpu.pipeline_mode<synchronous>, transform_indices = @transform_2, window_bounds = array<i64: 4, 32>}, {pipeline_mode = #tpu.pipeline_mode<synchronous>, transform_indices = @transform_3, window_bounds = array<i64: 2, 1, 32>}, {pipeline_mode = #tpu.pipeline_mode<synchronous>, transform_indices = @transform_4, window_bounds = array<i64: 2, 1, 32>}, {pipeline_mode = #tpu.pipeline_mode<synchronous>, transform_indices = @transform_5, window_bounds = array<i64: 2, 32, 32>}, {pipeline_mode = #tpu.pipeline_mode<synchronous>, transform_indices = @transform_6, window_bounds = array<i64: 2, 1, 32>}, {pipeline_mode = #tpu.pipeline_mode<synchronous>, transform_indices = @transform_7, window_bounds = array<i64: 2, 32, 32>}, {pipeline_mode = #tpu.pipeline_mode<synchronous>, transform_indices = @transform_8, window_bounds = array<i64: 2, 1, 32>}, {pipeline_mode = #tpu.pipeline_mode<synchronous>, transform_indices = @transform_9, window_bounds = array<i64: 2, 32, 32>}, {pipeline_mode = #tpu.pipeline_mode<synchronous>, transform_indices = @transform_10, window_bounds = array<i64: 2, 1, 32>}, {pipeline_mode = #tpu.pipeline_mode<synchronous>, transform_indices = @transform_11, window_bounds = array<i64: 2, 32, 32>}, {pipeline_mode = #tpu.pipeline_mode<synchronous>, transform_indices = @transform_12, window_bounds = array<i64: 2, 1, 32>}, {pipeline_mode = #tpu.pipeline_mode<synchronous>, transform_indices = @transform_13, window_bounds = array<i64: 2, 1, 32>}, {pipeline_mode = #tpu.pipeline_mode<synchronous>, transform_indices = @transform_14, window_bounds = array<i64: 2, 1, 32>}, {pipeline_mode = #tpu.pipeline_mode<synchronous>, transform_indices = @transform_15, window_bounds = array<i64: 2, 32, 64>}, {pipeline_mode = #tpu.pipeline_mode<synchronous>, transform_indices = @transform_16, window_bounds = array<i64: 2, 1, 64>}, {pipeline_mode = #tpu.pipeline_mode<synchronous>, transform_indices = @transform_17, window_bounds = array<i64: 2, 64, 32>}, {pipeline_mode = #tpu.pipeline_mode<synchronous>, transform_indices = @transform_18, window_bounds = array<i64: 2, 1, 32>}, {transform_indices = @transform_19, window_bounds = array<i64: 1, 1, 32>}]} {
    %c0 = arith.constant 0 : index
    %c0_0 = arith.constant 0 : index
    %0 = vector.load %arg1[%c0, %c0_0] : memref<16x4xf32, #tpu.memory_space<vmem>>, vector<16x4xf32>
    %1 = arith.truncf %0 : vector<16x4xf32> to vector<16x4xbf16>
    %c0_1 = arith.constant 0 : index
    %c0_2 = arith.constant 0 : index
    %2 = vector.load %arg3[%c0_1, %c0_2] : memref<4x32xbf16, #tpu.memory_space<vmem>>, vector<4x32xbf16>
    %cst = arith.constant dense<0.000000e+00> : vector<16x32xf32>
    %3 = tpu.matmul %1, %2, %cst {dimension_numbers = #tpu.dot_dimension_numbers<[1], [0], [0], [1], [0, 0, 1, 1], [], []>} : vector<16x4xbf16>, vector<4x32xbf16>, vector<16x32xf32> -> vector<16x32xf32>
    %c0_3 = arith.constant 0 : index
    %c0_4 = arith.constant 0 : index
    %4 = vector.load %arg2[%c0_3, %c0_4] : memref<16x32xf32, #tpu.memory_space<vmem>>, vector<16x32xf32>
    %5 = arith.addf %3, %4 : vector<16x32xf32>
    %c0_5 = arith.constant 0 : index
    %c0_6 = arith.constant 0 : index
    %c0_7 = arith.constant 0 : index
    %6 = vector.load %arg4[%c0_5, %c0_6, %c0_7] : memref<2x1x32xf32, #tpu.memory_space<vmem>>, vector<1x1x32xf32>
    %7 = vector.shape_cast %6 : vector<1x1x32xf32> to vector<1x32xf32>
    %c0_8 = arith.constant 0 : index
    %c0_9 = arith.constant 0 : index
    %c0_10 = arith.constant 0 : index
    %8 = vector.load %arg5[%c0_8, %c0_9, %c0_10] : memref<2x1x32xf32, #tpu.memory_space<vmem>>, vector<1x1x32xf32>
    %9 = vector.shape_cast %8 : vector<1x1x32xf32> to vector<1x32xf32>
    %cst_11 = arith.constant dense<0.000000e+00> : vector<16xf32>
    %10 = vector.multi_reduction <add>, %5, %cst_11 [1] : vector<16x32xf32> to vector<16xf32>
    %11 = vector.shape_cast %10 : vector<16xf32> to vector<16x1xf32>
    %cst_12 = arith.constant 3.200000e+01 : f32
    %12 = vector.broadcast %cst_12 : f32 to vector<16x1xf32>
    %13 = arith.divf %11, %12 : vector<16x1xf32>
    %14 = vector.broadcast %13 : vector<16x1xf32> to vector<16x32xf32>
    %15 = arith.subf %5, %14 : vector<16x32xf32>
    %16 = arith.mulf %15, %15 : vector<16x32xf32>
    %cst_13 = arith.constant dense<0.000000e+00> : vector<16xf32>
    %17 = vector.multi_reduction <add>, %16, %cst_13 [1] : vector<16x32xf32> to vector<16xf32>
    %18 = vector.shape_cast %17 : vector<16xf32> to vector<16x1xf32>
    %cst_14 = arith.constant 3.200000e+01 : f32
    %19 = vector.broadcast %cst_14 : f32 to vector<16x1xf32>
    %20 = arith.divf %18, %19 : vector<16x1xf32>
    %21 = vector.broadcast %13 : vector<16x1xf32> to vector<16x32xf32>
    %22 = arith.subf %5, %21 : vector<16x32xf32>
    %cst_15 = arith.constant 9.99999974E-6 : f32
    %23 = vector.broadcast %cst_15 : f32 to vector<16x1xf32>
    %24 = arith.addf %20, %23 : vector<16x1xf32>
    %25 = math.rsqrt %24 : vector<16x1xf32>
    %26 = vector.broadcast %25 : vector<16x1xf32> to vector<16x32xf32>
    %27 = arith.mulf %22, %26 : vector<16x32xf32>
    %28 = vector.broadcast %7 : vector<1x32xf32> to vector<16x32xf32>
    %29 = arith.mulf %27, %28 : vector<16x32xf32>
    %30 = vector.broadcast %9 : vector<1x32xf32> to vector<16x32xf32>
    %31 = arith.addf %29, %30 : vector<16x32xf32>
    %32 = arith.truncf %31 : vector<16x32xf32> to vector<16x32xbf16>
    %c0_16 = arith.constant 0 : index
    %c0_17 = arith.constant 0 : index
    %c0_18 = arith.constant 0 : index
    %33 = vector.load %arg6[%c0_16, %c0_17, %c0_18] : memref<2x32x32xbf16, #tpu.memory_space<vmem>>, vector<1x32x32xbf16>
    %34 = vector.shape_cast %33 : vector<1x32x32xbf16> to vector<32x32xbf16>
    %cst_19 = arith.constant dense<0.000000e+00> : vector<16x32xf32>
    %35 = tpu.matmul %32, %34, %cst_19 {dimension_numbers = #tpu.dot_dimension_numbers<[1], [0], [0], [1], [0, 0, 1, 1], [], []>} : vector<16x32xbf16>, vector<32x32xbf16>, vector<16x32xf32> -> vector<16x32xf32>
    %c0_20 = arith.constant 0 : index
    %c0_21 = arith.constant 0 : index
    %c0_22 = arith.constant 0 : index
    %36 = vector.load %arg7[%c0_20, %c0_21, %c0_22] : memref<2x1x32xf32, #tpu.memory_space<vmem>>, vector<1x1x32xf32>
    %37 = vector.shape_cast %36 : vector<1x1x32xf32> to vector<1x32xf32>
    %38 = vector.broadcast %37 : vector<1x32xf32> to vector<16x32xf32>
    %39 = arith.addf %35, %38 : vector<16x32xf32>
    %c0_23 = arith.constant 0 : index
    %c0_24 = arith.constant 0 : index
    %c0_25 = arith.constant 0 : index
    %40 = vector.load %arg8[%c0_23, %c0_24, %c0_25] : memref<2x32x32xbf16, #tpu.memory_space<vmem>>, vector<1x32x32xbf16>
    %41 = vector.shape_cast %40 : vector<1x32x32xbf16> to vector<32x32xbf16>
    %cst_26 = arith.constant dense<0.000000e+00> : vector<16x32xf32>
    %42 = tpu.matmul %32, %41, %cst_26 {dimension_numbers = #tpu.dot_dimension_numbers<[1], [0], [0], [1], [0, 0, 1, 1], [], []>} : vector<16x32xbf16>, vector<32x32xbf16>, vector<16x32xf32> -> vector<16x32xf32>
    %c0_27 = arith.constant 0 : index
    %c0_28 = arith.constant 0 : index
    %c0_29 = arith.constant 0 : index
    %43 = vector.load %arg9[%c0_27, %c0_28, %c0_29] : memref<2x1x32xf32, #tpu.memory_space<vmem>>, vector<1x1x32xf32>
    %44 = vector.shape_cast %43 : vector<1x1x32xf32> to vector<1x32xf32>
    %45 = vector.broadcast %44 : vector<1x32xf32> to vector<16x32xf32>
    %46 = arith.addf %42, %45 : vector<16x32xf32>
    %c0_30 = arith.constant 0 : index
    %c0_31 = arith.constant 0 : index
    %c0_32 = arith.constant 0 : index
    %47 = vector.load %arg10[%c0_30, %c0_31, %c0_32] : memref<2x32x32xbf16, #tpu.memory_space<vmem>>, vector<1x32x32xbf16>
    %48 = vector.shape_cast %47 : vector<1x32x32xbf16> to vector<32x32xbf16>
    %cst_33 = arith.constant dense<0.000000e+00> : vector<16x32xf32>
    %49 = tpu.matmul %32, %48, %cst_33 {dimension_numbers = #tpu.dot_dimension_numbers<[1], [0], [0], [1], [0, 0, 1, 1], [], []>} : vector<16x32xbf16>, vector<32x32xbf16>, vector<16x32xf32> -> vector<16x32xf32>
    %c0_34 = arith.constant 0 : index
    %c0_35 = arith.constant 0 : index
    %c0_36 = arith.constant 0 : index
    %50 = vector.load %arg11[%c0_34, %c0_35, %c0_36] : memref<2x1x32xf32, #tpu.memory_space<vmem>>, vector<1x1x32xf32>
    %51 = vector.shape_cast %50 : vector<1x1x32xf32> to vector<1x32xf32>
    %52 = vector.broadcast %51 : vector<1x32xf32> to vector<16x32xf32>
    %53 = arith.addf %49, %52 : vector<16x32xf32>
    %54 = vector.shape_cast %39 : vector<16x32xf32> to vector<2x8x32xf32>
    %55 = vector.extract_strided_slice %54 {offsets = [0, 0, 0], sizes = [2, 8, 8], strides = [1, 1, 1]} : vector<2x8x32xf32> to vector<2x8x8xf32>
    %56 = vector.extract_strided_slice %54 {offsets = [0, 0, 8], sizes = [2, 8, 8], strides = [1, 1, 1]} : vector<2x8x32xf32> to vector<2x8x8xf32>
    %57 = vector.extract_strided_slice %54 {offsets = [0, 0, 16], sizes = [2, 8, 8], strides = [1, 1, 1]} : vector<2x8x32xf32> to vector<2x8x8xf32>
    %58 = vector.extract_strided_slice %54 {offsets = [0, 0, 24], sizes = [2, 8, 8], strides = [1, 1, 1]} : vector<2x8x32xf32> to vector<2x8x8xf32>
    %59 = tpu.concatenate %55, %56, %57, %58 in 0 : vector<2x8x8xf32>, vector<2x8x8xf32>, vector<2x8x8xf32>, vector<2x8x8xf32> -> vector<8x8x8xf32>
    %60 = arith.truncf %59 : vector<8x8x8xf32> to vector<8x8x8xbf16>
    %61 = vector.shape_cast %46 : vector<16x32xf32> to vector<2x8x32xf32>
    %62 = vector.extract_strided_slice %61 {offsets = [0, 0, 0], sizes = [2, 8, 8], strides = [1, 1, 1]} : vector<2x8x32xf32> to vector<2x8x8xf32>
    %63 = vector.extract_strided_slice %61 {offsets = [0, 0, 8], sizes = [2, 8, 8], strides = [1, 1, 1]} : vector<2x8x32xf32> to vector<2x8x8xf32>
    %64 = vector.extract_strided_slice %61 {offsets = [0, 0, 16], sizes = [2, 8, 8], strides = [1, 1, 1]} : vector<2x8x32xf32> to vector<2x8x8xf32>
    %65 = vector.extract_strided_slice %61 {offsets = [0, 0, 24], sizes = [2, 8, 8], strides = [1, 1, 1]} : vector<2x8x32xf32> to vector<2x8x8xf32>
    %66 = tpu.concatenate %62, %63, %64, %65 in 0 : vector<2x8x8xf32>, vector<2x8x8xf32>, vector<2x8x8xf32>, vector<2x8x8xf32> -> vector<8x8x8xf32>
    %67 = arith.truncf %66 : vector<8x8x8xf32> to vector<8x8x8xbf16>
    %68 = vector.shape_cast %53 : vector<16x32xf32> to vector<2x8x32xf32>
    %69 = vector.extract_strided_slice %68 {offsets = [0, 0, 0], sizes = [2, 8, 8], strides = [1, 1, 1]} : vector<2x8x32xf32> to vector<2x8x8xf32>
    %70 = vector.extract_strided_slice %68 {offsets = [0, 0, 8], sizes = [2, 8, 8], strides = [1, 1, 1]} : vector<2x8x32xf32> to vector<2x8x8xf32>
    %71 = vector.extract_strided_slice %68 {offsets = [0, 0, 16], sizes = [2, 8, 8], strides = [1, 1, 1]} : vector<2x8x32xf32> to vector<2x8x8xf32>
    %72 = vector.extract_strided_slice %68 {offsets = [0, 0, 24], sizes = [2, 8, 8], strides = [1, 1, 1]} : vector<2x8x32xf32> to vector<2x8x8xf32>
    %73 = tpu.concatenate %69, %70, %71, %72 in 0 : vector<2x8x8xf32>, vector<2x8x8xf32>, vector<2x8x8xf32>, vector<2x8x8xf32> -> vector<8x8x8xf32>
    %74 = arith.truncf %73 : vector<8x8x8xf32> to vector<8x8x8xbf16>
    "tpu.trace_start"() <{level = 10 : i32, message = "bqd,bkd->bqk"}> : () -> ()
    %cst_37 = arith.constant dense<0.000000e+00> : vector<8x8x8xf32>
    %75 = tpu.matmul %60, %67, %cst_37 {dimension_numbers = #tpu.dot_dimension_numbers<[2], [2], [1], [1], [0, 0, 0, 1, 1, 1], [0], [0]>} : vector<8x8x8xbf16>, vector<8x8x8xbf16>, vector<8x8x8xf32> -> vector<8x8x8xf32>
    "tpu.trace_stop"() : () -> ()
    %cst_38 = arith.constant dense<0xFF800000> : vector<8x8xf32>
    %76 = vector.multi_reduction <maximumf>, %75, %cst_38 [2] : vector<8x8x8xf32> to vector<8x8xf32>
    %77 = vector.shape_cast %76 : vector<8x8xf32> to vector<8x8x1xf32>
    %78 = vector.broadcast %77 : vector<8x8x1xf32> to vector<8x8x8xf32>
    %79 = arith.subf %75, %78 : vector<8x8x8xf32>
    %80 = math.exp %79 : vector<8x8x8xf32>
    %cst_39 = arith.constant dense<0.000000e+00> : vector<8x8xf32>
    %81 = vector.multi_reduction <add>, %80, %cst_39 [2] : vector<8x8x8xf32> to vector<8x8xf32>
    %82 = vector.shape_cast %81 : vector<8x8xf32> to vector<8x8x1xf32>
    %83 = tpu.reciprocal %82 {approx = true} : vector<8x8x1xf32> -> vector<8x8x1xf32>
    %84 = vector.broadcast %83 : vector<8x8x1xf32> to vector<8x8x8xf32>
    %85 = arith.mulf %80, %84 : vector<8x8x8xf32>
    %86 = arith.truncf %85 : vector<8x8x8xf32> to vector<8x8x8xbf16>
    "tpu.trace_start"() <{level = 10 : i32, message = "bqk,bkd->bqd"}> : () -> ()
    %cst_40 = arith.constant dense<0.000000e+00> : vector<8x8x8xf32>
    %87 = tpu.matmul %86, %74, %cst_40 {dimension_numbers = #tpu.dot_dimension_numbers<[2], [1], [1], [2], [0, 0, 0, 1, 1, 2], [0], [0]>} : vector<8x8x8xbf16>, vector<8x8x8xbf16>, vector<8x8x8xf32> -> vector<8x8x8xf32>
    "tpu.trace_stop"() : () -> ()
    %88 = vector.extract_strided_slice %87 {offsets = [0, 0, 0], sizes = [2, 8, 8], strides = [1, 1, 1]} : vector<8x8x8xf32> to vector<2x8x8xf32>
    %89 = vector.shape_cast %88 : vector<2x8x8xf32> to vector<16x8xf32>
    %90 = vector.extract_strided_slice %87 {offsets = [2, 0, 0], sizes = [2, 8, 8], strides = [1, 1, 1]} : vector<8x8x8xf32> to vector<2x8x8xf32>
    %91 = vector.shape_cast %90 : vector<2x8x8xf32> to vector<16x8xf32>
    %92 = vector.extract_strided_slice %87 {offsets = [4, 0, 0], sizes = [2, 8, 8], strides = [1, 1, 1]} : vector<8x8x8xf32> to vector<2x8x8xf32>
    %93 = vector.shape_cast %92 : vector<2x8x8xf32> to vector<16x8xf32>
    %94 = vector.extract_strided_slice %87 {offsets = [6, 0, 0], sizes = [2, 8, 8], strides = [1, 1, 1]} : vector<8x8x8xf32> to vector<2x8x8xf32>
    %95 = vector.shape_cast %94 : vector<2x8x8xf32> to vector<16x8xf32>
    %96 = tpu.concatenate %89, %91, %93, %95 in 1 : vector<16x8xf32>, vector<16x8xf32>, vector<16x8xf32>, vector<16x8xf32> -> vector<16x32xf32>
    %97 = arith.truncf %96 : vector<16x32xf32> to vector<16x32xbf16>
    %c0_41 = arith.constant 0 : index
    %c0_42 = arith.constant 0 : index
    %c0_43 = arith.constant 0 : index
    %98 = vector.load %arg12[%c0_41, %c0_42, %c0_43] : memref<2x32x32xbf16, #tpu.memory_space<vmem>>, vector<1x32x32xbf16>
    %99 = vector.shape_cast %98 : vector<1x32x32xbf16> to vector<32x32xbf16>
    %cst_44 = arith.constant dense<0.000000e+00> : vector<16x32xf32>
    %100 = tpu.matmul %97, %99, %cst_44 {dimension_numbers = #tpu.dot_dimension_numbers<[1], [0], [0], [1], [0, 0, 1, 1], [], []>} : vector<16x32xbf16>, vector<32x32xbf16>, vector<16x32xf32> -> vector<16x32xf32>
    %c0_45 = arith.constant 0 : index
    %c0_46 = arith.constant 0 : index
    %c0_47 = arith.constant 0 : index
    %101 = vector.load %arg13[%c0_45, %c0_46, %c0_47] : memref<2x1x32xf32, #tpu.memory_space<vmem>>, vector<1x1x32xf32>
    %102 = vector.shape_cast %101 : vector<1x1x32xf32> to vector<1x32xf32>
    %103 = vector.broadcast %102 : vector<1x32xf32> to vector<16x32xf32>
    %104 = arith.addf %100, %103 : vector<16x32xf32>
    %105 = arith.addf %5, %104 : vector<16x32xf32>
    %c0_48 = arith.constant 0 : index
    %c0_49 = arith.constant 0 : index
    %c0_50 = arith.constant 0 : index
    %106 = vector.load %arg14[%c0_48, %c0_49, %c0_50] : memref<2x1x32xf32, #tpu.memory_space<vmem>>, vector<1x1x32xf32>
    %107 = vector.shape_cast %106 : vector<1x1x32xf32> to vector<1x32xf32>
    %c0_51 = arith.constant 0 : index
    %c0_52 = arith.constant 0 : index
    %c0_53 = arith.constant 0 : index
    %108 = vector.load %arg15[%c0_51, %c0_52, %c0_53] : memref<2x1x32xf32, #tpu.memory_space<vmem>>, vector<1x1x32xf32>
    %109 = vector.shape_cast %108 : vector<1x1x32xf32> to vector<1x32xf32>
    %cst_54 = arith.constant dense<0.000000e+00> : vector<16xf32>
    %110 = vector.multi_reduction <add>, %105, %cst_54 [1] : vector<16x32xf32> to vector<16xf32>
    %111 = vector.shape_cast %110 : vector<16xf32> to vector<16x1xf32>
    %cst_55 = arith.constant 3.200000e+01 : f32
    %112 = vector.broadcast %cst_55 : f32 to vector<16x1xf32>
    %113 = arith.divf %111, %112 : vector<16x1xf32>
    %114 = vector.broadcast %113 : vector<16x1xf32> to vector<16x32xf32>
    %115 = arith.subf %105, %114 : vector<16x32xf32>
    %116 = arith.mulf %115, %115 : vector<16x32xf32>
    %cst_56 = arith.constant dense<0.000000e+00> : vector<16xf32>
    %117 = vector.multi_reduction <add>, %116, %cst_56 [1] : vector<16x32xf32> to vector<16xf32>
    %118 = vector.shape_cast %117 : vector<16xf32> to vector<16x1xf32>
    %cst_57 = arith.constant 3.200000e+01 : f32
    %119 = vector.broadcast %cst_57 : f32 to vector<16x1xf32>
    %120 = arith.divf %118, %119 : vector<16x1xf32>
    %121 = vector.broadcast %113 : vector<16x1xf32> to vector<16x32xf32>
    %122 = arith.subf %105, %121 : vector<16x32xf32>
    %cst_58 = arith.constant 9.99999974E-6 : f32
    %123 = vector.broadcast %cst_58 : f32 to vector<16x1xf32>
    %124 = arith.addf %120, %123 : vector<16x1xf32>
    %125 = math.rsqrt %124 : vector<16x1xf32>
    %126 = vector.broadcast %125 : vector<16x1xf32> to vector<16x32xf32>
    %127 = arith.mulf %122, %126 : vector<16x32xf32>
    %128 = vector.broadcast %107 : vector<1x32xf32> to vector<16x32xf32>
    %129 = arith.mulf %127, %128 : vector<16x32xf32>
    %130 = vector.broadcast %109 : vector<1x32xf32> to vector<16x32xf32>
    %131 = arith.addf %129, %130 : vector<16x32xf32>
    %132 = arith.truncf %131 : vector<16x32xf32> to vector<16x32xbf16>
    %c0_59 = arith.constant 0 : index
    %c0_60 = arith.constant 0 : index
    %c0_61 = arith.constant 0 : index
    %133 = vector.load %arg16[%c0_59, %c0_60, %c0_61] : memref<2x32x64xbf16, #tpu.memory_space<vmem>>, vector<1x32x64xbf16>
    %134 = vector.shape_cast %133 : vector<1x32x64xbf16> to vector<32x64xbf16>
    %cst_62 = arith.constant dense<0.000000e+00> : vector<16x64xf32>
    %135 = tpu.matmul %132, %134, %cst_62 {dimension_numbers = #tpu.dot_dimension_numbers<[1], [0], [0], [1], [0, 0, 1, 1], [], []>} : vector<16x32xbf16>, vector<32x64xbf16>, vector<16x64xf32> -> vector<16x64xf32>
    %c0_63 = arith.constant 0 : index
    %c0_64 = arith.constant 0 : index
    %c0_65 = arith.constant 0 : index
    %136 = vector.load %arg17[%c0_63, %c0_64, %c0_65] : memref<2x1x64xf32, #tpu.memory_space<vmem>>, vector<1x1x64xf32>
    %137 = vector.shape_cast %136 : vector<1x1x64xf32> to vector<1x64xf32>
    %138 = vector.broadcast %137 : vector<1x64xf32> to vector<16x64xf32>
    %139 = arith.addf %135, %138 : vector<16x64xf32>
    %cst_66 = arith.constant 0.000000e+00 : f32
    %140 = vector.broadcast %cst_66 : f32 to vector<16x64xf32>
    %141 = arith.maximumf %139, %140 : vector<16x64xf32>
    %142 = arith.truncf %141 : vector<16x64xf32> to vector<16x64xbf16>
    %c0_67 = arith.constant 0 : index
    %c0_68 = arith.constant 0 : index
    %c0_69 = arith.constant 0 : index
    %143 = vector.load %arg18[%c0_67, %c0_68, %c0_69] : memref<2x64x32xbf16, #tpu.memory_space<vmem>>, vector<1x64x32xbf16>
    %144 = vector.shape_cast %143 : vector<1x64x32xbf16> to vector<64x32xbf16>
    %cst_70 = arith.constant dense<0.000000e+00> : vector<16x32xf32>
    %145 = tpu.matmul %142, %144, %cst_70 {dimension_numbers = #tpu.dot_dimension_numbers<[1], [0], [0], [1], [0, 0, 1, 1], [], []>} : vector<16x64xbf16>, vector<64x32xbf16>, vector<16x32xf32> -> vector<16x32xf32>
    %c0_71 = arith.constant 0 : index
    %c0_72 = arith.constant 0 : index
    %c0_73 = arith.constant 0 : index
    %146 = vector.load %arg19[%c0_71, %c0_72, %c0_73] : memref<2x1x32xf32, #tpu.memory_space<vmem>>, vector<1x1x32xf32>
    %147 = vector.shape_cast %146 : vector<1x1x32xf32> to vector<1x32xf32>
    %148 = vector.broadcast %147 : vector<1x32xf32> to vector<16x32xf32>
    %149 = arith.addf %145, %148 : vector<16x32xf32>
    %150 = arith.addf %105, %149 : vector<16x32xf32>
    %c1 = arith.constant 1 : index
    %c0_74 = arith.constant 0 : index
    %c0_75 = arith.constant 0 : index
    %151 = vector.load %arg4[%c1, %c0_74, %c0_75] : memref<2x1x32xf32, #tpu.memory_space<vmem>>, vector<1x1x32xf32>
    %152 = vector.shape_cast %151 : vector<1x1x32xf32> to vector<1x32xf32>
    %c1_76 = arith.constant 1 : index
    %c0_77 = arith.constant 0 : index
    %c0_78 = arith.constant 0 : index
    %153 = vector.load %arg5[%c1_76, %c0_77, %c0_78] : memref<2x1x32xf32, #tpu.memory_space<vmem>>, vector<1x1x32xf32>
    %154 = vector.shape_cast %153 : vector<1x1x32xf32> to vector<1x32xf32>
    %cst_79 = arith.constant dense<0.000000e+00> : vector<16xf32>
    %155 = vector.multi_reduction <add>, %150, %cst_79 [1] : vector<16x32xf32> to vector<16xf32>
    %156 = vector.shape_cast %155 : vector<16xf32> to vector<16x1xf32>
    %cst_80 = arith.constant 3.200000e+01 : f32
    %157 = vector.broadcast %cst_80 : f32 to vector<16x1xf32>
    %158 = arith.divf %156, %157 : vector<16x1xf32>
    %159 = vector.broadcast %158 : vector<16x1xf32> to vector<16x32xf32>
    %160 = arith.subf %150, %159 : vector<16x32xf32>
    %161 = arith.mulf %160, %160 : vector<16x32xf32>
    %cst_81 = arith.constant dense<0.000000e+00> : vector<16xf32>
    %162 = vector.multi_reduction <add>, %161, %cst_81 [1] : vector<16x32xf32> to vector<16xf32>
    %163 = vector.shape_cast %162 : vector<16xf32> to vector<16x1xf32>
    %cst_82 = arith.constant 3.200000e+01 : f32
    %164 = vector.broadcast %cst_82 : f32 to vector<16x1xf32>
    %165 = arith.divf %163, %164 : vector<16x1xf32>
    %166 = vector.broadcast %158 : vector<16x1xf32> to vector<16x32xf32>
    %167 = arith.subf %150, %166 : vector<16x32xf32>
    %cst_83 = arith.constant 9.99999974E-6 : f32
    %168 = vector.broadcast %cst_83 : f32 to vector<16x1xf32>
    %169 = arith.addf %165, %168 : vector<16x1xf32>
    %170 = math.rsqrt %169 : vector<16x1xf32>
    %171 = vector.broadcast %170 : vector<16x1xf32> to vector<16x32xf32>
    %172 = arith.mulf %167, %171 : vector<16x32xf32>
    %173 = vector.broadcast %152 : vector<1x32xf32> to vector<16x32xf32>
    %174 = arith.mulf %172, %173 : vector<16x32xf32>
    %175 = vector.broadcast %154 : vector<1x32xf32> to vector<16x32xf32>
    %176 = arith.addf %174, %175 : vector<16x32xf32>
    %177 = arith.truncf %176 : vector<16x32xf32> to vector<16x32xbf16>
    %c1_84 = arith.constant 1 : index
    %c0_85 = arith.constant 0 : index
    %c0_86 = arith.constant 0 : index
    %178 = vector.load %arg6[%c1_84, %c0_85, %c0_86] : memref<2x32x32xbf16, #tpu.memory_space<vmem>>, vector<1x32x32xbf16>
    %179 = vector.shape_cast %178 : vector<1x32x32xbf16> to vector<32x32xbf16>
    %cst_87 = arith.constant dense<0.000000e+00> : vector<16x32xf32>
    %180 = tpu.matmul %177, %179, %cst_87 {dimension_numbers = #tpu.dot_dimension_numbers<[1], [0], [0], [1], [0, 0, 1, 1], [], []>} : vector<16x32xbf16>, vector<32x32xbf16>, vector<16x32xf32> -> vector<16x32xf32>
    %c1_88 = arith.constant 1 : index
    %c0_89 = arith.constant 0 : index
    %c0_90 = arith.constant 0 : index
    %181 = vector.load %arg7[%c1_88, %c0_89, %c0_90] : memref<2x1x32xf32, #tpu.memory_space<vmem>>, vector<1x1x32xf32>
    %182 = vector.shape_cast %181 : vector<1x1x32xf32> to vector<1x32xf32>
    %183 = vector.broadcast %182 : vector<1x32xf32> to vector<16x32xf32>
    %184 = arith.addf %180, %183 : vector<16x32xf32>
    %c1_91 = arith.constant 1 : index
    %c0_92 = arith.constant 0 : index
    %c0_93 = arith.constant 0 : index
    %185 = vector.load %arg8[%c1_91, %c0_92, %c0_93] : memref<2x32x32xbf16, #tpu.memory_space<vmem>>, vector<1x32x32xbf16>
    %186 = vector.shape_cast %185 : vector<1x32x32xbf16> to vector<32x32xbf16>
    %cst_94 = arith.constant dense<0.000000e+00> : vector<16x32xf32>
    %187 = tpu.matmul %177, %186, %cst_94 {dimension_numbers = #tpu.dot_dimension_numbers<[1], [0], [0], [1], [0, 0, 1, 1], [], []>} : vector<16x32xbf16>, vector<32x32xbf16>, vector<16x32xf32> -> vector<16x32xf32>
    %c1_95 = arith.constant 1 : index
    %c0_96 = arith.constant 0 : index
    %c0_97 = arith.constant 0 : index
    %188 = vector.load %arg9[%c1_95, %c0_96, %c0_97] : memref<2x1x32xf32, #tpu.memory_space<vmem>>, vector<1x1x32xf32>
    %189 = vector.shape_cast %188 : vector<1x1x32xf32> to vector<1x32xf32>
    %190 = vector.broadcast %189 : vector<1x32xf32> to vector<16x32xf32>
    %191 = arith.addf %187, %190 : vector<16x32xf32>
    %c1_98 = arith.constant 1 : index
    %c0_99 = arith.constant 0 : index
    %c0_100 = arith.constant 0 : index
    %192 = vector.load %arg10[%c1_98, %c0_99, %c0_100] : memref<2x32x32xbf16, #tpu.memory_space<vmem>>, vector<1x32x32xbf16>
    %193 = vector.shape_cast %192 : vector<1x32x32xbf16> to vector<32x32xbf16>
    %cst_101 = arith.constant dense<0.000000e+00> : vector<16x32xf32>
    %194 = tpu.matmul %177, %193, %cst_101 {dimension_numbers = #tpu.dot_dimension_numbers<[1], [0], [0], [1], [0, 0, 1, 1], [], []>} : vector<16x32xbf16>, vector<32x32xbf16>, vector<16x32xf32> -> vector<16x32xf32>
    %c1_102 = arith.constant 1 : index
    %c0_103 = arith.constant 0 : index
    %c0_104 = arith.constant 0 : index
    %195 = vector.load %arg11[%c1_102, %c0_103, %c0_104] : memref<2x1x32xf32, #tpu.memory_space<vmem>>, vector<1x1x32xf32>
    %196 = vector.shape_cast %195 : vector<1x1x32xf32> to vector<1x32xf32>
    %197 = vector.broadcast %196 : vector<1x32xf32> to vector<16x32xf32>
    %198 = arith.addf %194, %197 : vector<16x32xf32>
    %199 = vector.shape_cast %184 : vector<16x32xf32> to vector<2x8x32xf32>
    %200 = vector.extract_strided_slice %199 {offsets = [0, 0, 0], sizes = [2, 8, 8], strides = [1, 1, 1]} : vector<2x8x32xf32> to vector<2x8x8xf32>
    %201 = vector.extract_strided_slice %199 {offsets = [0, 0, 8], sizes = [2, 8, 8], strides = [1, 1, 1]} : vector<2x8x32xf32> to vector<2x8x8xf32>
    %202 = vector.extract_strided_slice %199 {offsets = [0, 0, 16], sizes = [2, 8, 8], strides = [1, 1, 1]} : vector<2x8x32xf32> to vector<2x8x8xf32>
    %203 = vector.extract_strided_slice %199 {offsets = [0, 0, 24], sizes = [2, 8, 8], strides = [1, 1, 1]} : vector<2x8x32xf32> to vector<2x8x8xf32>
    %204 = tpu.concatenate %200, %201, %202, %203 in 0 : vector<2x8x8xf32>, vector<2x8x8xf32>, vector<2x8x8xf32>, vector<2x8x8xf32> -> vector<8x8x8xf32>
    %205 = arith.truncf %204 : vector<8x8x8xf32> to vector<8x8x8xbf16>
    %206 = vector.shape_cast %191 : vector<16x32xf32> to vector<2x8x32xf32>
    %207 = vector.extract_strided_slice %206 {offsets = [0, 0, 0], sizes = [2, 8, 8], strides = [1, 1, 1]} : vector<2x8x32xf32> to vector<2x8x8xf32>
    %208 = vector.extract_strided_slice %206 {offsets = [0, 0, 8], sizes = [2, 8, 8], strides = [1, 1, 1]} : vector<2x8x32xf32> to vector<2x8x8xf32>
    %209 = vector.extract_strided_slice %206 {offsets = [0, 0, 16], sizes = [2, 8, 8], strides = [1, 1, 1]} : vector<2x8x32xf32> to vector<2x8x8xf32>
    %210 = vector.extract_strided_slice %206 {offsets = [0, 0, 24], sizes = [2, 8, 8], strides = [1, 1, 1]} : vector<2x8x32xf32> to vector<2x8x8xf32>
    %211 = tpu.concatenate %207, %208, %209, %210 in 0 : vector<2x8x8xf32>, vector<2x8x8xf32>, vector<2x8x8xf32>, vector<2x8x8xf32> -> vector<8x8x8xf32>
    %212 = arith.truncf %211 : vector<8x8x8xf32> to vector<8x8x8xbf16>
    %213 = vector.shape_cast %198 : vector<16x32xf32> to vector<2x8x32xf32>
    %214 = vector.extract_strided_slice %213 {offsets = [0, 0, 0], sizes = [2, 8, 8], strides = [1, 1, 1]} : vector<2x8x32xf32> to vector<2x8x8xf32>
    %215 = vector.extract_strided_slice %213 {offsets = [0, 0, 8], sizes = [2, 8, 8], strides = [1, 1, 1]} : vector<2x8x32xf32> to vector<2x8x8xf32>
    %216 = vector.extract_strided_slice %213 {offsets = [0, 0, 16], sizes = [2, 8, 8], strides = [1, 1, 1]} : vector<2x8x32xf32> to vector<2x8x8xf32>
    %217 = vector.extract_strided_slice %213 {offsets = [0, 0, 24], sizes = [2, 8, 8], strides = [1, 1, 1]} : vector<2x8x32xf32> to vector<2x8x8xf32>
    %218 = tpu.concatenate %214, %215, %216, %217 in 0 : vector<2x8x8xf32>, vector<2x8x8xf32>, vector<2x8x8xf32>, vector<2x8x8xf32> -> vector<8x8x8xf32>
    %219 = arith.truncf %218 : vector<8x8x8xf32> to vector<8x8x8xbf16>
    "tpu.trace_start"() <{level = 10 : i32, message = "bqd,bkd->bqk"}> : () -> ()
    %cst_105 = arith.constant dense<0.000000e+00> : vector<8x8x8xf32>
    %220 = tpu.matmul %205, %212, %cst_105 {dimension_numbers = #tpu.dot_dimension_numbers<[2], [2], [1], [1], [0, 0, 0, 1, 1, 1], [0], [0]>} : vector<8x8x8xbf16>, vector<8x8x8xbf16>, vector<8x8x8xf32> -> vector<8x8x8xf32>
    "tpu.trace_stop"() : () -> ()
    %cst_106 = arith.constant dense<0xFF800000> : vector<8x8xf32>
    %221 = vector.multi_reduction <maximumf>, %220, %cst_106 [2] : vector<8x8x8xf32> to vector<8x8xf32>
    %222 = vector.shape_cast %221 : vector<8x8xf32> to vector<8x8x1xf32>
    %223 = vector.broadcast %222 : vector<8x8x1xf32> to vector<8x8x8xf32>
    %224 = arith.subf %220, %223 : vector<8x8x8xf32>
    %225 = math.exp %224 : vector<8x8x8xf32>
    %cst_107 = arith.constant dense<0.000000e+00> : vector<8x8xf32>
    %226 = vector.multi_reduction <add>, %225, %cst_107 [2] : vector<8x8x8xf32> to vector<8x8xf32>
    %227 = vector.shape_cast %226 : vector<8x8xf32> to vector<8x8x1xf32>
    %228 = tpu.reciprocal %227 {approx = true} : vector<8x8x1xf32> -> vector<8x8x1xf32>
    %229 = vector.broadcast %228 : vector<8x8x1xf32> to vector<8x8x8xf32>
    %230 = arith.mulf %225, %229 : vector<8x8x8xf32>
    %231 = arith.truncf %230 : vector<8x8x8xf32> to vector<8x8x8xbf16>
    "tpu.trace_start"() <{level = 10 : i32, message = "bqk,bkd->bqd"}> : () -> ()
    %cst_108 = arith.constant dense<0.000000e+00> : vector<8x8x8xf32>
    %232 = tpu.matmul %231, %219, %cst_108 {dimension_numbers = #tpu.dot_dimension_numbers<[2], [1], [1], [2], [0, 0, 0, 1, 1, 2], [0], [0]>} : vector<8x8x8xbf16>, vector<8x8x8xbf16>, vector<8x8x8xf32> -> vector<8x8x8xf32>
    "tpu.trace_stop"() : () -> ()
    %233 = vector.extract_strided_slice %232 {offsets = [0, 0, 0], sizes = [2, 8, 8], strides = [1, 1, 1]} : vector<8x8x8xf32> to vector<2x8x8xf32>
    %234 = vector.shape_cast %233 : vector<2x8x8xf32> to vector<16x8xf32>
    %235 = vector.extract_strided_slice %232 {offsets = [2, 0, 0], sizes = [2, 8, 8], strides = [1, 1, 1]} : vector<8x8x8xf32> to vector<2x8x8xf32>
    %236 = vector.shape_cast %235 : vector<2x8x8xf32> to vector<16x8xf32>
    %237 = vector.extract_strided_slice %232 {offsets = [4, 0, 0], sizes = [2, 8, 8], strides = [1, 1, 1]} : vector<8x8x8xf32> to vector<2x8x8xf32>
    %238 = vector.shape_cast %237 : vector<2x8x8xf32> to vector<16x8xf32>
    %239 = vector.extract_strided_slice %232 {offsets = [6, 0, 0], sizes = [2, 8, 8], strides = [1, 1, 1]} : vector<8x8x8xf32> to vector<2x8x8xf32>
    %240 = vector.shape_cast %239 : vector<2x8x8xf32> to vector<16x8xf32>
    %241 = tpu.concatenate %234, %236, %238, %240 in 1 : vector<16x8xf32>, vector<16x8xf32>, vector<16x8xf32>, vector<16x8xf32> -> vector<16x32xf32>
    %242 = arith.truncf %241 : vector<16x32xf32> to vector<16x32xbf16>
    %c1_109 = arith.constant 1 : index
    %c0_110 = arith.constant 0 : index
    %c0_111 = arith.constant 0 : index
    %243 = vector.load %arg12[%c1_109, %c0_110, %c0_111] : memref<2x32x32xbf16, #tpu.memory_space<vmem>>, vector<1x32x32xbf16>
    %244 = vector.shape_cast %243 : vector<1x32x32xbf16> to vector<32x32xbf16>
    %cst_112 = arith.constant dense<0.000000e+00> : vector<16x32xf32>
    %245 = tpu.matmul %242, %244, %cst_112 {dimension_numbers = #tpu.dot_dimension_numbers<[1], [0], [0], [1], [0, 0, 1, 1], [], []>} : vector<16x32xbf16>, vector<32x32xbf16>, vector<16x32xf32> -> vector<16x32xf32>
    %c1_113 = arith.constant 1 : index
    %c0_114 = arith.constant 0 : index
    %c0_115 = arith.constant 0 : index
    %246 = vector.load %arg13[%c1_113, %c0_114, %c0_115] : memref<2x1x32xf32, #tpu.memory_space<vmem>>, vector<1x1x32xf32>
    %247 = vector.shape_cast %246 : vector<1x1x32xf32> to vector<1x32xf32>
    %248 = vector.broadcast %247 : vector<1x32xf32> to vector<16x32xf32>
    %249 = arith.addf %245, %248 : vector<16x32xf32>
    %250 = arith.addf %150, %249 : vector<16x32xf32>
    %c1_116 = arith.constant 1 : index
    %c0_117 = arith.constant 0 : index
    %c0_118 = arith.constant 0 : index
    %251 = vector.load %arg14[%c1_116, %c0_117, %c0_118] : memref<2x1x32xf32, #tpu.memory_space<vmem>>, vector<1x1x32xf32>
    %252 = vector.shape_cast %251 : vector<1x1x32xf32> to vector<1x32xf32>
    %c1_119 = arith.constant 1 : index
    %c0_120 = arith.constant 0 : index
    %c0_121 = arith.constant 0 : index
    %253 = vector.load %arg15[%c1_119, %c0_120, %c0_121] : memref<2x1x32xf32, #tpu.memory_space<vmem>>, vector<1x1x32xf32>
    %254 = vector.shape_cast %253 : vector<1x1x32xf32> to vector<1x32xf32>
    %cst_122 = arith.constant dense<0.000000e+00> : vector<16xf32>
    %255 = vector.multi_reduction <add>, %250, %cst_122 [1] : vector<16x32xf32> to vector<16xf32>
    %256 = vector.shape_cast %255 : vector<16xf32> to vector<16x1xf32>
    %cst_123 = arith.constant 3.200000e+01 : f32
    %257 = vector.broadcast %cst_123 : f32 to vector<16x1xf32>
    %258 = arith.divf %256, %257 : vector<16x1xf32>
    %259 = vector.broadcast %258 : vector<16x1xf32> to vector<16x32xf32>
    %260 = arith.subf %250, %259 : vector<16x32xf32>
    %261 = arith.mulf %260, %260 : vector<16x32xf32>
    %cst_124 = arith.constant dense<0.000000e+00> : vector<16xf32>
    %262 = vector.multi_reduction <add>, %261, %cst_124 [1] : vector<16x32xf32> to vector<16xf32>
    %263 = vector.shape_cast %262 : vector<16xf32> to vector<16x1xf32>
    %cst_125 = arith.constant 3.200000e+01 : f32
    %264 = vector.broadcast %cst_125 : f32 to vector<16x1xf32>
    %265 = arith.divf %263, %264 : vector<16x1xf32>
    %266 = vector.broadcast %258 : vector<16x1xf32> to vector<16x32xf32>
    %267 = arith.subf %250, %266 : vector<16x32xf32>
    %cst_126 = arith.constant 9.99999974E-6 : f32
    %268 = vector.broadcast %cst_126 : f32 to vector<16x1xf32>
    %269 = arith.addf %265, %268 : vector<16x1xf32>
    %270 = math.rsqrt %269 : vector<16x1xf32>
    %271 = vector.broadcast %270 : vector<16x1xf32> to vector<16x32xf32>
    %272 = arith.mulf %267, %271 : vector<16x32xf32>
    %273 = vector.broadcast %252 : vector<1x32xf32> to vector<16x32xf32>
    %274 = arith.mulf %272, %273 : vector<16x32xf32>
    %275 = vector.broadcast %254 : vector<1x32xf32> to vector<16x32xf32>
    %276 = arith.addf %274, %275 : vector<16x32xf32>
    %277 = arith.truncf %276 : vector<16x32xf32> to vector<16x32xbf16>
    %c1_127 = arith.constant 1 : index
    %c0_128 = arith.constant 0 : index
    %c0_129 = arith.constant 0 : index
    %278 = vector.load %arg16[%c1_127, %c0_128, %c0_129] : memref<2x32x64xbf16, #tpu.memory_space<vmem>>, vector<1x32x64xbf16>
    %279 = vector.shape_cast %278 : vector<1x32x64xbf16> to vector<32x64xbf16>
    %cst_130 = arith.constant dense<0.000000e+00> : vector<16x64xf32>
    %280 = tpu.matmul %277, %279, %cst_130 {dimension_numbers = #tpu.dot_dimension_numbers<[1], [0], [0], [1], [0, 0, 1, 1], [], []>} : vector<16x32xbf16>, vector<32x64xbf16>, vector<16x64xf32> -> vector<16x64xf32>
    %c1_131 = arith.constant 1 : index
    %c0_132 = arith.constant 0 : index
    %c0_133 = arith.constant 0 : index
    %281 = vector.load %arg17[%c1_131, %c0_132, %c0_133] : memref<2x1x64xf32, #tpu.memory_space<vmem>>, vector<1x1x64xf32>
    %282 = vector.shape_cast %281 : vector<1x1x64xf32> to vector<1x64xf32>
    %283 = vector.broadcast %282 : vector<1x64xf32> to vector<16x64xf32>
    %284 = arith.addf %280, %283 : vector<16x64xf32>
    %cst_134 = arith.constant 0.000000e+00 : f32
    %285 = vector.broadcast %cst_134 : f32 to vector<16x64xf32>
    %286 = arith.maximumf %284, %285 : vector<16x64xf32>
    %287 = arith.truncf %286 : vector<16x64xf32> to vector<16x64xbf16>
    %c1_135 = arith.constant 1 : index
    %c0_136 = arith.constant 0 : index
    %c0_137 = arith.constant 0 : index
    %288 = vector.load %arg18[%c1_135, %c0_136, %c0_137] : memref<2x64x32xbf16, #tpu.memory_space<vmem>>, vector<1x64x32xbf16>
    %289 = vector.shape_cast %288 : vector<1x64x32xbf16> to vector<64x32xbf16>
    %cst_138 = arith.constant dense<0.000000e+00> : vector<16x32xf32>
    %290 = tpu.matmul %287, %289, %cst_138 {dimension_numbers = #tpu.dot_dimension_numbers<[1], [0], [0], [1], [0, 0, 1, 1], [], []>} : vector<16x64xbf16>, vector<64x32xbf16>, vector<16x32xf32> -> vector<16x32xf32>
    %c1_139 = arith.constant 1 : index
    %c0_140 = arith.constant 0 : index
    %c0_141 = arith.constant 0 : index
    %291 = vector.load %arg19[%c1_139, %c0_140, %c0_141] : memref<2x1x32xf32, #tpu.memory_space<vmem>>, vector<1x1x32xf32>
    %292 = vector.shape_cast %291 : vector<1x1x32xf32> to vector<1x32xf32>
    %293 = vector.broadcast %292 : vector<1x32xf32> to vector<16x32xf32>
    %294 = arith.addf %290, %293 : vector<16x32xf32>
    %295 = arith.addf %250, %294 : vector<16x32xf32>
    %cst_142 = arith.constant dense<0.000000e+00> : vector<32xf32>
    %296 = vector.multi_reduction <add>, %295, %cst_142 [0] : vector<16x32xf32> to vector<32xf32>
    %297 = vector.shape_cast %296 : vector<32xf32> to vector<1x32xf32>
    %c0_143 = arith.constant 0 : index
    %c0_144 = arith.constant 0 : index
    %c0_145 = arith.constant 0 : index
    %298 = vector.load %arg20[%c0_143, %c0_144, %c0_145] : memref<1x1x32xf32, #tpu.memory_space<vmem>>, vector<1x1x32xf32>
    %299 = vector.shape_cast %298 : vector<1x1x32xf32> to vector<1x32xf32>
    %300 = vector.shape_cast %297 : vector<1x32xf32> to vector<1x1x32xf32>
    tpu.vector_store %arg20[%c0_143, %c0_144, %c0_145], %300 {strides = array<i32>} : memref<1x1x32xf32, #tpu.memory_space<vmem>>, vector<1x1x32xf32>,
    return
  }
  func.func @transform_0(%arg0: i32) -> (i32, i32) {
    %c0_i32 = arith.constant 0 : i32
    %c0_i32_0 = arith.constant 0 : i32
    return %arg0, %c0_i32 : i32, i32
  }
  func.func @transform_1(%arg0: i32) -> (i32, i32) {
    %c1_i32 = arith.constant 1 : i32
    %c0_i32 = arith.constant 0 : i32
    %0 = arith.cmpi eq, %c1_i32, %c0_i32 : i32
    %c1_i32_0 = arith.constant 1 : i32
    %1 = arith.select %0, %c1_i32_0, %c1_i32 : i32
    %2 = arith.remsi %arg0, %1 : i32
    %c0_i32_1 = arith.constant 0 : i32
    %3 = arith.cmpi ne, %2, %c0_i32_1 : i32
    %c0_i32_2 = arith.constant 0 : i32
    %4 = arith.cmpi slt, %2, %c0_i32_2 : i32
    %c0_i32_3 = arith.constant 0 : i32
    %5 = arith.cmpi slt, %1, %c0_i32_3 : i32
    %6 = arith.xori %4, %5 : i1
    %7 = arith.andi %6, %3 : i1
    %8 = arith.addi %2, %1 : i32
    %9 = arith.select %7, %8, %2 : i32
    %c0_i32_4 = arith.constant 0 : i32
    %c0_i32_5 = arith.constant 0 : i32
    return %9, %c0_i32_4 : i32, i32
  }
  func.func @transform_2(%arg0: i32) -> (i32, i32) {
    %c0_i32 = arith.constant 0 : i32
    %c0_i32_0 = arith.constant 0 : i32
    %c0_i32_1 = arith.constant 0 : i32
    return %c0_i32, %c0_i32_0 : i32, i32
  }
  func.func @transform_3(%arg0: i32) -> (i32, i32, i32) {
    %c0_i32 = arith.constant 0 : i32
    %c0_i32_0 = arith.constant 0 : i32
    %c0_i32_1 = arith.constant 0 : i32
    %c0_i32_2 = arith.constant 0 : i32
    return %c0_i32, %c0_i32_0, %c0_i32_1 : i32, i32, i32
  }
  func.func @transform_4(%arg0: i32) -> (i32, i32, i32) {
    %c0_i32 = arith.constant 0 : i32
    %c0_i32_0 = arith.constant 0 : i32
    %c0_i32_1 = arith.constant 0 : i32
    %c0_i32_2 = arith.constant 0 : i32
    return %c0_i32, %c0_i32_0, %c0_i32_1 : i32, i32, i32
  }
  func.func @transform_5(%arg0: i32) -> (i32, i32, i32) {
    %c0_i32 = arith.constant 0 : i32
    %c0_i32_0 = arith.constant 0 : i32
    %c0_i32_1 = arith.constant 0 : i32
    %c0_i32_2 = arith.constant 0 : i32
    return %c0_i32, %c0_i32_0, %c0_i32_1 : i32, i32, i32
  }
  func.func @transform_6(%arg0: i32) -> (i32, i32, i32) {
    %c0_i32 = arith.constant 0 : i32
    %c0_i32_0 = arith.constant 0 : i32
    %c0_i32_1 = arith.constant 0 : i32
    %c0_i32_2 = arith.constant 0 : i32
    return %c0_i32, %c0_i32_0, %c0_i32_1 : i32, i32, i32
  }
  func.func @transform_7(%arg0: i32) -> (i32, i32, i32) {
    %c0_i32 = arith.constant 0 : i32
    %c0_i32_0 = arith.constant 0 : i32
    %c0_i32_1 = arith.constant 0 : i32
    %c0_i32_2 = arith.constant 0 : i32
    return %c0_i32, %c0_i32_0, %c0_i32_1 : i32, i32, i32
  }
  func.func @transform_8(%arg0: i32) -> (i32, i32, i32) {
    %c0_i32 = arith.constant 0 : i32
    %c0_i32_0 = arith.constant 0 : i32
    %c0_i32_1 = arith.constant 0 : i32
    %c0_i32_2 = arith.constant 0 : i32
    return %c0_i32, %c0_i32_0, %c0_i32_1 : i32, i32, i32
  }
  func.func @transform_9(%arg0: i32) -> (i32, i32, i32) {
    %c0_i32 = arith.constant 0 : i32
    %c0_i32_0 = arith.constant 0 : i32
    %c0_i32_1 = arith.constant 0 : i32
    %c0_i32_2 = arith.constant 0 : i32
    return %c0_i32, %c0_i32_0, %c0_i32_1 : i32, i32, i32
  }
  func.func @transform_10(%arg0: i32) -> (i32, i32, i32) {
    %c0_i32 = arith.constant 0 : i32
    %c0_i32_0 = arith.constant 0 : i32
    %c0_i32_1 = arith.constant 0 : i32
    %c0_i32_2 = arith.constant 0 : i32
    return %c0_i32, %c0_i32_0, %c0_i32_1 : i32, i32, i32
  }
  func.func @transform_11(%arg0: i32) -> (i32, i32, i32) {
    %c0_i32 = arith.constant 0 : i32
    %c0_i32_0 = arith.constant 0 : i32
    %c0_i32_1 = arith.constant 0 : i32
    %c0_i32_2 = arith.constant 0 : i32
    return %c0_i32, %c0_i32_0, %c0_i32_1 : i32, i32, i32
  }
  func.func @transform_12(%arg0: i32) -> (i32, i32, i32) {
    %c0_i32 = arith.constant 0 : i32
    %c0_i32_0 = arith.constant 0 : i32
    %c0_i32_1 = arith.constant 0 : i32
    %c0_i32_2 = arith.constant 0 : i32
    return %c0_i32, %c0_i32_0, %c0_i32_1 : i32, i32, i32
  }
  func.func @transform_13(%arg0: i32) -> (i32, i32, i32) {
    %c0_i32 = arith.constant 0 : i32
    %c0_i32_0 = arith.constant 0 : i32
    %c0_i32_1 = arith.constant 0 : i32
    %c0_i32_2 = arith.constant 0 : i32
    return %c0_i32, %c0_i32_0, %c0_i32_1 : i32, i32, i32
  }
  func.func @transform_14(%arg0: i32) -> (i32, i32, i32) {
    %c0_i32 = arith.constant 0 : i32
    %c0_i32_0 = arith.constant 0 : i32
    %c0_i32_1 = arith.constant 0 : i32
    %c0_i32_2 = arith.constant 0 : i32
    return %c0_i32, %c0_i32_0, %c0_i32_1 : i32, i32, i32
  }
  func.func @transform_15(%arg0: i32) -> (i32, i32, i32) {
    %c0_i32 = arith.constant 0 : i32
    %c0_i32_0 = arith.constant 0 : i32
    %c0_i32_1 = arith.constant 0 : i32
    %c0_i32_2 = arith.constant 0 : i32
    return %c0_i32, %c0_i32_0, %c0_i32_1 : i32, i32, i32
  }
  func.func @transform_16(%arg0: i32) -> (i32, i32, i32) {
    %c0_i32 = arith.constant 0 : i32
    %c0_i32_0 = arith.constant 0 : i32
    %c0_i32_1 = arith.constant 0 : i32
    %c0_i32_2 = arith.constant 0 : i32
    return %c0_i32, %c0_i32_0, %c0_i32_1 : i32, i32, i32
  }
  func.func @transform_17(%arg0: i32) -> (i32, i32, i32) {
    %c0_i32 = arith.constant 0 : i32
    %c0_i32_0 = arith.constant 0 : i32
    %c0_i32_1 = arith.constant 0 : i32
    %c0_i32_2 = arith.constant 0 : i32
    return %c0_i32, %c0_i32_0, %c0_i32_1 : i32, i32, i32
  }
  func.func @transform_18(%arg0: i32) -> (i32, i32, i32) {
    %c0_i32 = arith.constant 0 : i32
    %c0_i32_0 = arith.constant 0 : i32
    %c0_i32_1 = arith.constant 0 : i32
    %c0_i32_2 = arith.constant 0 : i32
    return %c0_i32, %c0_i32_0, %c0_i32_1 : i32, i32, i32
  }
  func.func @transform_19(%arg0: i32) -> (i32, i32, i32) {
    %c0_i32 = arith.constant 0 : i32
    %c0_i32_0 = arith.constant 0 : i32
    %c0_i32_1 = arith.constant 0 : i32
    return %arg0, %c0_i32, %c0_i32_0 : i32, i32, i32
  }
}

module attributes {stable_mosaic.version = 11 : i64} {
  func.func @fused_encoder_kernel(%arg0: i32, %arg1: memref<16x4xf32, #tpu.memory_space<vmem>>, %arg2: memref<16x32xf32, #tpu.memory_space<vmem>>, %arg3: memref<4x32xbf16, #tpu.memory_space<vmem>>, %arg4: memref<2x1x32xf32, #tpu.memory_space<vmem>>, %arg5: memref<2x1x32xf32, #tpu.memory_space<vmem>>, %arg6: memref<2x32x32xbf16, #tpu.memory_space<vmem>>, %arg7: memref<2x1x32xf32, #tpu.memory_space<vmem>>, %arg8: memref<2x32x32xbf16, #tpu.memory_space<vmem>>, %arg9: memref<2x1x32xf32, #tpu.memory_space<vmem>>, %arg10: memref<2x32x32xbf16, #tpu.memory_space<vmem>>, %arg11: memref<2x1x32xf32, #tpu.memory_space<vmem>>, %arg12: memref<2x32x32xbf16, #tpu.memory_space<vmem>>, %arg13: memref<2x1x32xf32, #tpu.memory_space<vmem>>, %arg14: memref<2x1x32xf32, #tpu.memory_space<vmem>>, %arg15: memref<2x1x32xf32, #tpu.memory_space<vmem>>, %arg16: memref<2x32x64xbf16, #tpu.memory_space<vmem>>, %arg17: memref<2x1x64xf32, #tpu.memory_space<vmem>>, %arg18: memref<2x64x32xbf16, #tpu.memory_space<vmem>>, %arg19: memref<2x1x32xf32, #tpu.memory_space<vmem>>, %arg20: memref<1x1x32xf32, #tpu.memory_space<vmem>>) attributes {dimension_semantics = [#tpu.dimension_semantics<parallel>], iteration_bounds = array<i64: 2>, scalar_prefetch = 0 : i64, scratch_operands = 0 : i64, tpu.core_type = #tpu.core_type<tc>, window_params = [{transform_indices = @transform_0, window_bounds = array<i64: 16, 4>}, {transform_indices = @transform_1, window_bounds = array<i64: 16, 32>}, {pipeline_mode = #tpu.pipeline_mode<synchronous>, transform_indices = @transform_2, window_bounds = array<i64: 4, 32>}, {pipeline_mode = #tpu.pipeline_mode<synchronous>, transform_indices = @transform_3, window_bounds = array<i64: 2, 1, 32>}, {pipeline_mode = #tpu.pipeline_mode<synchronous>, transform_indices = @transform_4, window_bounds = array<i64: 2, 1, 32>}, {pipeline_mode = #tpu.pipeline_mode<synchronous>, transform_indices = @transform_5, window_bounds = array<i64: 2, 32, 32>}, {pipeline_mode = #tpu.pipeline_mode<synchronous>, transform_indices = @transform_6, window_bounds = array<i64: 2, 1, 32>}, {pipeline_mode = #tpu.pipeline_mode<synchronous>, transform_indices = @transform_7, window_bounds = array<i64: 2, 32, 32>}, {pipeline_mode = #tpu.pipeline_mode<synchronous>, transform_indices = @transform_8, window_bounds = array<i64: 2, 1, 32>}, {pipeline_mode = #tpu.pipeline_mode<synchronous>, transform_indices = @transform_9, window_bounds = array<i64: 2, 32, 32>}, {pipeline_mode = #tpu.pipeline_mode<synchronous>, transform_indices = @transform_10, window_bounds = array<i64: 2, 1, 32>}, {pipeline_mode = #tpu.pipeline_mode<synchronous>, transform_indices = @transform_11, window_bounds = array<i64: 2, 32, 32>}, {pipeline_mode = #tpu.pipeline_mode<synchronous>, transform_indices = @transform_12, window_bounds = array<i64: 2, 1, 32>}, {pipeline_mode = #tpu.pipeline_mode<synchronous>, transform_indices = @transform_13, window_bounds = array<i64: 2, 1, 32>}, {pipeline_mode = #tpu.pipeline_mode<synchronous>, transform_indices = @transform_14, window_bounds = array<i64: 2, 1, 32>}, {pipeline_mode = #tpu.pipeline_mode<synchronous>, transform_indices = @transform_15, window_bounds = array<i64: 2, 32, 64>}, {pipeline_mode = #tpu.pipeline_mode<synchronous>, transform_indices = @transform_16, window_bounds = array<i64: 2, 1, 64>}, {pipeline_mode = #tpu.pipeline_mode<synchronous>, transform_indices = @transform_17, window_bounds = array<i64: 2, 64, 32>}, {pipeline_mode = #tpu.pipeline_mode<synchronous>, transform_indices = @transform_18, window_bounds = array<i64: 2, 1, 32>}, {transform_indices = @transform_19, window_bounds = array<i64: 1, 1, 32>}]} {
    %c0 = arith.constant 0 : index
    %c0_0 = arith.constant 0 : index
    %0 = vector.load %arg1[%c0, %c0_0] : memref<16x4xf32, #tpu.memory_space<vmem>>, vector<16x4xf32>
    %1 = arith.truncf %0 : vector<16x4xf32> to vector<16x4xbf16>
    %c0_1 = arith.constant 0 : index
    %c0_2 = arith.constant 0 : index
    %2 = vector.load %arg3[%c0_1, %c0_2] : memref<4x32xbf16, #tpu.memory_space<vmem>>, vector<4x32xbf16>
    %cst = arith.constant dense<0.000000e+00> : vector<16x32xf32>
    %3 = tpu.matmul %1, %2, %cst {dimension_numbers = #tpu.dot_dimension_numbers<[1], [0], [0], [1], [0, 0, 1, 1], [], []>} : vector<16x4xbf16>, vector<4x32xbf16>, vector<16x32xf32> -> vector<16x32xf32>
    %c0_3 = arith.constant 0 : index
    %c0_4 = arith.constant 0 : index
    %4 = vector.load %arg2[%c0_3, %c0_4] : memref<16x32xf32, #tpu.memory_space<vmem>>, vector<16x32xf32>
    %5 = arith.addf %3, %4 : vector<16x32xf32>
    %c0_5 = arith.constant 0 : index
    %c0_6 = arith.constant 0 : index
    %c0_7 = arith.constant 0 : index
    %6 = vector.load %arg4[%c0_5, %c0_6, %c0_7] : memref<2x1x32xf32, #tpu.memory_space<vmem>>, vector<1x1x32xf32>
    %7 = vector.shape_cast %6 : vector<1x1x32xf32> to vector<1x32xf32>
    %c0_8 = arith.constant 0 : index
    %c0_9 = arith.constant 0 : index
    %c0_10 = arith.constant 0 : index
    %8 = vector.load %arg5[%c0_8, %c0_9, %c0_10] : memref<2x1x32xf32, #tpu.memory_space<vmem>>, vector<1x1x32xf32>
    %9 = vector.shape_cast %8 : vector<1x1x32xf32> to vector<1x32xf32>
    %cst_11 = arith.constant dense<0.000000e+00> : vector<16xf32>
    %10 = vector.multi_reduction <add>, %5, %cst_11 [1] : vector<16x32xf32> to vector<16xf32>
    %11 = vector.shape_cast %10 : vector<16xf32> to vector<16x1xf32>
    %cst_12 = arith.constant 3.200000e+01 : f32
    %12 = vector.broadcast %cst_12 : f32 to vector<16x1xf32>
    %13 = arith.divf %11, %12 : vector<16x1xf32>
    %14 = vector.broadcast %13 : vector<16x1xf32> to vector<16x32xf32>
    %15 = arith.subf %5, %14 : vector<16x32xf32>
    %16 = arith.mulf %15, %15 : vector<16x32xf32>
    %cst_13 = arith.constant dense<0.000000e+00> : vector<16xf32>
    %17 = vector.multi_reduction <add>, %16, %cst_13 [1] : vector<16x32xf32> to vector<16xf32>
    %18 = vector.shape_cast %17 : vector<16xf32> to vector<16x1xf32>
    %cst_14 = arith.constant 3.200000e+01 : f32
    %19 = vector.broadcast %cst_14 : f32 to vector<16x1xf32>
    %20 = arith.divf %18, %19 : vector<16x1xf32>
    %21 = vector.broadcast %13 : vector<16x1xf32> to vector<16x32xf32>
    %22 = arith.subf %5, %21 : vector<16x32xf32>
    %cst_15 = arith.constant 9.99999974E-6 : f32
    %23 = vector.broadcast %cst_15 : f32 to vector<16x1xf32>
    %24 = arith.addf %20, %23 : vector<16x1xf32>
    %25 = math.rsqrt %24 : vector<16x1xf32>
    %26 = vector.broadcast %25 : vector<16x1xf32> to vector<16x32xf32>
    %27 = arith.mulf %22, %26 : vector<16x32xf32>
    %28 = vector.broadcast %7 : vector<1x32xf32> to vector<16x32xf32>
    %29 = arith.mulf %27, %28 : vector<16x32xf32>
    %30 = vector.broadcast %9 : vector<1x32xf32> to vector<16x32xf32>
    %31 = arith.addf %29, %30 : vector<16x32xf32>
    %32 = arith.truncf %31 : vector<16x32xf32> to vector<16x32xbf16>
    %c0_16 = arith.constant 0 : index
    %c0_17 = arith.constant 0 : index
    %c0_18 = arith.constant 0 : index
    %33 = vector.load %arg6[%c0_16, %c0_17, %c0_18] : memref<2x32x32xbf16, #tpu.memory_space<vmem>>, vector<1x32x32xbf16>
    %34 = vector.shape_cast %33 : vector<1x32x32xbf16> to vector<32x32xbf16>
    %cst_19 = arith.constant dense<0.000000e+00> : vector<16x32xf32>
    %35 = tpu.matmul %32, %34, %cst_19 {dimension_numbers = #tpu.dot_dimension_numbers<[1], [0], [0], [1], [0, 0, 1, 1], [], []>} : vector<16x32xbf16>, vector<32x32xbf16>, vector<16x32xf32> -> vector<16x32xf32>
    %c0_20 = arith.constant 0 : index
    %c0_21 = arith.constant 0 : index
    %c0_22 = arith.constant 0 : index
    %36 = vector.load %arg7[%c0_20, %c0_21, %c0_22] : memref<2x1x32xf32, #tpu.memory_space<vmem>>, vector<1x1x32xf32>
    %37 = vector.shape_cast %36 : vector<1x1x32xf32> to vector<1x32xf32>
    %38 = vector.broadcast %37 : vector<1x32xf32> to vector<16x32xf32>
    %39 = arith.addf %35, %38 : vector<16x32xf32>
    %c0_23 = arith.constant 0 : index
    %c0_24 = arith.constant 0 : index
    %c0_25 = arith.constant 0 : index
    %40 = vector.load %arg8[%c0_23, %c0_24, %c0_25] : memref<2x32x32xbf16, #tpu.memory_space<vmem>>, vector<1x32x32xbf16>
    %41 = vector.shape_cast %40 : vector<1x32x32xbf16> to vector<32x32xbf16>
    %cst_26 = arith.constant dense<0.000000e+00> : vector<16x32xf32>
    %42 = tpu.matmul %32, %41, %cst_26 {dimension_numbers = #tpu.dot_dimension_numbers<[1], [0], [0], [1], [0, 0, 1, 1], [], []>} : vector<16x32xbf16>, vector<32x32xbf16>, vector<16x32xf32> -> vector<16x32xf32>
    %c0_27 = arith.constant 0 : index
    %c0_28 = arith.constant 0 : index
    %c0_29 = arith.constant 0 : index
    %43 = vector.load %arg9[%c0_27, %c0_28, %c0_29] : memref<2x1x32xf32, #tpu.memory_space<vmem>>, vector<1x1x32xf32>
    %44 = vector.shape_cast %43 : vector<1x1x32xf32> to vector<1x32xf32>
    %45 = vector.broadcast %44 : vector<1x32xf32> to vector<16x32xf32>
    %46 = arith.addf %42, %45 : vector<16x32xf32>
    %c0_30 = arith.constant 0 : index
    %c0_31 = arith.constant 0 : index
    %c0_32 = arith.constant 0 : index
    %47 = vector.load %arg10[%c0_30, %c0_31, %c0_32] : memref<2x32x32xbf16, #tpu.memory_space<vmem>>, vector<1x32x32xbf16>
    %48 = vector.shape_cast %47 : vector<1x32x32xbf16> to vector<32x32xbf16>
    %cst_33 = arith.constant dense<0.000000e+00> : vector<16x32xf32>
    %49 = tpu.matmul %32, %48, %cst_33 {dimension_numbers = #tpu.dot_dimension_numbers<[1], [0], [0], [1], [0, 0, 1, 1], [], []>} : vector<16x32xbf16>, vector<32x32xbf16>, vector<16x32xf32> -> vector<16x32xf32>
    %c0_34 = arith.constant 0 : index
    %c0_35 = arith.constant 0 : index
    %c0_36 = arith.constant 0 : index
    %50 = vector.load %arg11[%c0_34, %c0_35, %c0_36] : memref<2x1x32xf32, #tpu.memory_space<vmem>>, vector<1x1x32xf32>
    %51 = vector.shape_cast %50 : vector<1x1x32xf32> to vector<1x32xf32>
    %52 = vector.broadcast %51 : vector<1x32xf32> to vector<16x32xf32>
    %53 = arith.addf %49, %52 : vector<16x32xf32>
    %54 = vector.shape_cast %39 : vector<16x32xf32> to vector<2x8x32xf32>
    %55 = vector.extract_strided_slice %54 {offsets = [0, 0, 0], sizes = [2, 8, 8], strides = [1, 1, 1]} : vector<2x8x32xf32> to vector<2x8x8xf32>
    %56 = vector.extract_strided_slice %54 {offsets = [0, 0, 8], sizes = [2, 8, 8], strides = [1, 1, 1]} : vector<2x8x32xf32> to vector<2x8x8xf32>
    %57 = vector.extract_strided_slice %54 {offsets = [0, 0, 16], sizes = [2, 8, 8], strides = [1, 1, 1]} : vector<2x8x32xf32> to vector<2x8x8xf32>
    %58 = vector.extract_strided_slice %54 {offsets = [0, 0, 24], sizes = [2, 8, 8], strides = [1, 1, 1]} : vector<2x8x32xf32> to vector<2x8x8xf32>
    %59 = tpu.concatenate %55, %56, %57, %58 in 0 : vector<2x8x8xf32>, vector<2x8x8xf32>, vector<2x8x8xf32>, vector<2x8x8xf32> -> vector<8x8x8xf32>
    %60 = arith.truncf %59 : vector<8x8x8xf32> to vector<8x8x8xbf16>
    %61 = vector.shape_cast %46 : vector<16x32xf32> to vector<2x8x32xf32>
    %62 = vector.extract_strided_slice %61 {offsets = [0, 0, 0], sizes = [2, 8, 8], strides = [1, 1, 1]} : vector<2x8x32xf32> to vector<2x8x8xf32>
    %63 = vector.extract_strided_slice %61 {offsets = [0, 0, 8], sizes = [2, 8, 8], strides = [1, 1, 1]} : vector<2x8x32xf32> to vector<2x8x8xf32>
    %64 = vector.extract_strided_slice %61 {offsets = [0, 0, 16], sizes = [2, 8, 8], strides = [1, 1, 1]} : vector<2x8x32xf32> to vector<2x8x8xf32>
    %65 = vector.extract_strided_slice %61 {offsets = [0, 0, 24], sizes = [2, 8, 8], strides = [1, 1, 1]} : vector<2x8x32xf32> to vector<2x8x8xf32>
    %66 = tpu.concatenate %62, %63, %64, %65 in 0 : vector<2x8x8xf32>, vector<2x8x8xf32>, vector<2x8x8xf32>, vector<2x8x8xf32> -> vector<8x8x8xf32>
    %67 = arith.truncf %66 : vector<8x8x8xf32> to vector<8x8x8xbf16>
    %68 = vector.shape_cast %53 : vector<16x32xf32> to vector<2x8x32xf32>
    %69 = vector.extract_strided_slice %68 {offsets = [0, 0, 0], sizes = [2, 8, 8], strides = [1, 1, 1]} : vector<2x8x32xf32> to vector<2x8x8xf32>
    %70 = vector.extract_strided_slice %68 {offsets = [0, 0, 8], sizes = [2, 8, 8], strides = [1, 1, 1]} : vector<2x8x32xf32> to vector<2x8x8xf32>
    %71 = vector.extract_strided_slice %68 {offsets = [0, 0, 16], sizes = [2, 8, 8], strides = [1, 1, 1]} : vector<2x8x32xf32> to vector<2x8x8xf32>
    %72 = vector.extract_strided_slice %68 {offsets = [0, 0, 24], sizes = [2, 8, 8], strides = [1, 1, 1]} : vector<2x8x32xf32> to vector<2x8x8xf32>
    %73 = tpu.concatenate %69, %70, %71, %72 in 0 : vector<2x8x8xf32>, vector<2x8x8xf32>, vector<2x8x8xf32>, vector<2x8x8xf32> -> vector<8x8x8xf32>
    %74 = arith.truncf %73 : vector<8x8x8xf32> to vector<8x8x8xbf16>
    "tpu.trace_start"() <{level = 10 : i32, message = "bqd,bkd->bqk"}> : () -> ()
    %cst_37 = arith.constant dense<0.000000e+00> : vector<8x8x8xf32>
    %75 = tpu.matmul %60, %67, %cst_37 {dimension_numbers = #tpu.dot_dimension_numbers<[2], [2], [1], [1], [0, 0, 0, 1, 1, 1], [0], [0]>} : vector<8x8x8xbf16>, vector<8x8x8xbf16>, vector<8x8x8xf32> -> vector<8x8x8xf32>
    "tpu.trace_stop"() : () -> ()
    %cst_38 = arith.constant dense<0xFF800000> : vector<8x8xf32>
    %76 = vector.multi_reduction <maximumf>, %75, %cst_38 [2] : vector<8x8x8xf32> to vector<8x8xf32>
    %77 = vector.shape_cast %76 : vector<8x8xf32> to vector<8x8x1xf32>
    %78 = vector.broadcast %77 : vector<8x8x1xf32> to vector<8x8x8xf32>
    %79 = arith.subf %75, %78 : vector<8x8x8xf32>
    %80 = math.exp %79 : vector<8x8x8xf32>
    %cst_39 = arith.constant dense<0.000000e+00> : vector<8x8xf32>
    %81 = vector.multi_reduction <add>, %80, %cst_39 [2] : vector<8x8x8xf32> to vector<8x8xf32>
    %82 = vector.shape_cast %81 : vector<8x8xf32> to vector<8x8x1xf32>
    %83 = tpu.reciprocal %82 {approx = true} : vector<8x8x1xf32> -> vector<8x8x1xf32>
    %84 = vector.broadcast %83 : vector<8x8x1xf32> to vector<8x8x8xf32>
    %85 = arith.mulf %80, %84 : vector<8x8x8xf32>
    %86 = arith.truncf %85 : vector<8x8x8xf32> to vector<8x8x8xbf16>
    "tpu.trace_start"() <{level = 10 : i32, message = "bqk,bkd->bqd"}> : () -> ()
    %cst_40 = arith.constant dense<0.000000e+00> : vector<8x8x8xf32>
    %87 = tpu.matmul %86, %74, %cst_40 {dimension_numbers = #tpu.dot_dimension_numbers<[2], [1], [1], [2], [0, 0, 0, 1, 1, 2], [0], [0]>} : vector<8x8x8xbf16>, vector<8x8x8xbf16>, vector<8x8x8xf32> -> vector<8x8x8xf32>
    "tpu.trace_stop"() : () -> ()
    %88 = vector.extract_strided_slice %87 {offsets = [0, 0, 0], sizes = [2, 8, 8], strides = [1, 1, 1]} : vector<8x8x8xf32> to vector<2x8x8xf32>
    %89 = vector.shape_cast %88 : vector<2x8x8xf32> to vector<16x8xf32>
    %90 = vector.extract_strided_slice %87 {offsets = [2, 0, 0], sizes = [2, 8, 8], strides = [1, 1, 1]} : vector<8x8x8xf32> to vector<2x8x8xf32>
    %91 = vector.shape_cast %90 : vector<2x8x8xf32> to vector<16x8xf32>
    %92 = vector.extract_strided_slice %87 {offsets = [4, 0, 0], sizes = [2, 8, 8], strides = [1, 1, 1]} : vector<8x8x8xf32> to vector<2x8x8xf32>
    %93 = vector.shape_cast %92 : vector<2x8x8xf32> to vector<16x8xf32>
    %94 = vector.extract_strided_slice %87 {offsets = [6, 0, 0], sizes = [2, 8, 8], strides = [1, 1, 1]} : vector<8x8x8xf32> to vector<2x8x8xf32>
    %95 = vector.shape_cast %94 : vector<2x8x8xf32> to vector<16x8xf32>
    %96 = tpu.concatenate %89, %91, %93, %95 in 1 : vector<16x8xf32>, vector<16x8xf32>, vector<16x8xf32>, vector<16x8xf32> -> vector<16x32xf32>
    %97 = arith.truncf %96 : vector<16x32xf32> to vector<16x32xbf16>
    %c0_41 = arith.constant 0 : index
    %c0_42 = arith.constant 0 : index
    %c0_43 = arith.constant 0 : index
    %98 = vector.load %arg12[%c0_41, %c0_42, %c0_43] : memref<2x32x32xbf16, #tpu.memory_space<vmem>>, vector<1x32x32xbf16>
    %99 = vector.shape_cast %98 : vector<1x32x32xbf16> to vector<32x32xbf16>
    %cst_44 = arith.constant dense<0.000000e+00> : vector<16x32xf32>
    %100 = tpu.matmul %97, %99, %cst_44 {dimension_numbers = #tpu.dot_dimension_numbers<[1], [0], [0], [1], [0, 0, 1, 1], [], []>} : vector<16x32xbf16>, vector<32x32xbf16>, vector<16x32xf32> -> vector<16x32xf32>
    %c0_45 = arith.constant 0 : index
    %c0_46 = arith.constant 0 : index
    %c0_47 = arith.constant 0 : index
    %101 = vector.load %arg13[%c0_45, %c0_46, %c0_47] : memref<2x1x32xf32, #tpu.memory_space<vmem>>, vector<1x1x32xf32>
    %102 = vector.shape_cast %101 : vector<1x1x32xf32> to vector<1x32xf32>
    %103 = vector.broadcast %102 : vector<1x32xf32> to vector<16x32xf32>
    %104 = arith.addf %100, %103 : vector<16x32xf32>
    %105 = arith.addf %5, %104 : vector<16x32xf32>
    %c0_48 = arith.constant 0 : index
    %c0_49 = arith.constant 0 : index
    %c0_50 = arith.constant 0 : index
    %106 = vector.load %arg14[%c0_48, %c0_49, %c0_50] : memref<2x1x32xf32, #tpu.memory_space<vmem>>, vector<1x1x32xf32>
    %107 = vector.shape_cast %106 : vector<1x1x32xf32> to vector<1x32xf32>
    %c0_51 = arith.constant 0 : index
    %c0_52 = arith.constant 0 : index
    %c0_53 = arith.constant 0 : index
    %108 = vector.load %arg15[%c0_51, %c0_52, %c0_53] : memref<2x1x32xf32, #tpu.memory_space<vmem>>, vector<1x1x32xf32>
    %109 = vector.shape_cast %108 : vector<1x1x32xf32> to vector<1x32xf32>
    %cst_54 = arith.constant dense<0.000000e+00> : vector<16xf32>
    %110 = vector.multi_reduction <add>, %105, %cst_54 [1] : vector<16x32xf32> to vector<16xf32>
    %111 = vector.shape_cast %110 : vector<16xf32> to vector<16x1xf32>
    %cst_55 = arith.constant 3.200000e+01 : f32
    %112 = vector.broadcast %cst_55 : f32 to vector<16x1xf32>
    %113 = arith.divf %111, %112 : vector<16x1xf32>
    %114 = vector.broadcast %113 : vector<16x1xf32> to vector<16x32xf32>
    %115 = arith.subf %105, %114 : vector<16x32xf32>
    %116 = arith.mulf %115, %115 : vector<16x32xf32>
    %cst_56 = arith.constant dense<0.000000e+00> : vector<16xf32>
    %117 = vector.multi_reduction <add>, %116, %cst_56 [1] : vector<16x32xf32> to vector<16xf32>
    %118 = vector.shape_cast %117 : vector<16xf32> to vector<16x1xf32>
    %cst_57 = arith.constant 3.200000e+01 : f32
    %119 = vector.broadcast %cst_57 : f32 to vector<16x1xf32>
    %120 = arith.divf %118, %119 : vector<16x1xf32>
    %121 = vector.broadcast %113 : vector<16x1xf32> to vector<16x32xf32>
    %122 = arith.subf %105, %121 : vector<16x32xf32>
    %cst_58 = arith.constant 9.99999974E-6 : f32
    %123 = vector.broadcast %cst_58 : f32 to vector<16x1xf32>
    %124 = arith.addf %120, %123 : vector<16x1xf32>
    %125 = math.rsqrt %124 : vector<16x1xf32>
    %126 = vector.broadcast %125 : vector<16x1xf32> to vector<16x32xf32>
    %127 = arith.mulf %122, %126 : vector<16x32xf32>
    %128 = vector.broadcast %107 : vector<1x32xf32> to vector<16x32xf32>
    %129 = arith.mulf %127, %128 : vector<16x32xf32>
    %130 = vector.broadcast %109 : vector<1x32xf32> to vector<16x32xf32>
    %131 = arith.addf %129, %130 : vector<16x32xf32>
    %132 = arith.truncf %131 : vector<16x32xf32> to vector<16x32xbf16>
    %c0_59 = arith.constant 0 : index
    %c0_60 = arith.constant 0 : index
    %c0_61 = arith.constant 0 : index
    %133 = vector.load %arg16[%c0_59, %c0_60, %c0_61] : memref<2x32x64xbf16, #tpu.memory_space<vmem>>, vector<1x32x64xbf16>
    %134 = vector.shape_cast %133 : vector<1x32x64xbf16> to vector<32x64xbf16>
    %cst_62 = arith.constant dense<0.000000e+00> : vector<16x64xf32>
    %135 = tpu.matmul %132, %134, %cst_62 {dimension_numbers = #tpu.dot_dimension_numbers<[1], [0], [0], [1], [0, 0, 1, 1], [], []>} : vector<16x32xbf16>, vector<32x64xbf16>, vector<16x64xf32> -> vector<16x64xf32>
    %c0_63 = arith.constant 0 : index
    %c0_64 = arith.constant 0 : index
    %c0_65 = arith.constant 0 : index
    %136 = vector.load %arg17[%c0_63, %c0_64, %c0_65] : memref<2x1x64xf32, #tpu.memory_space<vmem>>, vector<1x1x64xf32>
    %137 = vector.shape_cast %136 : vector<1x1x64xf32> to vector<1x64xf32>
    %138 = vector.broadcast %137 : vector<1x64xf32> to vector<16x64xf32>
    %139 = arith.addf %135, %138 : vector<16x64xf32>
    %cst_66 = arith.constant 0.000000e+00 : f32
    %140 = vector.broadcast %cst_66 : f32 to vector<16x64xf32>
    %141 = arith.maximumf %139, %140 : vector<16x64xf32>
    %142 = arith.truncf %141 : vector<16x64xf32> to vector<16x64xbf16>
    %c0_67 = arith.constant 0 : index
    %c0_68 = arith.constant 0 : index
    %c0_69 = arith.constant 0 : index
    %143 = vector.load %arg18[%c0_67, %c0_68, %c0_69] : memref<2x64x32xbf16, #tpu.memory_space<vmem>>, vector<1x64x32xbf16>
    %144 = vector.shape_cast %143 : vector<1x64x32xbf16> to vector<64x32xbf16>
    %cst_70 = arith.constant dense<0.000000e+00> : vector<16x32xf32>
    %145 = tpu.matmul %142, %144, %cst_70 {dimension_numbers = #tpu.dot_dimension_numbers<[1], [0], [0], [1], [0, 0, 1, 1], [], []>} : vector<16x64xbf16>, vector<64x32xbf16>, vector<16x32xf32> -> vector<16x32xf32>
    %c0_71 = arith.constant 0 : index
    %c0_72 = arith.constant 0 : index
    %c0_73 = arith.constant 0 : index
    %146 = vector.load %arg19[%c0_71, %c0_72, %c0_73] : memref<2x1x32xf32, #tpu.memory_space<vmem>>, vector<1x1x32xf32>
    %147 = vector.shape_cast %146 : vector<1x1x32xf32> to vector<1x32xf32>
    %148 = vector.broadcast %147 : vector<1x32xf32> to vector<16x32xf32>
    %149 = arith.addf %145, %148 : vector<16x32xf32>
    %150 = arith.addf %105, %149 : vector<16x32xf32>
    %c1 = arith.constant 1 : index
    %c0_74 = arith.constant 0 : index
    %c0_75 = arith.constant 0 : index
    %151 = vector.load %arg4[%c1, %c0_74, %c0_75] : memref<2x1x32xf32, #tpu.memory_space<vmem>>, vector<1x1x32xf32>
    %152 = vector.shape_cast %151 : vector<1x1x32xf32> to vector<1x32xf32>
    %c1_76 = arith.constant 1 : index
    %c0_77 = arith.constant 0 : index
    %c0_78 = arith.constant 0 : index
    %153 = vector.load %arg5[%c1_76, %c0_77, %c0_78] : memref<2x1x32xf32, #tpu.memory_space<vmem>>, vector<1x1x32xf32>
    %154 = vector.shape_cast %153 : vector<1x1x32xf32> to vector<1x32xf32>
    %cst_79 = arith.constant dense<0.000000e+00> : vector<16xf32>
    %155 = vector.multi_reduction <add>, %150, %cst_79 [1] : vector<16x32xf32> to vector<16xf32>
    %156 = vector.shape_cast %155 : vector<16xf32> to vector<16x1xf32>
    %cst_80 = arith.constant 3.200000e+01 : f32
    %157 = vector.broadcast %cst_80 : f32 to vector<16x1xf32>
    %158 = arith.divf %156, %157 : vector<16x1xf32>
    %159 = vector.broadcast %158 : vector<16x1xf32> to vector<16x32xf32>
    %160 = arith.subf %150, %159 : vector<16x32xf32>
    %161 = arith.mulf %160, %160 : vector<16x32xf32>
    %cst_81 = arith.constant dense<0.000000e+00> : vector<16xf32>
    %162 = vector.multi_reduction <add>, %161, %cst_81 [1] : vector<16x32xf32> to vector<16xf32>
    %163 = vector.shape_cast %162 : vector<16xf32> to vector<16x1xf32>
    %cst_82 = arith.constant 3.200000e+01 : f32
    %164 = vector.broadcast %cst_82 : f32 to vector<16x1xf32>
    %165 = arith.divf %163, %164 : vector<16x1xf32>
    %166 = vector.broadcast %158 : vector<16x1xf32> to vector<16x32xf32>
    %167 = arith.subf %150, %166 : vector<16x32xf32>
    %cst_83 = arith.constant 9.99999974E-6 : f32
    %168 = vector.broadcast %cst_83 : f32 to vector<16x1xf32>
    %169 = arith.addf %165, %168 : vector<16x1xf32>
    %170 = math.rsqrt %169 : vector<16x1xf32>
    %171 = vector.broadcast %170 : vector<16x1xf32> to vector<16x32xf32>
    %172 = arith.mulf %167, %171 : vector<16x32xf32>
    %173 = vector.broadcast %152 : vector<1x32xf32> to vector<16x32xf32>
    %174 = arith.mulf %172, %173 : vector<16x32xf32>
    %175 = vector.broadcast %154 : vector<1x32xf32> to vector<16x32xf32>
    %176 = arith.addf %174, %175 : vector<16x32xf32>
    %177 = arith.truncf %176 : vector<16x32xf32> to vector<16x32xbf16>
    %c1_84 = arith.constant 1 : index
    %c0_85 = arith.constant 0 : index
    %c0_86 = arith.constant 0 : index
    %178 = vector.load %arg6[%c1_84, %c0_85, %c0_86] : memref<2x32x32xbf16, #tpu.memory_space<vmem>>, vector<1x32x32xbf16>
    %179 = vector.shape_cast %178 : vector<1x32x32xbf16> to vector<32x32xbf16>
    %cst_87 = arith.constant dense<0.000000e+00> : vector<16x32xf32>
    %180 = tpu.matmul %177, %179, %cst_87 {dimension_numbers = #tpu.dot_dimension_numbers<[1], [0], [0], [1], [0, 0, 1, 1], [], []>} : vector<16x32xbf16>, vector<32x32xbf16>, vector<16x32xf32> -> vector<16x32xf32>
    %c1_88 = arith.constant 1 : index
    %c0_89 = arith.constant 0 : index
    %c0_90 = arith.constant 0 : index
    %181 = vector.load %arg7[%c1_88, %c0_89, %c0_90] : memref<2x1x32xf32, #tpu.memory_space<vmem>>, vector<1x1x32xf32>
    %182 = vector.shape_cast %181 : vector<1x1x32xf32> to vector<1x32xf32>
    %183 = vector.broadcast %182 : vector<1x32xf32> to vector<16x32xf32>
    %184 = arith.addf %180, %183 : vector<16x32xf32>
    %c1_91 = arith.constant 1 : index
    %c0_92 = arith.constant 0 : index
    %c0_93 = arith.constant 0 : index
    %185 = vector.load %arg8[%c1_91, %c0_92, %c0_93] : memref<2x32x32xbf16, #tpu.memory_space<vmem>>, vector<1x32x32xbf16>
    %186 = vector.shape_cast %185 : vector<1x32x32xbf16> to vector<32x32xbf16>
    %cst_94 = arith.constant dense<0.000000e+00> : vector<16x32xf32>
    %187 = tpu.matmul %177, %186, %cst_94 {dimension_numbers = #tpu.dot_dimension_numbers<[1], [0], [0], [1], [0, 0, 1, 1], [], []>} : vector<16x32xbf16>, vector<32x32xbf16>, vector<16x32xf32> -> vector<16x32xf32>
    %c1_95 = arith.constant 1 : index
    %c0_96 = arith.constant 0 : index
    %c0_97 = arith.constant 0 : index
    %188 = vector.load %arg9[%c1_95, %c0_96, %c0_97] : memref<2x1x32xf32, #tpu.memory_space<vmem>>, vector<1x1x32xf32>
    %189 = vector.shape_cast %188 : vector<1x1x32xf32> to vector<1x32xf32>
    %190 = vector.broadcast %189 : vector<1x32xf32> to vector<16x32xf32>
    %191 = arith.addf %187, %190 : vector<16x32xf32>
    %c1_98 = arith.constant 1 : index
    %c0_99 = arith.constant 0 : index
    %c0_100 = arith.constant 0 : index
    %192 = vector.load %arg10[%c1_98, %c0_99, %c0_100] : memref<2x32x32xbf16, #tpu.memory_space<vmem>>, vector<1x32x32xbf16>
    %193 = vector.shape_cast %192 : vector<1x32x32xbf16> to vector<32x32xbf16>
    %cst_101 = arith.constant dense<0.000000e+00> : vector<16x32xf32>
    %194 = tpu.matmul %177, %193, %cst_101 {dimension_numbers = #tpu.dot_dimension_numbers<[1], [0], [0], [1], [0, 0, 1, 1], [], []>} : vector<16x32xbf16>, vector<32x32xbf16>, vector<16x32xf32> -> vector<16x32xf32>
    %c1_102 = arith.constant 1 : index
    %c0_103 = arith.constant 0 : index
    %c0_104 = arith.constant 0 : index
    %195 = vector.load %arg11[%c1_102, %c0_103, %c0_104] : memref<2x1x32xf32, #tpu.memory_space<vmem>>, vector<1x1x32xf32>
    %196 = vector.shape_cast %195 : vector<1x1x32xf32> to vector<1x32xf32>
    %197 = vector.broadcast %196 : vector<1x32xf32> to vector<16x32xf32>
    %198 = arith.addf %194, %197 : vector<16x32xf32>
    %199 = vector.shape_cast %184 : vector<16x32xf32> to vector<2x8x32xf32>
    %200 = vector.extract_strided_slice %199 {offsets = [0, 0, 0], sizes = [2, 8, 8], strides = [1, 1, 1]} : vector<2x8x32xf32> to vector<2x8x8xf32>
    %201 = vector.extract_strided_slice %199 {offsets = [0, 0, 8], sizes = [2, 8, 8], strides = [1, 1, 1]} : vector<2x8x32xf32> to vector<2x8x8xf32>
    %202 = vector.extract_strided_slice %199 {offsets = [0, 0, 16], sizes = [2, 8, 8], strides = [1, 1, 1]} : vector<2x8x32xf32> to vector<2x8x8xf32>
    %203 = vector.extract_strided_slice %199 {offsets = [0, 0, 24], sizes = [2, 8, 8], strides = [1, 1, 1]} : vector<2x8x32xf32> to vector<2x8x8xf32>
    %204 = tpu.concatenate %200, %201, %202, %203 in 0 : vector<2x8x8xf32>, vector<2x8x8xf32>, vector<2x8x8xf32>, vector<2x8x8xf32> -> vector<8x8x8xf32>
    %205 = arith.truncf %204 : vector<8x8x8xf32> to vector<8x8x8xbf16>
    %206 = vector.shape_cast %191 : vector<16x32xf32> to vector<2x8x32xf32>
    %207 = vector.extract_strided_slice %206 {offsets = [0, 0, 0], sizes = [2, 8, 8], strides = [1, 1, 1]} : vector<2x8x32xf32> to vector<2x8x8xf32>
    %208 = vector.extract_strided_slice %206 {offsets = [0, 0, 8], sizes = [2, 8, 8], strides = [1, 1, 1]} : vector<2x8x32xf32> to vector<2x8x8xf32>
    %209 = vector.extract_strided_slice %206 {offsets = [0, 0, 16], sizes = [2, 8, 8], strides = [1, 1, 1]} : vector<2x8x32xf32> to vector<2x8x8xf32>
    %210 = vector.extract_strided_slice %206 {offsets = [0, 0, 24], sizes = [2, 8, 8], strides = [1, 1, 1]} : vector<2x8x32xf32> to vector<2x8x8xf32>
    %211 = tpu.concatenate %207, %208, %209, %210 in 0 : vector<2x8x8xf32>, vector<2x8x8xf32>, vector<2x8x8xf32>, vector<2x8x8xf32> -> vector<8x8x8xf32>
    %212 = arith.truncf %211 : vector<8x8x8xf32> to vector<8x8x8xbf16>
    %213 = vector.shape_cast %198 : vector<16x32xf32> to vector<2x8x32xf32>
    %214 = vector.extract_strided_slice %213 {offsets = [0, 0, 0], sizes = [2, 8, 8], strides = [1, 1, 1]} : vector<2x8x32xf32> to vector<2x8x8xf32>
    %215 = vector.extract_strided_slice %213 {offsets = [0, 0, 8], sizes = [2, 8, 8], strides = [1, 1, 1]} : vector<2x8x32xf32> to vector<2x8x8xf32>
    %216 = vector.extract_strided_slice %213 {offsets = [0, 0, 16], sizes = [2, 8, 8], strides = [1, 1, 1]} : vector<2x8x32xf32> to vector<2x8x8xf32>
    %217 = vector.extract_strided_slice %213 {offsets = [0, 0, 24], sizes = [2, 8, 8], strides = [1, 1, 1]} : vector<2x8x32xf32> to vector<2x8x8xf32>
    %218 = tpu.concatenate %214, %215, %216, %217 in 0 : vector<2x8x8xf32>, vector<2x8x8xf32>, vector<2x8x8xf32>, vector<2x8x8xf32> -> vector<8x8x8xf32>
    %219 = arith.truncf %218 : vector<8x8x8xf32> to vector<8x8x8xbf16>
    "tpu.trace_start"() <{level = 10 : i32, message = "bqd,bkd->bqk"}> : () -> ()
    %cst_105 = arith.constant dense<0.000000e+00> : vector<8x8x8xf32>
    %220 = tpu.matmul %205, %212, %cst_105 {dimension_numbers = #tpu.dot_dimension_numbers<[2], [2], [1], [1], [0, 0, 0, 1, 1, 1], [0], [0]>} : vector<8x8x8xbf16>, vector<8x8x8xbf16>, vector<8x8x8xf32> -> vector<8x8x8xf32>
    "tpu.trace_stop"() : () -> ()
    %cst_106 = arith.constant dense<0xFF800000> : vector<8x8xf32>
    %221 = vector.multi_reduction <maximumf>, %220, %cst_106 [2] : vector<8x8x8xf32> to vector<8x8xf32>
    %222 = vector.shape_cast %221 : vector<8x8xf32> to vector<8x8x1xf32>
    %223 = vector.broadcast %222 : vector<8x8x1xf32> to vector<8x8x8xf32>
    %224 = arith.subf %220, %223 : vector<8x8x8xf32>
    %225 = math.exp %224 : vector<8x8x8xf32>
    %cst_107 = arith.constant dense<0.000000e+00> : vector<8x8xf32>
    %226 = vector.multi_reduction <add>, %225, %cst_107 [2] : vector<8x8x8xf32> to vector<8x8xf32>
    %227 = vector.shape_cast %226 : vector<8x8xf32> to vector<8x8x1xf32>
    %228 = tpu.reciprocal %227 {approx = true} : vector<8x8x1xf32> -> vector<8x8x1xf32>
    %229 = vector.broadcast %228 : vector<8x8x1xf32> to vector<8x8x8xf32>
    %230 = arith.mulf %225, %229 : vector<8x8x8xf32>
    %231 = arith.truncf %230 : vector<8x8x8xf32> to vector<8x8x8xbf16>
    "tpu.trace_start"() <{level = 10 : i32, message = "bqk,bkd->bqd"}> : () -> ()
    %cst_108 = arith.constant dense<0.000000e+00> : vector<8x8x8xf32>
    %232 = tpu.matmul %231, %219, %cst_108 {dimension_numbers = #tpu.dot_dimension_numbers<[2], [1], [1], [2], [0, 0, 0, 1, 1, 2], [0], [0]>} : vector<8x8x8xbf16>, vector<8x8x8xbf16>, vector<8x8x8xf32> -> vector<8x8x8xf32>
    "tpu.trace_stop"() : () -> ()
    %233 = vector.extract_strided_slice %232 {offsets = [0, 0, 0], sizes = [2, 8, 8], strides = [1, 1, 1]} : vector<8x8x8xf32> to vector<2x8x8xf32>
    %234 = vector.shape_cast %233 : vector<2x8x8xf32> to vector<16x8xf32>
    %235 = vector.extract_strided_slice %232 {offsets = [2, 0, 0], sizes = [2, 8, 8], strides = [1, 1, 1]} : vector<8x8x8xf32> to vector<2x8x8xf32>
    %236 = vector.shape_cast %235 : vector<2x8x8xf32> to vector<16x8xf32>
    %237 = vector.extract_strided_slice %232 {offsets = [4, 0, 0], sizes = [2, 8, 8], strides = [1, 1, 1]} : vector<8x8x8xf32> to vector<2x8x8xf32>
    %238 = vector.shape_cast %237 : vector<2x8x8xf32> to vector<16x8xf32>
    %239 = vector.extract_strided_slice %232 {offsets = [6, 0, 0], sizes = [2, 8, 8], strides = [1, 1, 1]} : vector<8x8x8xf32> to vector<2x8x8xf32>
    %240 = vector.shape_cast %239 : vector<2x8x8xf32> to vector<16x8xf32>
    %241 = tpu.concatenate %234, %236, %238, %240 in 1 : vector<16x8xf32>, vector<16x8xf32>, vector<16x8xf32>, vector<16x8xf32> -> vector<16x32xf32>
    %242 = arith.truncf %241 : vector<16x32xf32> to vector<16x32xbf16>
    %c1_109 = arith.constant 1 : index
    %c0_110 = arith.constant 0 : index
    %c0_111 = arith.constant 0 : index
    %243 = vector.load %arg12[%c1_109, %c0_110, %c0_111] : memref<2x32x32xbf16, #tpu.memory_space<vmem>>, vector<1x32x32xbf16>
    %244 = vector.shape_cast %243 : vector<1x32x32xbf16> to vector<32x32xbf16>
    %cst_112 = arith.constant dense<0.000000e+00> : vector<16x32xf32>
    %245 = tpu.matmul %242, %244, %cst_112 {dimension_numbers = #tpu.dot_dimension_numbers<[1], [0], [0], [1], [0, 0, 1, 1], [], []>} : vector<16x32xbf16>, vector<32x32xbf16>, vector<16x32xf32> -> vector<16x32xf32>
    %c1_113 = arith.constant 1 : index
    %c0_114 = arith.constant 0 : index
    %c0_115 = arith.constant 0 : index
    %246 = vector.load %arg13[%c1_113, %c0_114, %c0_115] : memref<2x1x32xf32, #tpu.memory_space<vmem>>, vector<1x1x32xf32>
    %247 = vector.shape_cast %246 : vector<1x1x32xf32> to vector<1x32xf32>
    %248 = vector.broadcast %247 : vector<1x32xf32> to vector<16x32xf32>
    %249 = arith.addf %245, %248 : vector<16x32xf32>
    %250 = arith.addf %150, %249 : vector<16x32xf32>
    %c1_116 = arith.constant 1 : index
    %c0_117 = arith.constant 0 : index
    %c0_118 = arith.constant 0 : index
    %251 = vector.load %arg14[%c1_116, %c0_117, %c0_118] : memref<2x1x32xf32, #tpu.memory_space<vmem>>, vector<1x1x32xf32>
    %252 = vector.shape_cast %251 : vector<1x1x32xf32> to vector<1x32xf32>
    %c1_119 = arith.constant 1 : index
    %c0_120 = arith.constant 0 : index
    %c0_121 = arith.constant 0 : index
    %253 = vector.load %arg15[%c1_119, %c0_120, %c0_121] : memref<2x1x32xf32, #tpu.memory_space<vmem>>, vector<1x1x32xf32>
    %254 = vector.shape_cast %253 : vector<1x1x32xf32> to vector<1x32xf32>
    %cst_122 = arith.constant dense<0.000000e+00> : vector<16xf32>
    %255 = vector.multi_reduction <add>, %250, %cst_122 [1] : vector<16x32xf32> to vector<16xf32>
    %256 = vector.shape_cast %255 : vector<16xf32> to vector<16x1xf32>
    %cst_123 = arith.constant 3.200000e+01 : f32
    %257 = vector.broadcast %cst_123 : f32 to vector<16x1xf32>
    %258 = arith.divf %256, %257 : vector<16x1xf32>
    %259 = vector.broadcast %258 : vector<16x1xf32> to vector<16x32xf32>
    %260 = arith.subf %250, %259 : vector<16x32xf32>
    %261 = arith.mulf %260, %260 : vector<16x32xf32>
    %cst_124 = arith.constant dense<0.000000e+00> : vector<16xf32>
    %262 = vector.multi_reduction <add>, %261, %cst_124 [1] : vector<16x32xf32> to vector<16xf32>
    %263 = vector.shape_cast %262 : vector<16xf32> to vector<16x1xf32>
    %cst_125 = arith.constant 3.200000e+01 : f32
    %264 = vector.broadcast %cst_125 : f32 to vector<16x1xf32>
    %265 = arith.divf %263, %264 : vector<16x1xf32>
    %266 = vector.broadcast %258 : vector<16x1xf32> to vector<16x32xf32>
    %267 = arith.subf %250, %266 : vector<16x32xf32>
    %cst_126 = arith.constant 9.99999974E-6 : f32
    %268 = vector.broadcast %cst_126 : f32 to vector<16x1xf32>
    %269 = arith.addf %265, %268 : vector<16x1xf32>
    %270 = math.rsqrt %269 : vector<16x1xf32>
    %271 = vector.broadcast %270 : vector<16x1xf32> to vector<16x32xf32>
    %272 = arith.mulf %267, %271 : vector<16x32xf32>
    %273 = vector.broadcast %252 : vector<1x32xf32> to vector<16x32xf32>
    %274 = arith.mulf %272, %273 : vector<16x32xf32>
    %275 = vector.broadcast %254 : vector<1x32xf32> to vector<16x32xf32>
    %276 = arith.addf %274, %275 : vector<16x32xf32>
    %277 = arith.truncf %276 : vector<16x32xf32> to vector<16x32xbf16>
    %c1_127 = arith.constant 1 : index
    %c0_128 = arith.constant 0 : index
    %c0_129 = arith.constant 0 : index
    %278 = vector.load %arg16[%c1_127, %c0_128, %c0_129] : memref<2x32x64xbf16, #tpu.memory_space<vmem>>, vector<1x32x64xbf16>
    %279 = vector.shape_cast %278 : vector<1x32x64xbf16> to vector<32x64xbf16>
    %cst_130 = arith.constant dense<0.000000e+00> : vector<16x64xf32>
    %280 = tpu.matmul %277, %279, %cst_130 {dimension_numbers = #tpu.dot_dimension_numbers<[1], [0], [0], [1], [0, 0, 1, 1], [], []>} : vector<16x32xbf16>, vector<32x64xbf16>, vector<16x64xf32> -> vector<16x64xf32>
    %c1_131 = arith.constant 1 : index
    %c0_132 = arith.constant 0 : index
    %c0_133 = arith.constant 0 : index
    %281 = vector.load %arg17[%c1_131, %c0_132, %c0_133] : memref<2x1x64xf32, #tpu.memory_space<vmem>>, vector<1x1x64xf32>
    %282 = vector.shape_cast %281 : vector<1x1x64xf32> to vector<1x64xf32>
    %283 = vector.broadcast %282 : vector<1x64xf32> to vector<16x64xf32>
    %284 = arith.addf %280, %283 : vector<16x64xf32>
    %cst_134 = arith.constant 0.000000e+00 : f32
    %285 = vector.broadcast %cst_134 : f32 to vector<16x64xf32>
    %286 = arith.maximumf %284, %285 : vector<16x64xf32>
    %287 = arith.truncf %286 : vector<16x64xf32> to vector<16x64xbf16>
    %c1_135 = arith.constant 1 : index
    %c0_136 = arith.constant 0 : index
    %c0_137 = arith.constant 0 : index
    %288 = vector.load %arg18[%c1_135, %c0_136, %c0_137] : memref<2x64x32xbf16, #tpu.memory_space<vmem>>, vector<1x64x32xbf16>
    %289 = vector.shape_cast %288 : vector<1x64x32xbf16> to vector<64x32xbf16>
    %cst_138 = arith.constant dense<0.000000e+00> : vector<16x32xf32>
    %290 = tpu.matmul %287, %289, %cst_138 {dimension_numbers = #tpu.dot_dimension_numbers<[1], [0], [0], [1], [0, 0, 1, 1], [], []>} : vector<16x64xbf16>, vector<64x32xbf16>, vector<16x32xf32> -> vector<16x32xf32>
    %c1_139 = arith.constant 1 : index
    %c0_140 = arith.constant 0 : index
    %c0_141 = arith.constant 0 : index
    %291 = vector.load %arg19[%c1_139, %c0_140, %c0_141] : memref<2x1x32xf32, #tpu.memory_space<vmem>>, vector<1x1x32xf32>
    %292 = vector.shape_cast %291 : vector<1x1x32xf32> to vector<1x32xf32>
    %293 = vector.broadcast %292 : vector<1x32xf32> to vector<16x32xf32>
    %294 = arith.addf %290, %293 : vector<16x32xf32>
    %295 = arith.addf %250, %294 : vector<16x32xf32>
    %cst_142 = arith.constant dense<0.000000e+00> : vector<32xf32>
    %296 = vector.multi_reduction <add>, %295, %cst_142 [0] : vector<16x32xf32> to vector<32xf32>
    %297 = vector.shape_cast %296 : vector<32xf32> to vector<1x32xf32>
    %c0_143 = arith.constant 0 : index
    %c0_144 = arith.constant 0 : index
    %c0_145 = arith.constant 0 : index
    %298 = vector.load %arg20[%c0_143, %c0_144, %c0_145] : memref<1x1x32xf32, #tpu.memory_space<vmem>>, vector<1x1x32xf32>
    %299 = vector.shape_cast %298 : vector<1x1x32xf32> to vector<1x32xf32>
    %300 = vector.shape_cast %297 : vector<1x32xf32> to vector<1x1x32xf32>
    tpu.vector_store %arg20[%c0_143, %c0_144, %c0_145], %300 {strides = array<i32>} : memref<1x1x32xf32, #tpu.memory_space<vmem>>, vector<1x1x32xf32>,
    return
  }
  func.func @transform_0(%arg0: i32) -> (i32, i32) {
    %c0_i32 = arith.constant 0 : i32
    %c0_i32_0 = arith.constant 0 : i32
    return %arg0, %c0_i32 : i32, i32
  }
  func.func @transform_1(%arg0: i32) -> (i32, i32) {
    %c1_i32 = arith.constant 1 : i32
    %c0_i32 = arith.constant 0 : i32
    %0 = arith.cmpi eq, %c1_i32, %c0_i32 : i32
    %c1_i32_0 = arith.constant 1 : i32
    %1 = arith.select %0, %c1_i32_0, %c1_i32 : i32
    %2 = arith.remsi %arg0, %1 : i32
    %c0_i32_1 = arith.constant 0 : i32
    %3 = arith.cmpi ne, %2, %c0_i32_1 : i32
    %c0_i32_2 = arith.constant 0 : i32
    %4 = arith.cmpi slt, %2, %c0_i32_2 : i32
    %c0_i32_3 = arith.constant 0 : i32
    %5 = arith.cmpi slt, %1, %c0_i32_3 : i32
    %6 = arith.xori %4, %5 : i1
    %7 = arith.andi %6, %3 : i1
    %8 = arith.addi %2, %1 : i32
    %9 = arith.select %7, %8, %2 : i32
    %c0_i32_4 = arith.constant 0 : i32
    %c0_i32_5 = arith.constant 0 : i32
    return %9, %c0_i32_4 : i32, i32
  }
  func.func @transform_2(%arg0: i32) -> (i32, i32) {
    %c0_i32 = arith.constant 0 : i32
    %c0_i32_0 = arith.constant 0 : i32
    %c0_i32_1 = arith.constant 0 : i32
    return %c0_i32, %c0_i32_0 : i32, i32
  }
  func.func @transform_3(%arg0: i32) -> (i32, i32, i32) {
    %c0_i32 = arith.constant 0 : i32
    %c0_i32_0 = arith.constant 0 : i32
    %c0_i32_1 = arith.constant 0 : i32
    %c0_i32_2 = arith.constant 0 : i32
    return %c0_i32, %c0_i32_0, %c0_i32_1 : i32, i32, i32
  }
  func.func @transform_4(%arg0: i32) -> (i32, i32, i32) {
    %c0_i32 = arith.constant 0 : i32
    %c0_i32_0 = arith.constant 0 : i32
    %c0_i32_1 = arith.constant 0 : i32
    %c0_i32_2 = arith.constant 0 : i32
    return %c0_i32, %c0_i32_0, %c0_i32_1 : i32, i32, i32
  }
  func.func @transform_5(%arg0: i32) -> (i32, i32, i32) {
    %c0_i32 = arith.constant 0 : i32
    %c0_i32_0 = arith.constant 0 : i32
    %c0_i32_1 = arith.constant 0 : i32
    %c0_i32_2 = arith.constant 0 : i32
    return %c0_i32, %c0_i32_0, %c0_i32_1 : i32, i32, i32
  }
  func.func @transform_6(%arg0: i32) -> (i32, i32, i32) {
    %c0_i32 = arith.constant 0 : i32
    %c0_i32_0 = arith.constant 0 : i32
    %c0_i32_1 = arith.constant 0 : i32
    %c0_i32_2 = arith.constant 0 : i32
    return %c0_i32, %c0_i32_0, %c0_i32_1 : i32, i32, i32
  }
  func.func @transform_7(%arg0: i32) -> (i32, i32, i32) {
    %c0_i32 = arith.constant 0 : i32
    %c0_i32_0 = arith.constant 0 : i32
    %c0_i32_1 = arith.constant 0 : i32
    %c0_i32_2 = arith.constant 0 : i32
    return %c0_i32, %c0_i32_0, %c0_i32_1 : i32, i32, i32
  }
  func.func @transform_8(%arg0: i32) -> (i32, i32, i32) {
    %c0_i32 = arith.constant 0 : i32
    %c0_i32_0 = arith.constant 0 : i32
    %c0_i32_1 = arith.constant 0 : i32
    %c0_i32_2 = arith.constant 0 : i32
    return %c0_i32, %c0_i32_0, %c0_i32_1 : i32, i32, i32
  }
  func.func @transform_9(%arg0: i32) -> (i32, i32, i32) {
    %c0_i32 = arith.constant 0 : i32
    %c0_i32_0 = arith.constant 0 : i32
    %c0_i32_1 = arith.constant 0 : i32
    %c0_i32_2 = arith.constant 0 : i32
    return %c0_i32, %c0_i32_0, %c0_i32_1 : i32, i32, i32
  }
  func.func @transform_10(%arg0: i32) -> (i32, i32, i32) {
    %c0_i32 = arith.constant 0 : i32
    %c0_i32_0 = arith.constant 0 : i32
    %c0_i32_1 = arith.constant 0 : i32
    %c0_i32_2 = arith.constant 0 : i32
    return %c0_i32, %c0_i32_0, %c0_i32_1 : i32, i32, i32
  }
  func.func @transform_11(%arg0: i32) -> (i32, i32, i32) {
    %c0_i32 = arith.constant 0 : i32
    %c0_i32_0 = arith.constant 0 : i32
    %c0_i32_1 = arith.constant 0 : i32
    %c0_i32_2 = arith.constant 0 : i32
    return %c0_i32, %c0_i32_0, %c0_i32_1 : i32, i32, i32
  }
  func.func @transform_12(%arg0: i32) -> (i32, i32, i32) {
    %c0_i32 = arith.constant 0 : i32
    %c0_i32_0 = arith.constant 0 : i32
    %c0_i32_1 = arith.constant 0 : i32
    %c0_i32_2 = arith.constant 0 : i32
    return %c0_i32, %c0_i32_0, %c0_i32_1 : i32, i32, i32
  }
  func.func @transform_13(%arg0: i32) -> (i32, i32, i32) {
    %c0_i32 = arith.constant 0 : i32
    %c0_i32_0 = arith.constant 0 : i32
    %c0_i32_1 = arith.constant 0 : i32
    %c0_i32_2 = arith.constant 0 : i32
    return %c0_i32, %c0_i32_0, %c0_i32_1 : i32, i32, i32
  }
  func.func @transform_14(%arg0: i32) -> (i32, i32, i32) {
    %c0_i32 = arith.constant 0 : i32
    %c0_i32_0 = arith.constant 0 : i32
    %c0_i32_1 = arith.constant 0 : i32
    %c0_i32_2 = arith.constant 0 : i32
    return %c0_i32, %c0_i32_0, %c0_i32_1 : i32, i32, i32
  }
  func.func @transform_15(%arg0: i32) -> (i32, i32, i32) {
    %c0_i32 = arith.constant 0 : i32
    %c0_i32_0 = arith.constant 0 : i32
    %c0_i32_1 = arith.constant 0 : i32
    %c0_i32_2 = arith.constant 0 : i32
    return %c0_i32, %c0_i32_0, %c0_i32_1 : i32, i32, i32
  }
  func.func @transform_16(%arg0: i32) -> (i32, i32, i32) {
    %c0_i32 = arith.constant 0 : i32
    %c0_i32_0 = arith.constant 0 : i32
    %c0_i32_1 = arith.constant 0 : i32
    %c0_i32_2 = arith.constant 0 : i32
    return %c0_i32, %c0_i32_0, %c0_i32_1 : i32, i32, i32
  }
  func.func @transform_17(%arg0: i32) -> (i32, i32, i32) {
    %c0_i32 = arith.constant 0 : i32
    %c0_i32_0 = arith.constant 0 : i32
    %c0_i32_1 = arith.constant 0 : i32
    %c0_i32_2 = arith.constant 0 : i32
    return %c0_i32, %c0_i32_0, %c0_i32_1 : i32, i32, i32
  }
  func.func @transform_18(%arg0: i32) -> (i32, i32, i32) {
    %c0_i32 = arith.constant 0 : i32
    %c0_i32_0 = arith.constant 0 : i32
    %c0_i32_1 = arith.constant 0 : i32
    %c0_i32_2 = arith.constant 0 : i32
    return %c0_i32, %c0_i32_0, %c0_i32_1 : i32, i32, i32
  }
  func.func @transform_19(%arg0: i32) -> (i32, i32, i32) {
    %c0_i32 = arith.constant 0 : i32
    %c0_i32_0 = arith.constant 0 : i32
    %c0_i32_1 = arith.constant 0 : i32
    return %arg0, %c0_i32, %c0_i32_0 : i32, i32, i32
  }
}

</mosaic_0001>

<bundles_post_ra>
// kernel: tpu_custom_call.1
= control target key start
LH: loop header
LB: loop body
LE: loop exit
PB: predicated region body
PF: predicated region fallthrough
CT: control target
= control target key end

     0   :  { %s5890_s0 = inlined_call_operand.vmem [shape: f32[32,4], index: 0, kind: input, shape index: {}]   ;;  %s5891_s1 = inlined_call_operand.hbm [shape: f32[16,32], index: 1, kind: input, shape index: {}]   ;;  %s5892_s2 = inlined_call_operand.vmem [shape: bf16[4,32], index: 2, kind: input, shape index: {}]   ;;  %s5893_s3 = inlined_call_operand.hbm [shape: f32[2,1,32], index: 3, kind: input, shape index: {}]   ;;  %s5894_s4 = inlined_call_operand.hbm [shape: f32[2,1,32], index: 4, kind: input, shape index: {}]   ;;  %s5895_s5 = inlined_call_operand.vmem [shape: bf16[2,32,32], index: 5, kind: input, shape index: {}]   ;;  %s5896_s6 = inlined_call_operand.hbm [shape: f32[2,1,32], index: 6, kind: input, shape index: {}]   ;;  %s5897_s7 = inlined_call_operand.vmem [shape: bf16[2,32,32], index: 7, kind: input, shape index: {}]   ;;  %s5898_s8 = inlined_call_operand.hbm [shape: f32[2,1,32], index: 8, kind: input, shape index: {}]   ;;  %s5899_s9 = inlined_call_operand.vmem [shape: bf16[2,32,32], index: 9, kind: input, shape index: {}]   ;;  %s5900_s10 = inlined_call_operand.vmem [shape: f32[2,1,32], index: 10, kind: input, shape index: {}]   ;;  %s5901_s11 = inlined_call_operand.vmem [shape: bf16[2,32,32], index: 11, kind: input, shape index: {}]   ;;  %s5902_s12 = inlined_call_operand.vmem [shape: f32[2,1,32], index: 12, kind: input, shape index: {}]   ;;  %s5903_s13 = inlined_call_operand.vmem [shape: f32[2,1,32], index: 13, kind: input, shape index: {}]   ;;  %s5904_s14 = inlined_call_operand.vmem [shape: f32[2,1,32], index: 14, kind: input, shape index: {}]   ;;  %s5905_s15 = inlined_call_operand.hbm [shape: bf16[2,32,64], index: 15, kind: input, shape index: {}]   ;;  %s5906_s16 = inlined_call_operand.vmem [shape: f32[2,1,64], index: 16, kind: input, shape index: {}]   ;;  %s5907_s17 = inlined_call_operand.vmem [shape: bf16[2,64,32], index: 17, kind: input, shape index: {}]   ;;  %s5908_s18 = inlined_call_operand.vmem [shape: f32[2,1,32], index: 18, kind: input, shape index: {}]   ;;  %s5909_s19 = inlined_call_operand.hbm [shape: f32[2,1,32], index: 19, kind: output, shape index: {}]  }
   0x1   :  { %5934 = sst [smem:[#allocation27_spill]] %s5890_s0 }
   0x2   :  { %5935 = sst [smem:[#allocation28_spill]] %s5891_s1 }
   0x3   :  { %5936 = sst [smem:[#allocation29_spill]] %s5892_s2 }
   0x4   :  { %5937 = sst [smem:[#allocation30_spill]] %s5893_s3 }
   0x5   :  { %5938 = sst [smem:[#allocation31_spill]] %s5896_s6 }
   0x6   :  { %5939 = sst [smem:[#allocation32_spill]] %s5903_s13 }
   0x7   :  { %5940 = sst [smem:[#allocation33_spill]] %s5904_s14 }
   0x8   :  { %5941 = sst [smem:[#allocation34_spill]] %s5906_s16 }
   0x9   :  { %5942 = sst [smem:[#allocation35_spill]] %s5908_s18 }
   0xa   :  { %5943 = sst [smem:[#allocation36_spill]] %s5909_s19 }
   0xb   :  { %24 = vsyncpa [#allocation3], 0 }
   0xc   :  { %25 = vsyncpa [#allocation6], 0 }
   0xd   :  { %26 = vsyncpa [#allocation9], 0 }
   0xe   :  { %27 = vsyncpa [#allocation12], 0 }
   0xf   :  { %28 = vsyncpa [#allocation4], 0 }
  0x10   :  { %30 = vsyncpa [#allocation4 + $0x1], 0  ;;  %s5083_s0 = smov 0   ;;  %s5085_s30 = smov 0  }
  0x11   :  { %s5087_s20 = smov 0   ;;  %s5089_s21 = smov 0  }
  0x12 LB: > { %5944 = sst [smem:[#allocation19_spill]] %s4948_s0  ;;  %s5104_s1 = sadd.s32 4294967295, %s4960_s21   ;;  %s4960_s21 = sphi %s5089_s21, %s5985_s21   ;;  %s4956_s20 = sphi %s5087_s20, %s5988_s20   ;;  %s4952_s30 = sphi %s5085_s30, %s5987_s30   ;;  %s4948_s0 = sphi %s5083_s0, %s5986_s0  }
  0x13   : > { %5945 = sst [smem:[#allocation20_spill]] %s4952_s30  ;;  %s3820_s22 = sadd.s32 4294967294, %s4960_s21  }
  0x14   : > { %5946 = sst [smem:[#allocation21_spill]] %s4956_s20  ;;  %s5108_s2 = sadd.s32 1, %s4960_s21  }
  0x15   : > { %5947 = sst [smem:[#allocation22_spill]] %s4960_s21  ;;  %s447_s23 = sadd.s32 1, %s4956_s20 }
  0x16   : > { %5948 = sst [smem:[#allocation23_spill]] %s5108_s2  ;;  %s444_s24 = ssub.s32 %s4960_s21, %s5108_s2 }
  0x17   : > { %p457_p0 = scmp.ne.s32.totalorder %s4956_s20, %s4952_s30  ;;  %p445_p1 = scmp.eq.s32.totalorder %s444_s24, 0 }
  0x18   : > { %p458_p2 = scmp.eq.s32.totalorder %s5104_s1, 1  ;;  %p463_p3 = scmp.ne.s32.totalorder %s4952_s30, %s4948_s0 }
  0x19   : > { %p464_p4 = scmp.eq.s32.totalorder %s3820_s22, 1  ;;  %p3821_p7 = scmp.ge.s32.totalorder %s4960_s21, 1 }
  0x1a   : > { %s5119_s25 = scalar_select %p445_p1, %s4956_s20, %s447_s23  }
  0x1b   : > { %p5121_p5 = por %p458_p2, %p457_p0  ;;  %p5125_p6 = por %p464_p4, %p463_p3 }
  0x1c   : > { %5949 = sst [smem:[#allocation24_spill]] %s5119_s25  ;;  %p471_p8 = scmp.lt.s32.totalorder %s4960_s21, 3 }
  0x1d   : > { %s5950_s3 = scalar_select %p5121_p5, 1, 0 }
  0x1e   : > { %s5952_s26 = scalar_select %p5125_p6, 1, 0 }
  0x1f   : > { %5951 = sst [smem:[#allocation25_spill]] %s5950_s3  ;;  %p5921_p9 = scmp.eq.s32.totalorder %s5104_s1, 0 }
  0x20   : > { %5953 = sst [smem:[#allocation26_spill]] %s5952_s26  ;;  %p5132_p10 = pnand %p3821_p7, %p471_p8 }
  0x21   : > { %s4962_s28 = smov [#allocation5]   ;;  %s4963_s23 = smov [#allocation8]  }
  0x22   : > { %s5954_s27 = scalar_select %p5132_p10, 1, 0 }
  0x23   : > { %s499_s29 = sshll.u32 %s4962_s28, 4  ;;  %p4398_p11 = pneg %p5132_p10  ;;  %s5138_s29 = int_to_ptr.vmem [resolvable:$true] %s499_s29 }
  0x24   : > { %s528_s24 = sshll.u32 %s4963_s23, 4  ;;  %s4964_s25 = smov [#allocation2]   ;;  %s5146_s24 = int_to_ptr.vmem [resolvable:$true] %s528_s24 }
  0x25   : > { %p5142_p12 = pnand %p5921_p9, %p4398_p11  ;;  %s5148_s20 = sshll.u32 %s4964_s25, 4  ;;  %s484_s20 = int_to_ptr.vmem [resolvable:$true] %s5148_s20 }
  0x26   : > { %s5956_s28 = sld [smem:[#allocation30_spill]] }
  0x27   : > { %p5158_p0 = pneg %p5142_p12 }
  0x2c   : > { %s4714_s0 = scalar_lea.hbm %s5956_s28, 32 }
  0x2d   : > { %p4715_p13 = scmp.ne.s32.totalorder %s5956_s28, %s4714_s0  ;;  %p4721_p3 = scmp.lt.u32.totalorder %s4714_s0, %s5956_s28 }
  0x2f   : > { %p4717_p1 = pnand %p5158_p0, %p4715_p13 }
  0x31   : > { %p4718_p2 = pneg %p4717_p1 }
  0x33   : > { %p4723_p4 = pnand %p4721_p3, %p4718_p2 }
  0x35   : > { %4726 = shalt.err (!%p4723_p4)
}
  0x36   : > { %s4727_s19 = scalar_lea.vmem %s5138_s29, 32  ;;  %p4735_p9 = scmp.lt.s32.totalorder %s5138_s29, %s5138_s29 }
  0x37   : > { %p4728_p7 = scmp.ne.s32.totalorder %s5138_s29, %s4727_s19  ;;  %p4736_p6 = scmp.lt.s32.totalorder %s4727_s19, %s4727_s19 }
  0x39   : > { %p4730_p8 = pnand %p4728_p7, %p5158_p0  ;;  %p4737_p13 = por %p4736_p6, %p4735_p9 }
  0x3b   : > { %p4731_p11 = pneg %p4730_p8 }
  0x3d   : > { %p4738_p1 = pnand %p4737_p13, %p4731_p11 }
  0x3f   : > { %4741 = shalt.err (!%p4738_p1)
}
  0x40   : > { %s5928_s21 = smov 16   ;;  %s5930_s0 = smov 1  }
  0x41   : > { %4404 = dma.hbm_to_vmem [thread:$0]  (!%p5142_p12), %s5956_s28, 32, %s5138_s29, [#allocation6], %s5928_s21, %s5928_s21, %s5930_s0  }
  0x42   : > { %s5958_s6 = sld [smem:[#allocation31_spill]] }
  0x48   : > { %s4742_s19 = scalar_lea.hbm %s5958_s6, 32 }
  0x49   : > { %p4743_p6 = scmp.ne.s32.totalorder %s5958_s6, %s4742_s19  ;;  %p4749_p3 = scmp.lt.u32.totalorder %s4742_s19, %s5958_s6 }
  0x4b   : > { %p4745_p9 = pnand %p4743_p6, %p5158_p0 }
  0x4d   : > { %p4746_p2 = pneg %p4745_p9 }
  0x4f   : > { %p4751_p4 = pnand %p4749_p3, %p4746_p2 }
  0x51   : > { %4754 = shalt.err (!%p4751_p4)
}
  0x52   : > { %s4755_s29 = scalar_lea.vmem %s5146_s24, 32  ;;  %p4763_p13 = scmp.lt.s32.totalorder %s5146_s24, %s5146_s24 }
  0x53   : > { %p4756_p7 = scmp.ne.s32.totalorder %s5146_s24, %s4755_s29  ;;  %p4764_p1 = scmp.lt.s32.totalorder %s4755_s29, %s4755_s29 }
  0x55   : > { %p4758_p8 = pnand %p4756_p7, %p5158_p0  ;;  %p4765_p6 = por %p4764_p1, %p4763_p13 }
  0x57   : > { %p4759_p11 = pneg %p4758_p8 }
  0x59   : > { %p4766_p9 = pnand %p4765_p6, %p4759_p11 }
  0x5b   : > { %4769 = shalt.err (!%p4766_p9)
}
  0x5c   : > { %4410 = dma.hbm_to_vmem [thread:$0]  (!%p5142_p12), %s5958_s6, 32, %s5146_s24, [#allocation9], %s5928_s21, %s5928_s21, %s5930_s0  }
  0x5d   : > { %s5959_s2 = sld [smem:[#allocation28_spill]] }
  0x63   : > { %s4770_s26 = scalar_lea.hbm %s5959_s2, 256 }
  0x64   : > { %p4771_p2 = scmp.ne.s32.totalorder %s5959_s2, %s4770_s26  ;;  %p4777_p7 = scmp.lt.u32.totalorder %s4770_s26, %s5959_s2 }
  0x66   : > { %p4773_p3 = pnand %p4771_p2, %p5158_p0 }
  0x68   : > { %p4774_p4 = pneg %p4773_p3 }
  0x6a   : > { %p4779_p8 = pnand %p4777_p7, %p4774_p4 }
  0x6c   : > { %4782 = shalt.err (!%p4779_p8)
}
  0x6d   : > { %s4783_s14 = scalar_lea.vmem %s484_s20, 256  ;;  %p4791_p6 = scmp.lt.s32.totalorder %s484_s20, %s484_s20 }
  0x6e   : > { %p4784_p11 = scmp.ne.s32.totalorder %s484_s20, %s4783_s14  ;;  %p4792_p9 = scmp.lt.s32.totalorder %s4783_s14, %s4783_s14 }
  0x70   : > { %p4786_p13 = pnand %p4784_p11, %p5158_p0  ;;  %p4793_p5 = por %p4792_p9, %p4791_p6 }
  0x72   : > { %p4787_p1 = pneg %p4786_p13 }
  0x74   : > { %p4794_p10 = pnand %p4793_p5, %p4787_p1 }
  0x76   : > { %4797 = shalt.err (!%p4794_p10)
}
  0x77   : > { %s4967_s24 = smov 128   ;;  %s4968_s16 = smov 8  }
  0x78   : > { %4401 = dma.hbm_to_vmem [thread:$0]  (!%p5142_p12), %s5959_s2, 256, %s484_s20, [#allocation3], %s4967_s24, %s4967_s24, %s4968_s16  }
  0x79   : > { %s4969_s26 = smov [#allocation7]   ;;  %s4970_s25 = smov [#allocation10]  }
  0x7a   : > { %s512_s23 = sshll.u32 %s4969_s26, 4  ;;  %s544_s19 = sshll.u32 %s4970_s25, 4  ;;  %s513_s23 = int_to_ptr.vmem [resolvable:$true] %s512_s23  ;;  %s545_s19 = int_to_ptr.vmem [resolvable:$true] %s544_s19 }
  0x7b   : > { %s4798_s14 = scalar_lea.hbm %s5894_s4, 32 }
  0x7c   : > { %p4799_p5 = scmp.ne.s32.totalorder %s5894_s4, %s4798_s14  ;;  %p4805_p3 = scmp.lt.u32.totalorder %s4798_s14, %s5894_s4 }
  0x7e   : > { %p4801_p10 = pnand %p4799_p5, %p5158_p0 }
  0x80   : > { %p4802_p2 = pneg %p4801_p10 }
  0x82   : > { %p4807_p4 = pnand %p4805_p3, %p4802_p2 }
  0x84   : > { %4810 = shalt.err (!%p4807_p4)
}
  0x85   : > { %s4811_s20 = scalar_lea.vmem %s513_s23, 32  ;;  %p4819_p13 = scmp.lt.s32.totalorder %s513_s23, %s513_s23 }
  0x86   : > { %p4812_p7 = scmp.ne.s32.totalorder %s513_s23, %s4811_s20  ;;  %p4820_p1 = scmp.lt.s32.totalorder %s4811_s20, %s4811_s20 }
  0x88   : > { %p4814_p8 = pnand %p4812_p7, %p5158_p0  ;;  %p4821_p6 = por %p4820_p1, %p4819_p13 }
  0x8a   : > { %p4815_p11 = pneg %p4814_p8 }
  0x8c   : > { %p4822_p9 = pnand %p4821_p6, %p4815_p11 }
  0x8e   : > { %4825 = shalt.err (!%p4822_p9)
}
  0x8f   : > { %s5960_s6 = smov 1   ;;  %s5961_s21 = smov 16  }
  0x90   : > { %4407 = dma.hbm_to_vmem [thread:$0]  (!%p5142_p12), %s5894_s4, 32, %s513_s23, [#allocation6], %s5961_s21, %s5961_s21, %s5960_s6  }
  0x91   : > { %s4826_s16 = scalar_lea.hbm %s5898_s8, 32 }
  0x92   : > { %p4827_p5 = scmp.ne.s32.totalorder %s5898_s8, %s4826_s16  ;;  %p4833_p3 = scmp.lt.u32.totalorder %s4826_s16, %s5898_s8 }
  0x94   : > { %p4829_p10 = pnand %p4827_p5, %p5158_p0 }
  0x96   : > { %p4830_p2 = pneg %p4829_p10 }
  0x98   : > { %p4835_p4 = pnand %p4833_p3, %p4830_p2 }
  0x9a   : > { %4838 = shalt.err (!%p4835_p4)
}
  0x9b   : > { %s4839_s29 = scalar_lea.vmem %s545_s19, 32  ;;  %p4847_p13 = scmp.lt.s32.totalorder %s545_s19, %s545_s19 }
  0x9c   : > { %p4840_p7 = scmp.ne.s32.totalorder %s545_s19, %s4839_s29  ;;  %p4848_p1 = scmp.lt.s32.totalorder %s4839_s29, %s4839_s29 }
  0x9e   : > { %p4842_p8 = pnand %p4840_p7, %p5158_p0  ;;  %p4849_p6 = por %p4848_p1, %p4847_p13 }
  0xa0   : > { %p4843_p11 = pneg %p4842_p8 }
  0xa2   : > { %p4850_p9 = pnand %p4849_p6, %p4843_p11 }
  0xa4   : > { %4853 = shalt.err (!%p4850_p9)
}
  0xa5   : > { %4413 = dma.hbm_to_vmem [thread:$0]  (!%p5142_p12), %s5898_s8, 32, %s545_s19, [#allocation9], %s5961_s21, %s5961_s21, %s5960_s6  }
  0xa6   : > { %s4971_s20 = smov [#allocation11]   ;;  %s4854_s24 = scalar_lea.hbm %s5905_s15, 512 }
  0xa7   : > { %s575_s13 = sshll.u32 %s4971_s20, 4  ;;  %p4855_p5 = scmp.ne.s32.totalorder %s5905_s15, %s4854_s24  ;;  %s576_s13 = int_to_ptr.vmem [resolvable:$true] %s575_s13 }
  0xa8   : > { %p4861_p3 = scmp.lt.u32.totalorder %s4854_s24, %s5905_s15 }
  0xa9   : > { %p4857_p10 = pnand %p4855_p5, %p5158_p0 }
  0xab   : > { %p4858_p2 = pneg %p4857_p10 }
  0xad   : > { %p4863_p4 = pnand %p4861_p3, %p4858_p2 }
  0xaf   : > { %4866 = shalt.err (!%p4863_p4)
}
  0xb0   : > { %s4867_s19 = scalar_lea.vmem %s576_s13, 512  ;;  %p4875_p13 = scmp.lt.s32.totalorder %s576_s13, %s576_s13 }
  0xb1   : > { %p4868_p7 = scmp.ne.s32.totalorder %s576_s13, %s4867_s19  ;;  %p4876_p1 = scmp.lt.s32.totalorder %s4867_s19, %s4867_s19 }
  0xb3   : > { %p4870_p8 = pnand %p4868_p7, %p5158_p0  ;;  %p4877_p6 = por %p4876_p1, %p4875_p13 }
  0xb5   : > { %p4871_p11 = pneg %p4870_p8 }
  0xb7   : > { %p4878_p9 = pnand %p4877_p6, %p4871_p11 }
  0xb9   : > { %4881 = shalt.err (!%p4878_p9)
}
  0xba   : > { %s4972_s6 = smov 64   ;;  %s4973_s21 = smov 4  }
  0xbb   : > { %4416 = dma.hbm_to_vmem [thread:$0]  (!%p5142_p12), %s5905_s15, 512, %s576_s13, [#allocation12], %s4972_s6, %s4972_s6, %s4973_s21  }
  0xbc   : > { %p5962_p5 = scmp.ne.s32.totalorder %s5954_s27, 0 }
  0xbd   : > { %p5963_p10 = scmp.eq.s32.totalorder (!%p5962_p5), %s5104_s1, 0 }
  0xbe   : > { %609 = sbr.rel (%p5962_p5) target bundleno = 5598 (0x15de), region = 96 }
  0xc5   : > { %4927 = dma.done.wait (%p5963_p10), [#allocation3], 256   ;;  %p5964_p0 = pmov %p5963_p10 }
  0xc7   : > { %4929 = vsyncadd (%p5964_p0), [#allocation3], 4294967040  ;;  %p5965_p2 = pmov %p5964_p0 }
  0xc8   : > { %p5966_p3 = pmov %p5964_p0 }
  0xc9   : > { %4931 = dma.done.wait (%p5965_p2), [#allocation6], 64  }
  0xca   : > { %4933 = vsyncadd (%p5966_p3), [#allocation6], 4294967232  ;;  %p5967_p4 = pmov %p5964_p0 }
  0xcb   : > { %p5968_p12 = pmov %p5964_p0 }
  0xcc   : > { %4935 = dma.done.wait (%p5967_p4), [#allocation9], 64  }
  0xcd   : > { %4937 = vsyncadd (%p5968_p12), [#allocation9], 4294967232  ;;  %p5969_p7 = pmov %p5964_p0 }
  0xce   : > { %p5970_p8 = pmov %p5964_p0 }
  0xcf   : > { %4939 = dma.done.wait (%p5969_p7), [#allocation12], 512  }
  0xd0   : > { %4941 = vsyncadd (%p5970_p8), [#allocation12], 4294966784  ;;  %s3836_s3 = sshll.u32 %s5104_s1, 1  ;;  %v4974_v0 = vmov 0.0   ;;  %vm4975_vm0 = vmmov 0   ;;  %vm701_vm1 = vcmask 1041408  }
  0xd1   : > { %4070 = vmatprep.subr.bf16.mxu0 %v4974_v0  ;;  %4072 = vmatprep.mubr.msk.bf16.mxu0 %vm4975_vm0, %v4974_v0  ;;  %p685_p11 = scmp.lt.s32.totalorder %s3836_s3, 3  ;;  %s5971_s14 = sld [smem:[#allocation27_spill]]  ;;  %vm697_vm2 = vcmask 31744   ;;  %v695_v6 = vld [vmem:[#allocation2] sm:$0xff]  ;;  %v696_v8 = vld [vmem:[#allocation2 + $0x8] sm:$0xff]  ;;  %vm748_vm3 = vcmask 261120  }
  0xd2   : > { %4092 = vmatprep.subr.bf16.mxu1 %v4974_v0  ;;  %4096 = vmatprep.mubr.msk.bf16.mxu1 %vm4975_vm0, %v4974_v0  ;;  %s5972_s0 = sld [smem:[#allocation29_spill]]  ;;  %v4606_v26 = vld [vmem:[%s5895_s5] sm:$0xff]   ;;  %v4608_v28 = vld [vmem:[%s5895_s5 + $0x8] sm:$0xff]   ;;  %v3839_v38 = vld [vmem:[#allocation5] ss:$0 sm:$0xff]  ;;  %vm1072_vm4 = vcmask 64512  }
  0xd3   : > { %s5990_s3 = smov (!%p685_p11, %s3836_s3), 3  ;;  %v4607_v27 = vld [vmem:[%s5899_s9] sm:$0xff]   ;;  %v4609_v29 = vld [vmem:[%s5899_s9 + $0x8] sm:$0xff]   ;;  %v3840_v42 = vld [vmem:[#allocation7] ss:$0 sm:$0xff]  ;;  %s4978_s13 = smov 104  }
  0xd4   : > { %s3837_s27 = sshll.u32 %s5990_s3, 3  ;;  %4093 = vmatpush3.bf16.msra.mxu1 %v4607_v27  ;;  %v4610_v46 = vld [vmem:[%s5897_s7] sm:$0xff]   ;;  %v4611_v48 = vld [vmem:[%s5897_s7 + $0x8] sm:$0xff]   ;;  %v3841_v49 = vld [vmem:[#allocation8] ss:$0 sm:$0xff]  ;;  %vm1540_vm5 = vcmask 1043456  }
  0xd5   : > { %4094 = vmatprep.subr.bf16.mxu1 %v4974_v0  ;;  %v3849_v52 = vld [vmem:[%s5900_s10] ss:$0 sm:$0xff]  ;;  %s4979_s24 = smov 8   ;;  %s4980_s16 = smov 16   ;;  %vm1932_vm6 = vcmask 130048   ;;  %vm1935_vm7 = vcmask 195584  }
  0xd6   : > { %s4981_s26 = smov 24   ;;  %s5973_s23 = sld [smem:[#allocation32_spill]]  ;;  %vm2162_vm8 = vcmask 523264   ;;  %vm3690_vm9 = vcmask 253952  }
  0xd7   : > { %s688_s20 = scalar_lea.vmem %s5971_s14, %s3837_s27  ;;  %s4976_s14 = smov 120  }
  0xd8   : > { %v694_v1 = vld [vmem:[%s5972_s0] sm:$0x3]  ;;  %v692_v3 = vld [vmem:[%s688_s20 + $0x8] sm:$0xff]  ;;  %4095 = vmatpush3.bf16.msra.mxu1 %v4609_v29  ;;  %s5974_s18 = sld [smem:[#allocation33_spill]]  ;;  %s5975_s3 = sld [smem:[#allocation34_spill]] }
  0xd9   : > { %v691_v2 = vld [vmem:[%s688_s20] sm:$0xff]  ;;  %v703_v4 = vsel %vm701_vm1, %v694_v1, 0  ;;  %4106 = vmatprep.subr.bf16.mxu1 %v4974_v0  ;;  %v3845_v1 = vld [vmem:[#allocation10] ss:$0 sm:$0xff]  ;;  %s4977_s20 = smov 112   ;;  %s5976_s28 = sld [smem:[#allocation35_spill]] }
  0xda   : > { %v693_v5 = vpack.c.bf16 %v692_v3, %v691_v2  ;;  %4071 = vmatpush3.bf16.msra.mxu0 %v703_v4  ;;  %s5978_s22 = sld [smem:[#allocation25_spill]]  ;;  %s3961_s0 = sshll.u32 %s5104_s1, 4 }
  0xdb   : > { %4076 = vmatprep.subr.bf16.mxu0 %v4974_v0  ;;  %s4982_s1 = smov [#allocation13]  }
  0xdd   : > { %4073 = vmatmul.mubr.msk.bf16.vlgmr.msra.gmra.mrb[0].mxu0 %vm697_vm2, %v693_v5 }
  0xde   : > { %4080 = vmatprep.mubr.msk.bf16.mxu0 %vm4975_vm0, %v4974_v0  ;;  %4077 = vmatpush3.bf16.msra.mxu0 %v4606_v26 }
  0xdf   : > { %4078 = vmatprep.subr.bf16.mxu0 %v4974_v0 }
  0xe0   : > { %p5980_p1 = scmp.ne.s32.totalorder %s5978_s22, 0 }
  0xe2   : > { %4079 = vmatpush3.bf16.msra.mxu0 %v4608_v28 }
  0xe3   : > { %4084 = vmatprep.subr.bf16.mxu0 %v4974_v0 }
 0x1b0   : > { %v739_v7 = vpop.f32.mrb[0].mxu0 }
 0x1b1   : > { %v5321_v9 = vadd.f32 %v739_v7, %v695_v6  ;;  %v4074_v10 = vpop.f32.mrb[1].mxu0 }
 0x1b2   : > { %v742_v11 = vpop.f32.mrb[2].mxu0 }
 0x1b3   : > { %v5323_v12 = vadd.f32 %v742_v11, %v696_v8  ;;  %v4075_v13 = vpop.f32.mrb[3].mxu0  ;;  %v749_v14 = vsel %vm748_vm3, %v5321_v9, 0.0 }
 0x1b4   : > { %750 = vadd.xlane.f32.xlu0 %v749_v14 }
 0x1b5   : > { %v752_v15 = vsel %vm748_vm3, %v5323_v12, 0.0 }
 0x1b8   : > { %753 = vadd.xlane.f32.xlu0 %v752_v15 }
 0x241   : > { %v751_v16 = vpop.xlane.xlu0 %750 }
 0x242   : > { %v756_v17 = vmul.f32 0.03125, %v751_v16 }
 0x244   : > { %v758_v18 = vsub.f32 %v5321_v9, %v756_v17 }
 0x245   : > { %v754_v19 = vpop.xlane.xlu0 %753 }
 0x246   : > { %v757_v20 = vmul.f32 0.03125, %v754_v19  ;;  %v760_v21 = vmul.f32 %v758_v18, %v758_v18 }
 0x248   : > { %v759_v22 = vsub.f32 %v5323_v12, %v757_v20  ;;  %v762_v23 = vsel %vm748_vm3, %v760_v21, 0.0 }
 0x249   : > { %763 = vadd.xlane.f32.xlu1 %v762_v23 }
 0x24a   : > { %v761_v24 = vmul.f32 %v759_v22, %v759_v22 }
 0x24c   : > { %v765_v25 = vsel %vm748_vm3, %v761_v24, 0.0 }
 0x24d   : > { %766 = vadd.xlane.f32.xlu1 %v765_v25 }
 0x2d6   : > { %v764_v30 = vpop.xlane.xlu1 %763 }
 0x2d7   : > { %v768_v31 = vmul.f32 0.03125, %v764_v30 }
 0x2d9   : > { %v770_v32 = vadd.f32 1e-05, %v768_v31 }
 0x2da   : > { %v767_v33 = vpop.xlane.xlu1 %766 }
 0x2db   : > { %4634 = vrsqrt.f32 %v770_v32  ;;  %v769_v34 = vmul.f32 0.03125, %v767_v33 }
 0x2dd   : > { %v771_v35 = vadd.f32 1e-05, %v769_v34 }
 0x2df   : > { %4636 = vrsqrt.f32 %v771_v35 }
 0x2e5   : > { %v4635_v36 = vpop.eup %4634 }
 0x2e6   : > { %v774_v37 = vmul.f32 %v4635_v36, %v758_v18 }
 0x2e8   : > { %v782_v40 = vmul.f32 %v3839_v38, %v774_v37 }
 0x2e9   : > { %v4637_v39 = vpop.eup %4636 }
 0x2ea   : > { %v775_v41 = vmul.f32 %v4637_v39, %v759_v22  ;;  %v790_v44 = vadd.f32 %v3840_v42, %v782_v40 }
 0x2ec   : > { %v783_v43 = vmul.f32 %v3839_v38, %v775_v41 }
 0x2ee   : > { %v791_v45 = vadd.f32 %v3840_v42, %v783_v43 }
 0x2f0   : > { %v792_v47 = vpack.c.bf16 %v791_v45, %v790_v44 }
 0x2f2   : > { %4081 = vmatmul.mubr.msk.bf16.vlgmr.msra.gmra.mrb[4].mxu0 %vm748_vm3, %v792_v47  ;;  %4097 = vmatmul.mubr.msk.bf16.vlgmr.msra.gmra.mrb[0].mxu1 %vm748_vm3, %v792_v47 }
 0x2f3   : > { %4085 = vmatpush3.bf16.msra.mxu0 %v4610_v46  ;;  %4088 = vmatprep.mubr.msk.bf16.mxu0 %vm4975_vm0, %v4974_v0 }
 0x2f4   : > { %4086 = vmatprep.subr.bf16.mxu0 %v4974_v0  ;;  %4108 = vmatprep.mubr.msk.bf16.mxu1 %vm4975_vm0, %v4974_v0 }
 0x2f7   : > { %4087 = vmatpush3.bf16.msra.mxu0 %v4611_v48 }
 0x2f8   : > { %4100 = vmatprep.subr.bf16.mxu0 %v4974_v0 }
 0x2fa   : > { %4089 = vmatmul.mubr.msk.bf16.vlgmr.msra.gmra.mrb[8].mxu0 %vm748_vm3, %v792_v47 }
 0x2fb   : > { %4102 = vmatprep.mubr.msk.bf16.mxu0 %vm4975_vm0, %v4974_v0 }
 0x3c5   : > { %v853_v50 = vpop.f32.mrb[4].mxu0  ;;  %v981_v51 = vpop.f32.mrb[0].mxu1 }
 0x3c6   : > { %v4082_v53 = vpop.f32.mrb[5].mxu0  ;;  %v4098_v54 = vpop.f32.mrb[1].mxu1  ;;  %v854_v57 = vadd.f32 %v3841_v49, %v853_v50  ;;  %v5371_v62 = vadd.f32 %v3849_v52, %v981_v51 }
 0x3c7   : > { %v856_v55 = vpop.f32.mrb[6].mxu0  ;;  %v984_v56 = vpop.f32.mrb[2].mxu1 }
 0x3c8   : > { %v857_v58 = vadd.f32 %v3841_v49, %v856_v55  ;;  %v5369_v59 = vadd.f32 %v3849_v52, %v984_v56  ;;  %v4083_v60 = vpop.f32.mrb[7].mxu0  ;;  %v4099_v61 = vpop.f32.mrb[3].mxu1  ;;  %v1008_v16 = vpack.c.bf16 %v854_v57, %v854_v57  ;;  %v1064_v52 = vpack.c.bf16 %v5371_v62, %v5371_v62 }
 0x3ca   : > { %v4491_v63 = vpack.i.bf16 %v857_v58, %v854_v57  ;;  %v5375_v2 = vpack.i.bf16 %v5369_v59, %v5371_v62  ;;  %v1009_v17 = vpack.c.bf16 %v857_v58, %v857_v58  ;;  %v1065_v53 = vpack.c.bf16 %v5369_v59, %v5369_v59 }
 0x3cb   : > { %v1542_v56 = vsel %vm1540_vm5, %v1064_v52, 0 }
 0x3cc   : > { %4492 = vrot.lane.b32.xlu1 %v4491_v63, %s4976_s14  ;;  %v1588_v57 = vsel %vm1540_vm5, %v1065_v53, 0 }
 0x3cd   : > { %v917_v3 = vpop.f32.mrb[8].mxu0 }
 0x3ce   : > { %v918_v4 = vadd.f32 %v3845_v1, %v917_v3  ;;  %v4090_v5 = vpop.f32.mrb[9].mxu0 }
 0x3cf   : > { %v920_v6 = vpop.f32.mrb[10].mxu0 }
 0x3d0   : > { %v921_v7 = vadd.f32 %v3845_v1, %v920_v6  ;;  %v4091_v8 = vpop.f32.mrb[11].mxu0  ;;  %v1036_v10 = vpack.c.bf16 %v918_v4, %v918_v4 }
 0x3d2   : > { %v1077_v11 = vsel %vm1072_vm4, %v1036_v10, 0  ;;  %v4496_v13 = vpack.i.bf16 %v921_v7, %v918_v4  ;;  %v1037_v14 = vpack.c.bf16 %v921_v7, %v921_v7 }
 0x3d3   : > { %4101 = vmatpush3.bf16.xpose.msra.mxu0 %v1077_v11 }
 0x3d4   : > { %4497 = vrot.lane.b32.xlu1 %v4496_v13, %s4977_s20  ;;  %4487 = vrot.lane.b32.xlu0 %v4496_v13, %s4976_s14  ;;  %v1123_v15 = vsel %vm1072_vm4, %v1037_v14, 0 }
 0x3d5   : > { %4107 = vmatpush3.bf16.xpose.msra.mxu1 %v1123_v15  ;;  %4112 = vmatprep.subr.bf16.mxu0 %v4974_v0 }
 0x3d6   : > { %4118 = vmatprep.subr.bf16.mxu1 %v4974_v0 }
 0x3d8   : > { %4502 = vrot.lane.b32.xlu1 %v4491_v63, %s4977_s20  ;;  %4507 = vrot.lane.b32.xlu0 %v4496_v13, %s4978_s13 }
 0x3da   : > { %4103 = vmatmul.mubr.msk.bf16.vlgmr.msra.gmra.mrb[12].mxu0 %vm1072_vm4, %v1008_v16 }
 0x3db   : > { %4114 = vmatprep.mubr.msk.bf16.mxu0 %vm4975_vm0, %v4974_v0 }
 0x3dc   : > { %4512 = vrot.lane.b32.xlu1 %v4491_v63, %s4978_s13  ;;  %4109 = vmatmul.mubr.msk.bf16.vlgmr.msra.gmra.mrb[4].mxu1 %vm1072_vm4, %v1009_v17 }
 0x3dd   : > { %4120 = vmatprep.mubr.msk.bf16.mxu1 %vm4975_vm0, %v4974_v0 }
 0x43e   : > { %v4493_v18 = vpop.permute.xlu1 %4492 }
 0x43f   : > { %v4494_v29 = vunpack.i.l.bf16 %v4493_v18  ;;  %v4495_v30 = vunpack.i.h.bf16 %v4493_v18 }
 0x441   : > { %v1010_v34 = vpack.c.bf16 %v4494_v29, %v4494_v29  ;;  %v1011_v35 = vpack.c.bf16 %v4495_v30, %v4495_v30 }
 0x446   : > { %v4488_v19 = vpop.permute.xlu0 %4487  ;;  %v4498_v22 = vpop.permute.xlu1 %4497 }
 0x447   : > { %v4490_v20 = vunpack.i.h.bf16 %v4488_v19  ;;  %v4489_v21 = vunpack.i.l.bf16 %v4488_v19  ;;  %v4499_v25 = vunpack.i.l.bf16 %v4498_v22  ;;  %v4500_v28 = vunpack.i.h.bf16 %v4498_v22 }
 0x449   : > { %v1039_v23 = vpack.c.bf16 %v4490_v20, %v4490_v20  ;;  %v1038_v24 = vpack.c.bf16 %v4489_v21, %v4489_v21  ;;  %v1040_v31 = vpack.c.bf16 %v4499_v25, %v4499_v25  ;;  %v1041_v32 = vpack.c.bf16 %v4500_v28, %v4500_v28 }
 0x44a   : > { %v4508_v33 = vpop.permute.xlu0 %4507  ;;  %v4503_v36 = vpop.permute.xlu1 %4502 }
 0x44b   : > { %v1169_v26 = vsel %vm1072_vm4, %v1038_v24, 0  ;;  %v1215_v27 = vsel %vm1072_vm4, %v1039_v23, 0  ;;  %v4509_v37 = vunpack.i.l.bf16 %v4508_v33  ;;  %v1261_v38 = vsel %vm1072_vm4, %v1040_v31, 0 }
 0x44c   : > { %4113 = vmatpush3.bf16.xpose.msra.mxu0 %v1169_v26  ;;  %4119 = vmatpush3.bf16.xpose.msra.mxu1 %v1215_v27  ;;  %v4510_v39 = vunpack.i.h.bf16 %v4508_v33  ;;  %v1307_v40 = vsel %vm1072_vm4, %v1041_v32, 0  ;;  %v4504_v41 = vunpack.i.l.bf16 %v4503_v36  ;;  %v4505_v42 = vunpack.i.h.bf16 %v4503_v36 }
 0x44d   : > { %4124 = vmatprep.subr.bf16.mxu0 %v4974_v0  ;;  %4130 = vmatprep.subr.bf16.mxu1 %v4974_v0  ;;  %v1042_v43 = vpack.c.bf16 %v4509_v37, %v4509_v37 }
 0x44e   : > { %v1043_v44 = vpack.c.bf16 %v4510_v39, %v4510_v39  ;;  %v1012_v45 = vpack.c.bf16 %v4504_v41, %v4504_v41  ;;  %v1013_v46 = vpack.c.bf16 %v4505_v42, %v4505_v42  ;;  %v4513_v47 = vpop.permute.xlu1 %4512 }
 0x44f   : > { %v1353_v48 = vsel %vm1072_vm4, %v1042_v43, 0  ;;  %v4514_v50 = vunpack.i.l.bf16 %v4513_v47  ;;  %v4515_v51 = vunpack.i.h.bf16 %v4513_v47 }
 0x450   : > { %v1399_v49 = vsel %vm1072_vm4, %v1043_v44, 0 }
 0x451   : > { %v1014_v54 = vpack.c.bf16 %v4514_v50, %v4514_v50  ;;  %v1015_v55 = vpack.c.bf16 %v4515_v51, %v4515_v51 }
 0x453   : > { %4115 = vmatmul.mubr.msk.bf16.vlgmr.msra.gmra.mrb[16].mxu0 %vm1072_vm4, %v1010_v34  ;;  %4121 = vmatmul.mubr.msk.bf16.vlgmr.msra.gmra.mrb[8].mxu1 %vm1072_vm4, %v1011_v35 }
 0x454   : > { %4125 = vmatpush3.bf16.xpose.msra.mxu0 %v1261_v38  ;;  %4131 = vmatpush3.bf16.xpose.msra.mxu1 %v1307_v40 }
 0x455   : > { %4126 = vmatprep.mubr.msk.bf16.mxu0 %vm4975_vm0, %v4974_v0  ;;  %4132 = vmatprep.mubr.msk.bf16.mxu1 %vm4975_vm0, %v4974_v0 }
 0x456   : > { %4136 = vmatprep.subr.bf16.mxu0 %v4974_v0  ;;  %4142 = vmatprep.subr.bf16.mxu1 %v4974_v0 }
 0x45b   : > { %4127 = vmatmul.mubr.msk.bf16.vlgmr.msra.gmra.mrb[20].mxu0 %vm1072_vm4, %v1012_v45  ;;  %4133 = vmatmul.mubr.msk.bf16.vlgmr.msra.gmra.mrb[12].mxu1 %vm1072_vm4, %v1013_v46 }
 0x45c   : > { %4137 = vmatpush3.bf16.xpose.msra.mxu0 %v1353_v48  ;;  %4143 = vmatpush3.bf16.xpose.msra.mxu1 %v1399_v49 }
 0x45d   : > { %4138 = vmatprep.mubr.msk.bf16.mxu0 %vm4975_vm0, %v4974_v0  ;;  %4144 = vmatprep.mubr.msk.bf16.mxu1 %vm4975_vm0, %v4974_v0 }
 0x45e   : > { %4148 = vmatprep.subr.bf16.mxu0 %v4974_v0  ;;  %4154 = vmatprep.subr.bf16.mxu1 %v4974_v0 }
 0x463   : > { %4139 = vmatmul.mubr.msk.bf16.vlgmr.msra.gmra.mrb[24].mxu0 %vm1072_vm4, %v1014_v54  ;;  %4145 = vmatmul.mubr.msk.bf16.vlgmr.msra.gmra.mrb[16].mxu1 %vm1072_vm4, %v1015_v55 }
 0x464   : > { %4149 = vmatpush3.bf16.msra.mxu0 %v1542_v56  ;;  %4155 = vmatpush3.bf16.msra.mxu1 %v1588_v57 }
 0x465   : > { %4150 = vmatprep.mubr.msk.bf16.mxu0 %vm4975_vm0, %v4974_v0  ;;  %4156 = vmatprep.mubr.msk.bf16.mxu1 %vm4975_vm0, %v4974_v0 }
 0x466   : > { %4160 = vmatprep.subr.bf16.mxu0 %v4974_v0  ;;  %4166 = vmatprep.subr.bf16.mxu1 %v4974_v0 }
 0x4ad   : > { %v1113_v58 = vpop.f32.mrb[12].mxu0 }
 0x4ae   : > { %v4104_v59 = vpop.f32.mrb[13].mxu0  ;;  %v1441_v60 = vsel %vm1072_vm4, %v1113_v58, -inf }
 0x4af   : > { %v1159_v61 = vpop.f32.mrb[4].mxu1  ;;  %1442 = vmax.xlane.f32.xlu0 %v1441_v60  ;;  %v1116_v62 = vpop.f32.mrb[14].mxu0 }
 0x4b0   : > { %v4105_v63 = vpop.f32.mrb[15].mxu0  ;;  %v4110_v1 = vpop.f32.mrb[5].mxu1  ;;  %v1444_v3 = vsel %vm1072_vm4, %v1159_v61, -inf }
 0x4b1   : > { %1445 = vmax.xlane.f32.xlu1 %v1444_v3  ;;  %v1162_v4 = vpop.f32.mrb[6].mxu1 }
 0x4b2   : > { %v4111_v5 = vpop.f32.mrb[7].mxu1 }
 0x526   : > { %v1205_v6 = vpop.f32.mrb[16].mxu0  ;;  %v1251_v7 = vpop.f32.mrb[8].mxu1 }
 0x527   : > { %v4116_v8 = vpop.f32.mrb[17].mxu0  ;;  %v1447_v10 = vsel %vm1072_vm4, %v1205_v6, -inf  ;;  %v4122_v11 = vpop.f32.mrb[9].mxu1  ;;  %v1450_v17 = vsel %vm1072_vm4, %v1251_v7, -inf }
 0x528   : > { %1448 = vmax.xlane.f32.xlu0 %v1447_v10  ;;  %v1208_v13 = vpop.f32.mrb[18].mxu0  ;;  %v1254_v14 = vpop.f32.mrb[10].mxu1 }
 0x529   : > { %v4117_v15 = vpop.f32.mrb[19].mxu0  ;;  %v4123_v16 = vpop.f32.mrb[11].mxu1 }
 0x52c   : > { %1451 = vmax.xlane.f32.xlu0 %v1450_v17 }
 0x52e   : > { %v1297_v18 = vpop.f32.mrb[20].mxu0  ;;  %v1343_v19 = vpop.f32.mrb[12].mxu1 }
 0x52f   : > { %v4128_v20 = vpop.f32.mrb[21].mxu0  ;;  %v1453_v21 = vsel %vm1072_vm4, %v1297_v18, -inf  ;;  %v4134_v22 = vpop.f32.mrb[13].mxu1  ;;  %v1456_v23 = vsel %vm1072_vm4, %v1343_v19, -inf }
 0x530   : > { %1454 = vmax.xlane.f32.xlu0 %v1453_v21  ;;  %v1300_v24 = vpop.f32.mrb[22].mxu0  ;;  %1457 = vmax.xlane.f32.xlu1 %v1456_v23  ;;  %v1346_v25 = vpop.f32.mrb[14].mxu1 }
 0x531   : > { %v4129_v26 = vpop.f32.mrb[23].mxu0  ;;  %v4135_v27 = vpop.f32.mrb[15].mxu1 }
 0x536   : > { %v1389_v28 = vpop.f32.mrb[24].mxu0  ;;  %v5437_v29 = vpop.f32.mrb[16].mxu1 }
 0x537   : > { %v4140_v30 = vpop.f32.mrb[25].mxu0  ;;  %v1459_v31 = vsel %vm1072_vm4, %v1389_v28, -inf  ;;  %v4146_v32 = vpop.f32.mrb[17].mxu1  ;;  %v1462_v33 = vsel %vm1072_vm4, %v5437_v29, -inf }
 0x538   : > { %1460 = vmax.xlane.f32.xlu0 %v1459_v31  ;;  %v1392_v34 = vpop.f32.mrb[26].mxu0  ;;  %1463 = vmax.xlane.f32.xlu1 %v1462_v33  ;;  %v1438_v35 = vpop.f32.mrb[18].mxu1 }
 0x539   : > { %v4141_v36 = vpop.f32.mrb[27].mxu0  ;;  %v4147_v37 = vpop.f32.mrb[19].mxu1 }
 0x53c   : > { %v1443_v38 = vpop.xlane.xlu0 %1442 }
 0x53d   : > { %v1465_v39 = vsub.f32 %v1113_v58, %v1443_v38 }
 0x53e   : > { %v1446_v40 = vpop.xlane.xlu1 %1445 }
 0x53f   : > { %v1473_v41 = vmul.f32 1.442695, %v1465_v39  ;;  %v1466_v42 = vsub.f32 %v1159_v61, %v1446_v40 }
 0x541   : > { %4638 = vpow2.f32 %v1473_v41  ;;  %v1475_v43 = vmul.f32 1.442695, %v1466_v42 }
 0x543   : > { %4640 = vpow2.f32 %v1475_v43 }
 0x54b   : > { %v4639_v44 = vpop.eup %4638 }
 0x54c   : > { %v1489_v45 = vsel %vm1072_vm4, %v4639_v44, 0.0 }
 0x54d   : > { %v4641_v46 = vpop.eup %4640  ;;  %1490 = vadd.xlane.f32.xlu0 %v1489_v45 }
 0x54e   : > { %v1492_v47 = vsel %vm1072_vm4, %v4641_v46, 0.0 }
 0x54f   : > { %1493 = vadd.xlane.f32.xlu1 %v1492_v47 }
 0x5b5   : > { %v1449_v48 = vpop.xlane.xlu0 %1448 }
 0x5b6   : > { %v1467_v49 = vsub.f32 %v1205_v6, %v1449_v48 }
 0x5b8   : > { %v1477_v50 = vmul.f32 1.442695, %v1467_v49 }
 0x5b9   : > { %v1452_v51 = vpop.xlane.xlu0 %1451 }
 0x5ba   : > { %4642 = vpow2.f32 %v1477_v50  ;;  %v1468_v52 = vsub.f32 %v1251_v7, %v1452_v51 }
 0x5bc   : > { %v1479_v53 = vmul.f32 1.442695, %v1468_v52 }
 0x5bd   : > { %v1455_v54 = vpop.xlane.xlu0 %1454  ;;  %v1458_v55 = vpop.xlane.xlu1 %1457 }
 0x5be   : > { %4644 = vpow2.f32 %v1479_v53  ;;  %v1469_v56 = vsub.f32 %v1297_v18, %v1455_v54  ;;  %v1470_v57 = vsub.f32 %v1343_v19, %v1458_v55 }
 0x5c0   : > { %v1481_v58 = vmul.f32 1.442695, %v1469_v56  ;;  %v1483_v59 = vmul.f32 1.442695, %v1470_v57 }
 0x5c2   : > { %4646 = vpow2.f32 %v1481_v58 }
 0x5c3   : > { %4648 = vpow2.f32 %v1483_v59 }
 0x5c4   : > { %v4643_v60 = vpop.eup %4642 }
 0x5c5   : > { %v1461_v61 = vpop.xlane.xlu0 %1460  ;;  %v1495_v62 = vsel %vm1072_vm4, %v4643_v60, 0.0  ;;  %v1464_v13 = vpop.xlane.xlu1 %1463 }
 0x5c6   : > { %v1471_v63 = vsub.f32 %v1389_v28, %v1461_v61  ;;  %1496 = vadd.xlane.f32.xlu0 %v1495_v62  ;;  %v1472_v22 = vsub.f32 %v5437_v29, %v1464_v13 }
 0x5c8   : > { %v4645_v1 = vpop.eup %4644  ;;  %v1485_v3 = vmul.f32 1.442695, %v1471_v63  ;;  %v1487_v23 = vmul.f32 1.442695, %v1472_v22 }
 0x5c9   : > { %v1498_v4 = vsel %vm1072_vm4, %v4645_v1, 0.0 }
 0x5ca   : > { %4650 = vpow2.f32 %v1485_v3  ;;  %1499 = vadd.xlane.f32.xlu1 %v1498_v4 }
 0x5cc   : > { %v5446_v5 = vpop.eup %4646 }
 0x5cd   : > { %v5448_v6 = vpop.eup %4648  ;;  %v1501_v7 = vsel %vm1072_vm4, %v5446_v5, 0.0 }
 0x5ce   : > { %v1504_v8 = vsel %vm1072_vm4, %v5448_v6, 0.0  ;;  %1502 = vadd.xlane.f32.xlu0 %v1501_v7 }
 0x5cf   : > { %1505 = vadd.xlane.f32.xlu1 %v1504_v8 }
 0x5d4   : > { %v5454_v10 = vpop.eup %4650 }
 0x5d5   : > { %v1507_v11 = vsel %vm1072_vm4, %v5454_v10, 0.0 }
 0x5d6   : > { %1508 = vadd.xlane.f32.xlu0 %v1507_v11 }
 0x5da   : > { %v1491_v14 = vpop.xlane.xlu0 %1490 }
 0x5db   : > { %4652 = vrcp.f32 %v1491_v14 }
 0x5dc   : > { %v1494_v15 = vpop.xlane.xlu1 %1493 }
 0x5dd   : > { %4654 = vrcp.f32 %v1494_v15 }
 0x5de   : > { %4656 = vpow2.f32 %v1487_v23 }
 0x5e0   : > { %4522 = vrot.lane.b32.xlu1 %v5375_v2, %s4977_s20 }
 0x5e5   : > { %v4653_v16 = vpop.eup %4652 }
 0x5e6   : > { %v1521_v17 = vmul.f32 %v4653_v16, %v4639_v44 }
 0x5e7   : > { %v4655_v18 = vpop.eup %4654 }
 0x5e8   : > { %v1522_v19 = vmul.f32 %v4655_v18, %v4641_v46  ;;  %v1529_v20 = vpack.c.bf16 %v1521_v17, %v1521_v17  ;;  %v5469_v24 = vpop.eup %4656 }
 0x5e9   : > { %v1510_v25 = vsel %vm1072_vm4, %v5469_v24, 0.0 }
 0x5ea   : > { %4151 = vmatmul.mubr.msk.bf16.vlgmr.msra.gmra.mrb[28].mxu0 %vm1072_vm4, %v1529_v20  ;;  %v1530_v21 = vpack.c.bf16 %v1522_v19, %v1522_v19  ;;  %v4612_v20 = vld [vmem:[%s5901_s11] sm:$0xff]  }
 0x5eb   : > { %4162 = vmatprep.mubr.msk.bf16.mxu0 %vm4975_vm0, %v4974_v0 }
 0x5ec   : > { %4157 = vmatmul.mubr.msk.bf16.vlgmr.msra.gmra.mrb[20].mxu1 %vm1072_vm4, %v1530_v21  ;;  %4517 = vrot.lane.b32.xlu0 %v5375_v2, %s4976_s14 }
 0x5ed   : > { %4168 = vmatprep.mubr.msk.bf16.mxu1 %vm4975_vm0, %v4974_v0 }
 0x604   : > { %1511 = vadd.xlane.f32.xlu1 %v1510_v25 }
 0x615   : > { %4527 = vrot.lane.b32.xlu1 %v5375_v2, %s4978_s13 }
 0x653   : > { %v1497_v26 = vpop.xlane.xlu0 %1496 }
 0x654   : > { %4658 = vrcp.f32 %v1497_v26 }
 0x657   : > { %v1500_v27 = vpop.xlane.xlu1 %1499 }
 0x658   : > { %4660 = vrcp.f32 %v1500_v27 }
 0x65b   : > { %v1503_v30 = vpop.xlane.xlu0 %1502 }
 0x65c   : > { %v1506_v28 = vpop.xlane.xlu1 %1505  ;;  %4662 = vrcp.f32 %v1503_v30 }
 0x65d   : > { %4664 = vrcp.f32 %v1506_v28 }
 0x65e   : > { %v4659_v32 = vpop.eup %4658 }
 0x65f   : > { %v1523_v39 = vmul.f32 %v4659_v32, %v4643_v60 }
 0x660   : > { %v4523_v29 = vpop.permute.xlu1 %4522 }
 0x661   : > { %v4525_v35 = vunpack.i.h.bf16 %v4523_v29  ;;  %v4524_v36 = vunpack.i.l.bf16 %v4523_v29  ;;  %v1531_v47 = vpack.c.bf16 %v1523_v39, %v1523_v39 }
 0x662   : > { %v4661_v33 = vpop.eup %4660 }
 0x663   : > { %v1509_v31 = vpop.xlane.xlu0 %1508  ;;  %v1524_v40 = vmul.f32 %v4661_v33, %v4645_v1  ;;  %v1069_v42 = vpack.c.bf16 %v4525_v35, %v4525_v35  ;;  %v1068_v43 = vpack.c.bf16 %v4524_v36, %v4524_v36 }
 0x664   : > { %4666 = vrcp.f32 %v1509_v31 }
 0x665   : > { %v1532_v48 = vpack.c.bf16 %v1524_v40, %v1524_v40  ;;  %v1726_v50 = vsel %vm1540_vm5, %v1068_v43, 0  ;;  %v1772_v51 = vsel %vm1540_vm5, %v1069_v42, 0 }
 0x666   : > { %v4663_v46 = vpop.eup %4662 }
 0x667   : > { %v4518_v34 = vpop.permute.xlu0 %4517  ;;  %v4665_v49 = vpop.eup %4664  ;;  %v1525_v53 = vmul.f32 %v4663_v46, %v5446_v5 }
 0x668   : > { %v4520_v37 = vunpack.i.h.bf16 %v4518_v34  ;;  %v4519_v38 = vunpack.i.l.bf16 %v4518_v34  ;;  %v1526_v52 = vmul.f32 %v4665_v49, %v5448_v6 }
 0x669   : > { %v1533_v54 = vpack.c.bf16 %v1525_v53, %v1525_v53 }
 0x66a   : > { %v1067_v2 = vpack.c.bf16 %v4520_v37, %v4520_v37  ;;  %v1066_v41 = vpack.c.bf16 %v4519_v38, %v4519_v38  ;;  %v1534_v55 = vpack.c.bf16 %v1526_v52, %v1526_v52  ;;  %v4613_v37 = vld [vmem:[%s5901_s11 + $0x8] sm:$0xff]  }
 0x66c   : > { %v1634_v44 = vsel %vm1540_vm5, %v1066_v41, 0  ;;  %v1680_v45 = vsel %vm1540_vm5, %v1067_v2, 0 }
 0x66d   : > { %4161 = vmatpush3.bf16.msra.mxu0 %v1634_v44  ;;  %4167 = vmatpush3.bf16.msra.mxu1 %v1680_v45 }
 0x66e   : > { %4172 = vmatprep.subr.bf16.mxu0 %v4974_v0  ;;  %4178 = vmatprep.subr.bf16.mxu1 %v4974_v0  ;;  %v4667_v57 = vpop.eup %4666 }
 0x66f   : > { %v1527_v61 = vmul.f32 %v4667_v57, %v5454_v10 }
 0x670   : > { %4163 = vmatmul.mubr.msk.bf16.vlgmr.msra.gmra.mrb[32].mxu0 %vm1072_vm4, %v1531_v47  ;;  %4169 = vmatmul.mubr.msk.bf16.vlgmr.msra.gmra.mrb[24].mxu1 %vm1072_vm4, %v1532_v48 }
 0x671   : > { %4173 = vmatpush3.bf16.msra.mxu0 %v1726_v50  ;;  %4179 = vmatpush3.bf16.msra.mxu1 %v1772_v51  ;;  %v1535_v5 = vpack.c.bf16 %v1527_v61, %v1527_v61 }
 0x672   : > { %4174 = vmatprep.mubr.msk.bf16.mxu0 %vm4975_vm0, %v4974_v0  ;;  %4180 = vmatprep.mubr.msk.bf16.mxu1 %vm4975_vm0, %v4974_v0 }
 0x673   : > { %4184 = vmatprep.subr.bf16.mxu0 %v4974_v0  ;;  %4190 = vmatprep.subr.bf16.mxu1 %v4974_v0 }
 0x678   : > { %4175 = vmatmul.mubr.msk.bf16.vlgmr.msra.gmra.mrb[36].mxu0 %vm1072_vm4, %v1533_v54  ;;  %4181 = vmatmul.mubr.msk.bf16.vlgmr.msra.gmra.mrb[28].mxu1 %vm1072_vm4, %v1534_v55 }
 0x679   : > { %4186 = vmatprep.mubr.msk.bf16.mxu0 %vm4975_vm0, %v4974_v0  ;;  %4192 = vmatprep.mubr.msk.bf16.mxu1 %vm4975_vm0, %v4974_v0 }
 0x691   : > { %v1512_v56 = vpop.xlane.xlu1 %1511 }
 0x692   : > { %4668 = vrcp.f32 %v1512_v56 }
 0x695   : > { %v4528_v58 = vpop.permute.xlu1 %4527 }
 0x696   : > { %v4530_v59 = vunpack.i.h.bf16 %v4528_v58  ;;  %v4529_v60 = vunpack.i.l.bf16 %v4528_v58 }
 0x698   : > { %v1071_v62 = vpack.c.bf16 %v4530_v59, %v4530_v59  ;;  %v1070_v63 = vpack.c.bf16 %v4529_v60, %v4529_v60 }
 0x69a   : > { %v1818_v1 = vsel %vm1540_vm5, %v1070_v63, 0  ;;  %v1864_v3 = vsel %vm1540_vm5, %v1071_v62, 0  ;;  %v3869_v62 = vld [vmem:[%s5902_s12] ss:$0 sm:$0xff] }
 0x69b   : > { %4185 = vmatpush3.bf16.msra.mxu0 %v1818_v1  ;;  %4191 = vmatpush3.bf16.msra.mxu1 %v1864_v3 }
 0x69c   : > { %v4669_v4 = vpop.eup %4668  ;;  %4196 = vmatprep.subr.bf16.mxu0 %v4974_v0  ;;  %4204 = vmatprep.subr.bf16.mxu1 %v4974_v0 }
 0x69d   : > { %v1528_v6 = vmul.f32 %v4669_v4, %v5469_v24 }
 0x69e   : > { %4187 = vmatmul.mubr.msk.bf16.vlgmr.msra.gmra.mrb[40].mxu0 %vm1072_vm4, %v1535_v5 }
 0x69f   : > { %v1536_v7 = vpack.c.bf16 %v1528_v6, %v1528_v6  ;;  %4200 = vmatprep.mubr.msk.bf16.mxu0 %vm4975_vm0, %v4974_v0  ;;  %4197 = vmatpush3.bf16.msra.mxu0 %v4612_v20 }
 0x6a0   : > { %4198 = vmatprep.subr.bf16.mxu0 %v4974_v0 }
 0x6a1   : > { %4193 = vmatmul.mubr.msk.bf16.vlgmr.msra.gmra.mrb[32].mxu1 %vm1072_vm4, %v1536_v7 }
 0x6a2   : > { %4208 = vmatprep.mubr.msk.bf16.mxu1 %vm4975_vm0, %v4974_v0 }
 0x6a3   : > { %4199 = vmatpush3.bf16.msra.mxu0 %v4613_v37  ;;  %v3874_v37 = vld [vmem:[%s5974_s18] ss:$0 sm:$0xff] }
 0x6a4   : > { %4212 = vmatprep.subr.bf16.mxu0 %v4974_v0 }
 0x6bd   : > { %v1578_v8 = vpop.f32.mrb[28].mxu0 }
 0x6be   : > { %v4152_v10 = vpop.f32.mrb[29].mxu0 }
 0x6bf   : > { %v1581_v11 = vpop.f32.mrb[30].mxu0  ;;  %v1624_v13 = vpop.f32.mrb[20].mxu1 }
 0x6c0   : > { %v4153_v14 = vpop.f32.mrb[31].mxu0  ;;  %v4158_v15 = vpop.f32.mrb[21].mxu1 }
 0x6c1   : > { %v1627_v16 = vpop.f32.mrb[22].mxu1 }
 0x6c2   : > { %v4159_v17 = vpop.f32.mrb[23].mxu1 }
 0x743   : > { %v1670_v18 = vpop.f32.mrb[32].mxu0  ;;  %v1716_v19 = vpop.f32.mrb[24].mxu1 }
 0x744   : > { %v4531_v21 = vpack.i.bf16 %v1716_v19, %v1670_v18  ;;  %v4164_v22 = vpop.f32.mrb[33].mxu0  ;;  %v4170_v23 = vpop.f32.mrb[25].mxu1 }
 0x745   : > { %v1673_v24 = vpop.f32.mrb[34].mxu0  ;;  %v1719_v25 = vpop.f32.mrb[26].mxu1  ;;  %v4615_v22 = vld [vmem:[#allocation11 + $0x8] sm:$0xff]  }
 0x746   : > { %v4171_v26 = vpop.f32.mrb[27].mxu1  ;;  %4532 = vrot.lane.b32.xlu1 %v4531_v21, %s4979_s24  ;;  %v4165_v27 = vpop.f32.mrb[35].mxu0  ;;  %v4614_v21 = vld [vmem:[#allocation11] sm:$0xff]   ;;  %v4616_v23 = vld [vmem:[%s5907_s17] sm:$0xff]   ;;  %v4617_v24 = vld [vmem:[%s5907_s17 + $0x8] sm:$0xff]  }
 0x747   : > { %4205 = vmatpush3.bf16.msra.mxu1 %v4614_v21 }
 0x748   : > { %4206 = vmatprep.subr.bf16.mxu1 %v4974_v0 }
 0x74b   : > { %v1762_v28 = vpop.f32.mrb[36].mxu0  ;;  %v1808_v30 = vpop.f32.mrb[28].mxu1  ;;  %4207 = vmatpush3.bf16.msra.mxu1 %v4615_v22 }
 0x74c   : > { %v4536_v31 = vpack.i.bf16 %v1808_v30, %v1762_v28  ;;  %v4176_v29 = vpop.f32.mrb[37].mxu0  ;;  %v4182_v32 = vpop.f32.mrb[29].mxu1  ;;  %4224 = vmatprep.subr.bf16.mxu1 %v4974_v0 }
 0x74d   : > { %v1765_v33 = vpop.f32.mrb[38].mxu0  ;;  %v1811_v34 = vpop.f32.mrb[30].mxu1 }
 0x74e   : > { %v4183_v35 = vpop.f32.mrb[31].mxu1  ;;  %4537 = vrot.lane.b32.xlu0 %v4536_v31, %s4980_s16  ;;  %v4177_v36 = vpop.f32.mrb[39].mxu0  ;;  %v3873_v33 = vld [vmem:[%s5973_s23] ss:$0 sm:$0xff] }
 0x771   : > { %v1854_v38 = vpop.f32.mrb[40].mxu0 }
 0x772   : > { %v4188_v39 = vpop.f32.mrb[41].mxu0 }
 0x773   : > { %v1857_v40 = vpop.f32.mrb[42].mxu0 }
 0x774   : > { %v4189_v2 = vpop.f32.mrb[43].mxu0  ;;  %v1900_v41 = vpop.f32.mrb[32].mxu1 }
 0x775   : > { %v4541_v42 = vpack.i.bf16 %v1900_v41, %v1854_v38  ;;  %v4194_v43 = vpop.f32.mrb[33].mxu1  ;;  %v4618_v41 = vld [vmem:[%s5907_s17 + $0x10] sm:$0xff]  }
 0x776   : > { %v1903_v44 = vpop.f32.mrb[34].mxu1  ;;  %v3875_v43 = vld [vmem:[%s5975_s3] ss:$0 sm:$0xff] }
 0x777   : > { %v4195_v45 = vpop.f32.mrb[35].mxu1  ;;  %4542 = vrot.lane.b32.xlu1 %v4541_v42, %s4981_s26  ;;  %v4619_v42 = vld [vmem:[%s5907_s17 + $0x18] sm:$0xff]  }
 0x7b8   : > { %v4533_v46 = vpop.permute.xlu1 %4532 }
 0x7b9   : > { %v4535_v48 = vunpack.i.h.bf16 %v4533_v46  ;;  %v4534_v49 = vunpack.i.l.bf16 %v4533_v46 }
 0x7bb   : > { %v1931_v53 = vsel %vm1072_vm4, %v1624_v13, %v4535_v48  ;;  %v1930_v54 = vsel %vm1072_vm4, %v1578_v8, %v4534_v49 }
 0x7c0   : > { %v4538_v47 = vpop.permute.xlu0 %4537 }
 0x7c1   : > { %v4540_v50 = vunpack.i.h.bf16 %v4538_v47  ;;  %v4539_v51 = vunpack.i.l.bf16 %v4538_v47 }
 0x7c3   : > { %v1934_v57 = vsel %vm1932_vm6, %v1931_v53, %v4540_v50  ;;  %v1933_v58 = vsel %vm1932_vm6, %v1930_v54, %v4539_v51  ;;  %v3879_v53 = vld [vmem:[%s5976_s28] ss:$0 sm:$0xff] }
 0x7e9   : > { %v4543_v52 = vpop.permute.xlu1 %4542 }
 0x7ea   : > { %v4545_v55 = vunpack.i.h.bf16 %v4543_v52  ;;  %v4544_v56 = vunpack.i.l.bf16 %v4543_v52 }
 0x7ec   : > { %v1937_v59 = vsel %vm1935_vm7, %v1934_v57, %v4545_v55  ;;  %v1936_v60 = vsel %vm1935_vm7, %v1933_v58, %v4544_v56 }
 0x7ed   : > { %v1938_v61 = vpack.c.bf16 %v1937_v59, %v1936_v60 }
 0x7ef   : > { %4201 = vmatmul.mubr.msk.bf16.vlgmr.msra.gmra.mrb[44].mxu0 %vm748_vm3, %v1938_v61 }
 0x7f0   : > { %4220 = vmatprep.mubr.msk.bf16.mxu0 %vm4975_vm0, %v4974_v0  ;;  %4213 = vmatpush3.bf16.msra.mxu0 %v4616_v23  ;;  %v3885_v23 = vld [vmem:[#allocation5 + $0x1] ss:$0 sm:$0xff] }
 0x7f1   : > { %4214 = vmatprep.subr.bf16.mxu0 %v4974_v0 }
 0x7f4   : > { %4215 = vmatpush3.bf16.msra.mxu0 %v4617_v24 }
 0x7f5   : > { %4216 = vmatprep.subr.bf16.mxu0 %v4974_v0 }
 0x7f8   : > { %4217 = vmatpush3.bf16.msra.mxu0 %v4618_v41 }
 0x7f9   : > { %4218 = vmatprep.subr.bf16.mxu0 %v4974_v0 }
 0x7fc   : > { %4219 = vmatpush3.bf16.msra.mxu0 %v4619_v42 }
 0x7fd   : > { %4240 = vmatprep.subr.bf16.mxu0 %v4974_v0 }
 0x8c2   : > { %v1999_v63 = vpop.f32.mrb[44].mxu0 }
 0x8c3   : > { %v2000_v1 = vadd.f32 %v3869_v62, %v1999_v63  ;;  %v4202_v3 = vpop.f32.mrb[45].mxu0 }
 0x8c4   : > { %v2002_v4 = vpop.f32.mrb[46].mxu0 }
 0x8c5   : > { %v5533_v5 = vadd.f32 %v2000_v1, %v5321_v9  ;;  %v2003_v6 = vadd.f32 %v3869_v62, %v2002_v4  ;;  %v4203_v7 = vpop.f32.mrb[47].mxu0 }
 0x8c7   : > { %v5536_v8 = vadd.f32 %v2003_v6, %v5323_v12  ;;  %v2010_v10 = vsel %vm748_vm3, %v5533_v5, 0.0 }
 0x8c8   : > { %2011 = vadd.xlane.f32.xlu0 %v2010_v10 }
 0x8c9   : > { %v2013_v11 = vsel %vm748_vm3, %v5536_v8, 0.0 }
 0x8ca   : > { %2014 = vadd.xlane.f32.xlu1 %v2013_v11 }
 0x955   : > { %v2012_v13 = vpop.xlane.xlu0 %2011 }
 0x956   : > { %v2016_v14 = vmul.f32 0.03125, %v2012_v13 }
 0x957   : > { %v2015_v15 = vpop.xlane.xlu1 %2014 }
 0x958   : > { %v2018_v16 = vsub.f32 %v5533_v5, %v2016_v14  ;;  %v2017_v9 = vmul.f32 0.03125, %v2015_v15  ;;  %v4620_v14 = vld [vmem:[%s5895_s5 + $0x10] sm:$0xff]  }
 0x959   : > { %v4621_v15 = vld [vmem:[%s5899_s9 + $0x10] sm:$0xff]  }
 0x95a   : > { %v2019_v17 = vsub.f32 %v5536_v8, %v2017_v9  ;;  %v2020_v18 = vmul.f32 %v2018_v16, %v2018_v16  ;;  %v4623_v9 = vld [vmem:[%s5899_s9 + $0x18] sm:$0xff]  }
 0x95c   : > { %v2022_v12 = vsel %vm748_vm3, %v2020_v18, 0.0  ;;  %v2021_v19 = vmul.f32 %v2019_v17, %v2019_v17 }
 0x95d   : > { %2023 = vadd.xlane.f32.xlu0 %v2022_v12 }
 0x95e   : > { %v2025_v20 = vsel %vm748_vm3, %v2021_v19, 0.0 }
 0x961   : > { %2026 = vadd.xlane.f32.xlu0 %v2025_v20 }
 0x9ea   : > { %v2024_v25 = vpop.xlane.xlu0 %2023 }
 0x9eb   : > { %v2028_v26 = vmul.f32 0.03125, %v2024_v25 }
 0x9ed   : > { %v2030_v27 = vadd.f32 1e-05, %v2028_v26 }
 0x9ee   : > { %v2027_v28 = vpop.xlane.xlu0 %2026 }
 0x9ef   : > { %4670 = vrsqrt.f32 %v2030_v27  ;;  %v2029_v30 = vmul.f32 0.03125, %v2027_v28  ;;  %v3886_v28 = vld [vmem:[#allocation7 + $0x1] ss:$0 sm:$0xff] }
 0x9f1   : > { %v2031_v31 = vadd.f32 1e-05, %v2029_v30 }
 0x9f3   : > { %4672 = vrsqrt.f32 %v2031_v31 }
 0x9f9   : > { %v4671_v29 = vpop.eup %4670 }
 0x9fa   : > { %v2034_v32 = vmul.f32 %v4671_v29, %v2018_v16  ;;  %v4622_v16 = vld [vmem:[%s5895_s5 + $0x18] sm:$0xff]  }
 0x9fc   : > { %v2042_v35 = vmul.f32 %v3873_v33, %v2034_v32  ;;  %v4624_v32 = vld [vmem:[%s5897_s7 + $0x10] sm:$0xff]  }
 0x9fd   : > { %v4673_v34 = vpop.eup %4672 }
 0x9fe   : > { %v2035_v36 = vmul.f32 %v4673_v34, %v2019_v17  ;;  %v2050_v39 = vadd.f32 %v3874_v37, %v2042_v35  ;;  %v4625_v34 = vld [vmem:[%s5897_s7 + $0x18] sm:$0xff]   ;;  %v3891_v35 = vld [vmem:[#allocation8 + $0x1] ss:$0 sm:$0xff] }
 0xa00   : > { %v2043_v38 = vmul.f32 %v3873_v33, %v2035_v36 }
 0xa02   : > { %v2051_v40 = vadd.f32 %v3874_v37, %v2043_v38  ;;  %v3908_v38 = vld [vmem:[%s5900_s10 + $0x1] ss:$0 sm:$0xff] }
 0xa04   : > { %v2052_v2 = vpack.c.bf16 %v2051_v40, %v2050_v39 }
 0xa06   : > { %4209 = vmatmul.mubr.msk.bf16.vlgmr.msra.gmra.mrb[36].mxu1 %vm748_vm3, %v2052_v2 }
 0xa07   : > { %4228 = vmatprep.mubr.msk.bf16.mxu1 %vm4975_vm0, %v4974_v0  ;;  %4225 = vmatpush3.bf16.msra.mxu1 %v4620_v14 }
 0xa08   : > { %4226 = vmatprep.subr.bf16.mxu1 %v4974_v0 }
 0xa0b   : > { %4227 = vmatpush3.bf16.msra.mxu1 %v4622_v16 }
 0xa0c   : > { %4232 = vmatprep.subr.bf16.mxu1 %v4974_v0 }
 0xad9   : > { %v2113_v44 = vpop.f32.mrb[36].mxu1 }
 0xada   : > { %v2114_v45 = vadd.f32 %v3875_v43, %v2113_v44  ;;  %v4210_v46 = vpop.f32.mrb[37].mxu1 }
 0xadb   : > { %v2116_v47 = vpop.f32.mrb[38].mxu1 }
 0xadc   : > { %v2117_v48 = vadd.f32 %v3875_v43, %v2116_v47  ;;  %v4211_v49 = vpop.f32.mrb[39].mxu1  ;;  %v2120_v50 = vmax.f32 %v2114_v45, 0.0 }
 0xadd   : > { %v3899_v49 = vld [vmem:[#allocation10 + $0x1] ss:$0 sm:$0xff] }
 0xade   : > { %v2121_v51 = vmax.f32 %v2117_v48, 0.0 }
 0xae0   : > { %v2122_v52 = vpack.c.bf16 %v2121_v51, %v2120_v50 }
 0xae2   : > { %4221 = vmatmul.mubr.msk.bf16.vlgmr.msra.gmra.mrb[48].mxu0 %vm2162_vm8, %v2122_v52 }
 0xae3   : > { %4244 = vmatprep.mubr.msk.bf16.mxu0 %vm4975_vm0, %v4974_v0  ;;  %4241 = vmatpush3.bf16.msra.mxu0 %v4621_v15 }
 0xae4   : > { %4242 = vmatprep.subr.bf16.mxu0 %v4974_v0 }
 0xae7   : > { %4243 = vmatpush3.bf16.msra.mxu0 %v4623_v9 }
 0xae8   : > { %4254 = vmatprep.subr.bf16.mxu0 %v4974_v0 }
 0xbb5   : > { %v2200_v54 = vpop.f32.mrb[48].mxu0 }
 0xbb6   : > { %v2201_v55 = vadd.f32 %v3879_v53, %v2200_v54  ;;  %v4222_v56 = vpop.f32.mrb[49].mxu0 }
 0xbb7   : > { %v2203_v57 = vpop.f32.mrb[50].mxu0 }
 0xbb8   : > { %v5583_v58 = vadd.f32 %v2201_v55, %v5533_v5  ;;  %v2204_v59 = vadd.f32 %v3879_v53, %v2203_v57  ;;  %v4223_v60 = vpop.f32.mrb[51].mxu0 }
 0xbba   : > { %v5586_v61 = vadd.f32 %v2204_v59, %v5536_v8  ;;  %v2213_v62 = vsel %vm748_vm3, %v5583_v58, 0.0 }
 0xbbb   : > { %2214 = vadd.xlane.f32.xlu0 %v2213_v62 }
 0xbbc   : > { %v2216_v63 = vsel %vm748_vm3, %v5586_v61, 0.0 }
 0xbbd   : > { %2217 = vadd.xlane.f32.xlu1 %v2216_v63 }
 0xc48   : > { %v2215_v1 = vpop.xlane.xlu0 %2214 }
 0xc49   : > { %v2219_v3 = vmul.f32 0.03125, %v2215_v1 }
 0xc4a   : > { %v2218_v4 = vpop.xlane.xlu1 %2217 }
 0xc4b   : > { %v2221_v6 = vsub.f32 %v5583_v58, %v2219_v3  ;;  %v2220_v5 = vmul.f32 0.03125, %v2218_v4 }
 0xc4d   : > { %v2222_v7 = vsub.f32 %v5586_v61, %v2220_v5  ;;  %v2223_v10 = vmul.f32 %v2221_v6, %v2221_v6 }
 0xc4f   : > { %v2225_v8 = vsel %vm748_vm3, %v2223_v10, 0.0  ;;  %v2224_v11 = vmul.f32 %v2222_v7, %v2222_v7 }
 0xc50   : > { %2226 = vadd.xlane.f32.xlu0 %v2225_v8 }
 0xc51   : > { %v2228_v13 = vsel %vm748_vm3, %v2224_v11, 0.0 }
 0xc52   : > { %2229 = vadd.xlane.f32.xlu1 %v2228_v13 }
 0xcdd   : > { %v2227_v17 = vpop.xlane.xlu0 %2226 }
 0xcde   : > { %v2231_v18 = vmul.f32 0.03125, %v2227_v17 }
 0xcdf   : > { %v2230_v12 = vpop.xlane.xlu1 %2229 }
 0xce0   : > { %v2233_v19 = vadd.f32 1e-05, %v2231_v18  ;;  %v2232_v20 = vmul.f32 0.03125, %v2230_v12 }
 0xce2   : > { %4674 = vrsqrt.f32 %v2233_v19  ;;  %v2234_v21 = vadd.f32 1e-05, %v2232_v20 }
 0xce4   : > { %4676 = vrsqrt.f32 %v2234_v21 }
 0xcec   : > { %v4675_v22 = vpop.eup %4674 }
 0xced   : > { %v2237_v24 = vmul.f32 %v4675_v22, %v2221_v6 }
 0xcee   : > { %v4677_v25 = vpop.eup %4676 }
 0xcef   : > { %v2245_v26 = vmul.f32 %v3885_v23, %v2237_v24  ;;  %v2238_v27 = vmul.f32 %v4677_v25, %v2222_v7 }
 0xcf1   : > { %v2246_v30 = vmul.f32 %v3885_v23, %v2238_v27  ;;  %v2253_v31 = vadd.f32 %v3886_v28, %v2245_v26 }
 0xcf3   : > { %v2254_v29 = vadd.f32 %v3886_v28, %v2246_v30 }
 0xcf5   : > { %v2255_v33 = vpack.c.bf16 %v2254_v29, %v2253_v31 }
 0xcf7   : > { %4229 = vmatmul.mubr.msk.bf16.vlgmr.msra.gmra.mrb[40].mxu1 %vm748_vm3, %v2255_v33  ;;  %4245 = vmatmul.mubr.msk.bf16.vlgmr.msra.gmra.mrb[52].mxu0 %vm748_vm3, %v2255_v33 }
 0xcf8   : > { %4233 = vmatpush3.bf16.msra.mxu1 %v4624_v32  ;;  %4236 = vmatprep.mubr.msk.bf16.mxu1 %vm4975_vm0, %v4974_v0 }
 0xcf9   : > { %4234 = vmatprep.subr.bf16.mxu1 %v4974_v0  ;;  %4256 = vmatprep.mubr.msk.bf16.mxu0 %vm4975_vm0, %v4974_v0 }
 0xcfc   : > { %4235 = vmatpush3.bf16.msra.mxu1 %v4625_v34 }
 0xcfd   : > { %4248 = vmatprep.subr.bf16.mxu1 %v4974_v0 }
 0xcff   : > { %4237 = vmatmul.mubr.msk.bf16.vlgmr.msra.gmra.mrb[44].mxu1 %vm748_vm3, %v2255_v33 }
 0xd00   : > { %4250 = vmatprep.mubr.msk.bf16.mxu1 %vm4975_vm0, %v4974_v0 }
 0xdca   : > { %v2318_v36 = vpop.f32.mrb[40].mxu1  ;;  %v2450_v37 = vpop.f32.mrb[52].mxu0 }
 0xdcb   : > { %v4230_v39 = vpop.f32.mrb[41].mxu1  ;;  %v4246_v40 = vpop.f32.mrb[53].mxu0  ;;  %v2319_v42 = vadd.f32 %v3891_v35, %v2318_v36  ;;  %v5634_v47 = vadd.f32 %v3908_v38, %v2450_v37 }
 0xdcc   : > { %v2321_v2 = vpop.f32.mrb[42].mxu1  ;;  %v2453_v41 = vpop.f32.mrb[54].mxu0 }
 0xdcd   : > { %v2322_v43 = vadd.f32 %v3891_v35, %v2321_v2  ;;  %v5632_v44 = vadd.f32 %v3908_v38, %v2453_v41  ;;  %v4231_v45 = vpop.f32.mrb[43].mxu1  ;;  %v4247_v46 = vpop.f32.mrb[55].mxu0  ;;  %v2477_v1 = vpack.c.bf16 %v2319_v42, %v2319_v42  ;;  %v2533_v38 = vpack.c.bf16 %v5634_v47, %v5634_v47 }
 0xdcf   : > { %v4551_v48 = vpack.i.bf16 %v2322_v43, %v2319_v42  ;;  %v5638_v50 = vpack.i.bf16 %v5632_v44, %v5634_v47  ;;  %v2478_v3 = vpack.c.bf16 %v2322_v43, %v2322_v43  ;;  %v2534_v39 = vpack.c.bf16 %v5632_v44, %v5632_v44 }
 0xdd0   : > { %v3009_v41 = vsel %vm1540_vm5, %v2533_v38, 0 }
 0xdd1   : > { %4552 = vrot.lane.b32.xlu1 %v4551_v48, %s4976_s14  ;;  %v3055_v42 = vsel %vm1540_vm5, %v2534_v39, 0 }
 0xdd2   : > { %v2384_v51 = vpop.f32.mrb[44].mxu1 }
 0xdd3   : > { %v2385_v52 = vadd.f32 %v3899_v49, %v2384_v51  ;;  %v4238_v53 = vpop.f32.mrb[45].mxu1 }
 0xdd4   : > { %v2387_v54 = vpop.f32.mrb[46].mxu1 }
 0xdd5   : > { %v2388_v55 = vadd.f32 %v3899_v49, %v2387_v54  ;;  %v4239_v56 = vpop.f32.mrb[47].mxu1  ;;  %v2505_v57 = vpack.c.bf16 %v2385_v52, %v2385_v52 }
 0xdd7   : > { %v2545_v59 = vsel %vm1072_vm4, %v2505_v57, 0  ;;  %v4556_v60 = vpack.i.bf16 %v2388_v55, %v2385_v52  ;;  %v2506_v62 = vpack.c.bf16 %v2388_v55, %v2388_v55 }
 0xdd8   : > { %4249 = vmatpush3.bf16.xpose.msra.mxu1 %v2545_v59 }
 0xdd9   : > { %4557 = vrot.lane.b32.xlu1 %v4556_v60, %s4977_s20  ;;  %4547 = vrot.lane.b32.xlu0 %v4556_v60, %s4976_s14  ;;  %v2591_v63 = vsel %vm1072_vm4, %v2506_v62, 0 }
 0xdda   : > { %4255 = vmatpush3.bf16.xpose.msra.mxu0 %v2591_v63  ;;  %4260 = vmatprep.subr.bf16.mxu1 %v4974_v0 }
 0xddb   : > { %4266 = vmatprep.subr.bf16.mxu0 %v4974_v0 }
 0xddd   : > { %4562 = vrot.lane.b32.xlu1 %v4551_v48, %s4977_s20  ;;  %4567 = vrot.lane.b32.xlu0 %v4556_v60, %s4978_s13 }
 0xddf   : > { %4251 = vmatmul.mubr.msk.bf16.vlgmr.msra.gmra.mrb[48].mxu1 %vm1072_vm4, %v2477_v1 }
 0xde0   : > { %4262 = vmatprep.mubr.msk.bf16.mxu1 %vm4975_vm0, %v4974_v0 }
 0xde1   : > { %4572 = vrot.lane.b32.xlu1 %v4551_v48, %s4978_s13  ;;  %4257 = vmatmul.mubr.msk.bf16.vlgmr.msra.gmra.mrb[56].mxu0 %vm1072_vm4, %v2478_v3 }
 0xde2   : > { %4268 = vmatprep.mubr.msk.bf16.mxu0 %vm4975_vm0, %v4974_v0 }
 0xe43   : > { %v4553_v4 = vpop.permute.xlu1 %4552 }
 0xe44   : > { %v4554_v9 = vunpack.i.l.bf16 %v4553_v4  ;;  %v4555_v17 = vunpack.i.h.bf16 %v4553_v4 }
 0xe46   : > { %v2479_v20 = vpack.c.bf16 %v4554_v9, %v4554_v9  ;;  %v2480_v21 = vpack.c.bf16 %v4555_v17, %v4555_v17 }
 0xe4b   : > { %v4548_v6 = vpop.permute.xlu0 %4547  ;;  %v4558_v10 = vpop.permute.xlu1 %4557 }
 0xe4c   : > { %v4550_v5 = vunpack.i.h.bf16 %v4548_v6  ;;  %v4549_v7 = vunpack.i.l.bf16 %v4548_v6  ;;  %v4559_v13 = vunpack.i.l.bf16 %v4558_v10  ;;  %v4560_v16 = vunpack.i.h.bf16 %v4558_v10 }
 0xe4e   : > { %v2508_v8 = vpack.c.bf16 %v4550_v5, %v4550_v5  ;;  %v2507_v11 = vpack.c.bf16 %v4549_v7, %v4549_v7  ;;  %v2509_v18 = vpack.c.bf16 %v4559_v13, %v4559_v13  ;;  %v2510_v12 = vpack.c.bf16 %v4560_v16, %v4560_v16 }
 0xe4f   : > { %v4568_v19 = vpop.permute.xlu0 %4567  ;;  %v4563_v22 = vpop.permute.xlu1 %4562 }
 0xe50   : > { %v2637_v14 = vsel %vm1072_vm4, %v2507_v11, 0  ;;  %v2683_v15 = vsel %vm1072_vm4, %v2508_v8, 0  ;;  %v4569_v23 = vunpack.i.l.bf16 %v4568_v19  ;;  %v2729_v24 = vsel %vm1072_vm4, %v2509_v18, 0 }
 0xe51   : > { %4261 = vmatpush3.bf16.xpose.msra.mxu1 %v2637_v14  ;;  %4267 = vmatpush3.bf16.xpose.msra.mxu0 %v2683_v15  ;;  %v4570_v25 = vunpack.i.h.bf16 %v4568_v19  ;;  %v2775_v26 = vsel %vm1072_vm4, %v2510_v12, 0  ;;  %v4564_v27 = vunpack.i.l.bf16 %v4563_v22  ;;  %v4565_v28 = vunpack.i.h.bf16 %v4563_v22 }
 0xe52   : > { %4272 = vmatprep.subr.bf16.mxu1 %v4974_v0  ;;  %4278 = vmatprep.subr.bf16.mxu0 %v4974_v0  ;;  %v2511_v30 = vpack.c.bf16 %v4569_v23, %v4569_v23 }
 0xe53   : > { %v2512_v31 = vpack.c.bf16 %v4570_v25, %v4570_v25  ;;  %v2481_v29 = vpack.c.bf16 %v4564_v27, %v4564_v27  ;;  %v2482_v32 = vpack.c.bf16 %v4565_v28, %v4565_v28  ;;  %v4573_v33 = vpop.permute.xlu1 %4572 }
 0xe54   : > { %v2821_v34 = vsel %vm1072_vm4, %v2511_v30, 0  ;;  %v4574_v36 = vunpack.i.l.bf16 %v4573_v33  ;;  %v4575_v37 = vunpack.i.h.bf16 %v4573_v33 }
 0xe55   : > { %v2867_v35 = vsel %vm1072_vm4, %v2512_v31, 0 }
 0xe56   : > { %v2483_v40 = vpack.c.bf16 %v4574_v36, %v4574_v36  ;;  %v2484_v2 = vpack.c.bf16 %v4575_v37, %v4575_v37 }
 0xe58   : > { %4263 = vmatmul.mubr.msk.bf16.vlgmr.msra.gmra.mrb[52].mxu1 %vm1072_vm4, %v2479_v20  ;;  %4269 = vmatmul.mubr.msk.bf16.vlgmr.msra.gmra.mrb[60].mxu0 %vm1072_vm4, %v2480_v21 }
 0xe59   : > { %4273 = vmatpush3.bf16.xpose.msra.mxu1 %v2729_v24  ;;  %4279 = vmatpush3.bf16.xpose.msra.mxu0 %v2775_v26 }
 0xe5a   : > { %4274 = vmatprep.mubr.msk.bf16.mxu1 %vm4975_vm0, %v4974_v0  ;;  %4280 = vmatprep.mubr.msk.bf16.mxu0 %vm4975_vm0, %v4974_v0 }
 0xe5b   : > { %4284 = vmatprep.subr.bf16.mxu1 %v4974_v0  ;;  %4290 = vmatprep.subr.bf16.mxu0 %v4974_v0 }
 0xe60   : > { %4275 = vmatmul.mubr.msk.bf16.vlgmr.msra.gmra.mrb[56].mxu1 %vm1072_vm4, %v2481_v29  ;;  %4281 = vmatmul.mubr.msk.bf16.vlgmr.msra.gmra.mrb[64].mxu0 %vm1072_vm4, %v2482_v32 }
 0xe61   : > { %4285 = vmatpush3.bf16.xpose.msra.mxu1 %v2821_v34  ;;  %4291 = vmatpush3.bf16.xpose.msra.mxu0 %v2867_v35 }
 0xe62   : > { %4286 = vmatprep.mubr.msk.bf16.mxu1 %vm4975_vm0, %v4974_v0  ;;  %4292 = vmatprep.mubr.msk.bf16.mxu0 %vm4975_vm0, %v4974_v0 }
 0xe63   : > { %4296 = vmatprep.subr.bf16.mxu1 %v4974_v0  ;;  %4302 = vmatprep.subr.bf16.mxu0 %v4974_v0 }
 0xe68   : > { %4287 = vmatmul.mubr.msk.bf16.vlgmr.msra.gmra.mrb[60].mxu1 %vm1072_vm4, %v2483_v40  ;;  %4293 = vmatmul.mubr.msk.bf16.vlgmr.msra.gmra.mrb[68].mxu0 %vm1072_vm4, %v2484_v2 }
 0xe69   : > { %4297 = vmatpush3.bf16.msra.mxu1 %v3009_v41  ;;  %4303 = vmatpush3.bf16.msra.mxu0 %v3055_v42 }
 0xe6a   : > { %4298 = vmatprep.mubr.msk.bf16.mxu1 %vm4975_vm0, %v4974_v0  ;;  %4304 = vmatprep.mubr.msk.bf16.mxu0 %vm4975_vm0, %v4974_v0 }
 0xe6b   : > { %4308 = vmatprep.subr.bf16.mxu1 %v4974_v0  ;;  %4314 = vmatprep.subr.bf16.mxu0 %v4974_v0 }
 0xeb2   : > { %v2581_v43 = vpop.f32.mrb[48].mxu1 }
 0xeb3   : > { %v4252_v44 = vpop.f32.mrb[49].mxu1  ;;  %v2909_v45 = vsel %vm1072_vm4, %v2581_v43, -inf }
 0xeb4   : > { %2910 = vmax.xlane.f32.xlu0 %v2909_v45  ;;  %v2584_v46 = vpop.f32.mrb[50].mxu1  ;;  %v2627_v47 = vpop.f32.mrb[56].mxu0 }
 0xeb5   : > { %v4253_v48 = vpop.f32.mrb[51].mxu1  ;;  %v4258_v49 = vpop.f32.mrb[57].mxu0  ;;  %v2912_v51 = vsel %vm1072_vm4, %v2627_v47, -inf }
 0xeb6   : > { %2913 = vmax.xlane.f32.xlu1 %v2912_v51  ;;  %v2630_v52 = vpop.f32.mrb[58].mxu0 }
 0xeb7   : > { %v4259_v53 = vpop.f32.mrb[59].mxu0 }
 0xf2b   : > { %v2673_v54 = vpop.f32.mrb[52].mxu1  ;;  %v2719_v55 = vpop.f32.mrb[60].mxu0 }
 0xf2c   : > { %v4264_v56 = vpop.f32.mrb[53].mxu1  ;;  %v2915_v57 = vsel %vm1072_vm4, %v2673_v54, -inf  ;;  %v4270_v59 = vpop.f32.mrb[61].mxu0  ;;  %v2918_v3 = vsel %vm1072_vm4, %v2719_v55, -inf }
 0xf2d   : > { %2916 = vmax.xlane.f32.xlu0 %v2915_v57  ;;  %v2676_v60 = vpop.f32.mrb[54].mxu1  ;;  %v2722_v62 = vpop.f32.mrb[62].mxu0 }
 0xf2e   : > { %v4265_v63 = vpop.f32.mrb[55].mxu1  ;;  %v4271_v1 = vpop.f32.mrb[63].mxu0 }
 0xf31   : > { %2919 = vmax.xlane.f32.xlu0 %v2918_v3 }
 0xf33   : > { %v2765_v4 = vpop.f32.mrb[56].mxu1  ;;  %v2811_v6 = vpop.f32.mrb[64].mxu0 }
 0xf34   : > { %v4276_v5 = vpop.f32.mrb[57].mxu1  ;;  %v2921_v7 = vsel %vm1072_vm4, %v2765_v4, -inf  ;;  %v4282_v10 = vpop.f32.mrb[65].mxu0  ;;  %v2924_v11 = vsel %vm1072_vm4, %v2811_v6, -inf }
 0xf35   : > { %v2768_v8 = vpop.f32.mrb[58].mxu1  ;;  %2922 = vmax.xlane.f32.xlu0 %v2921_v7  ;;  %2925 = vmax.xlane.f32.xlu1 %v2924_v11  ;;  %v2814_v13 = vpop.f32.mrb[66].mxu0 }
 0xf36   : > { %v4277_v14 = vpop.f32.mrb[59].mxu1  ;;  %v4283_v15 = vpop.f32.mrb[67].mxu0 }
 0xf3b   : > { %v2857_v16 = vpop.f32.mrb[60].mxu1  ;;  %v5700_v9 = vpop.f32.mrb[68].mxu0 }
 0xf3c   : > { %v4288_v17 = vpop.f32.mrb[61].mxu1  ;;  %v2927_v18 = vsel %vm1072_vm4, %v2857_v16, -inf  ;;  %v4294_v12 = vpop.f32.mrb[69].mxu0  ;;  %v2930_v20 = vsel %vm1072_vm4, %v5700_v9, -inf }
 0xf3d   : > { %v2860_v19 = vpop.f32.mrb[62].mxu1  ;;  %2928 = vmax.xlane.f32.xlu0 %v2927_v18  ;;  %2931 = vmax.xlane.f32.xlu1 %v2930_v20  ;;  %v2906_v21 = vpop.f32.mrb[70].mxu0 }
 0xf3e   : > { %v4289_v22 = vpop.f32.mrb[63].mxu1  ;;  %v4295_v23 = vpop.f32.mrb[71].mxu0 }
 0xf41   : > { %v2911_v24 = vpop.xlane.xlu0 %2910 }
 0xf42   : > { %v2933_v25 = vsub.f32 %v2581_v43, %v2911_v24 }
 0xf43   : > { %v2914_v26 = vpop.xlane.xlu1 %2913 }
 0xf44   : > { %v2941_v27 = vmul.f32 1.442695, %v2933_v25  ;;  %v2934_v28 = vsub.f32 %v2627_v47, %v2914_v26 }
 0xf46   : > { %4678 = vpow2.f32 %v2941_v27  ;;  %v2943_v30 = vmul.f32 1.442695, %v2934_v28 }
 0xf48   : > { %4680 = vpow2.f32 %v2943_v30 }
 0xf50   : > { %v4679_v31 = vpop.eup %4678 }
 0xf51   : > { %v2957_v29 = vsel %vm1072_vm4, %v4679_v31, 0.0 }
 0xf52   : > { %v4681_v32 = vpop.eup %4680  ;;  %2958 = vadd.xlane.f32.xlu0 %v2957_v29 }
 0xf53   : > { %v2960_v33 = vsel %vm1072_vm4, %v4681_v32, 0.0 }
 0xf54   : > { %2961 = vadd.xlane.f32.xlu1 %v2960_v33 }
 0xfba   : > { %v2917_v34 = vpop.xlane.xlu0 %2916 }
 0xfbb   : > { %v2935_v35 = vsub.f32 %v2673_v54, %v2917_v34 }
 0xfbd   : > { %v2945_v36 = vmul.f32 1.442695, %v2935_v35 }
 0xfbe   : > { %v2920_v37 = vpop.xlane.xlu0 %2919 }
 0xfbf   : > { %4682 = vpow2.f32 %v2945_v36  ;;  %v2936_v38 = vsub.f32 %v2719_v55, %v2920_v37 }
 0xfc1   : > { %v2947_v39 = vmul.f32 1.442695, %v2936_v38 }
 0xfc2   : > { %v2923_v40 = vpop.xlane.xlu0 %2922  ;;  %v2926_v41 = vpop.xlane.xlu1 %2925 }
 0xfc3   : > { %4684 = vpow2.f32 %v2947_v39  ;;  %v2937_v2 = vsub.f32 %v2765_v4, %v2923_v40  ;;  %v2938_v42 = vsub.f32 %v2811_v6, %v2926_v41 }
 0xfc5   : > { %v2949_v43 = vmul.f32 1.442695, %v2937_v2  ;;  %v2951_v44 = vmul.f32 1.442695, %v2938_v42 }
 0xfc7   : > { %4686 = vpow2.f32 %v2949_v43 }
 0xfc8   : > { %4688 = vpow2.f32 %v2951_v44 }
 0xfc9   : > { %v4683_v45 = vpop.eup %4682 }
 0xfca   : > { %v2929_v46 = vpop.xlane.xlu0 %2928  ;;  %v2963_v47 = vsel %vm1072_vm4, %v4683_v45, 0.0  ;;  %v2932_v60 = vpop.xlane.xlu1 %2931 }
 0xfcb   : > { %v2939_v48 = vsub.f32 %v2857_v16, %v2929_v46  ;;  %2964 = vadd.xlane.f32.xlu0 %v2963_v47  ;;  %v2940_v10 = vsub.f32 %v5700_v9, %v2932_v60 }
 0xfcd   : > { %v4685_v49 = vpop.eup %4684  ;;  %v2953_v51 = vmul.f32 1.442695, %v2939_v48  ;;  %v2955_v8 = vmul.f32 1.442695, %v2940_v10 }
 0xfce   : > { %v2966_v52 = vsel %vm1072_vm4, %v4685_v49, 0.0 }
 0xfcf   : > { %4690 = vpow2.f32 %v2953_v51  ;;  %2967 = vadd.xlane.f32.xlu1 %v2966_v52 }
 0xfd1   : > { %v5709_v53 = vpop.eup %4686 }
 0xfd2   : > { %v5711_v54 = vpop.eup %4688  ;;  %v2969_v55 = vsel %vm1072_vm4, %v5709_v53, 0.0 }
 0xfd3   : > { %2970 = vadd.xlane.f32.xlu0 %v2969_v55  ;;  %v2972_v56 = vsel %vm1072_vm4, %v5711_v54, 0.0 }
 0xfd4   : > { %2973 = vadd.xlane.f32.xlu1 %v2972_v56 }
 0xfd9   : > { %v5717_v57 = vpop.eup %4690 }
 0xfda   : > { %v2975_v59 = vsel %vm1072_vm4, %v5717_v57, 0.0 }
 0xfdb   : > { %2976 = vadd.xlane.f32.xlu0 %v2975_v59 }
 0xfdf   : > { %v2959_v62 = vpop.xlane.xlu0 %2958 }
 0xfe0   : > { %4692 = vrcp.f32 %v2959_v62 }
 0xfe1   : > { %v2962_v63 = vpop.xlane.xlu1 %2961 }
 0xfe2   : > { %4694 = vrcp.f32 %v2962_v63 }
 0xfe3   : > { %4696 = vpow2.f32 %v2955_v8 }
 0xfe5   : > { %4582 = vrot.lane.b32.xlu1 %v5638_v50, %s4977_s20 }
 0xfea   : > { %v4693_v1 = vpop.eup %4692 }
 0xfeb   : > { %v2989_v3 = vmul.f32 %v4693_v1, %v4679_v31 }
 0xfec   : > { %v4695_v4 = vpop.eup %4694 }
 0xfed   : > { %v2990_v6 = vmul.f32 %v4695_v4, %v4681_v32  ;;  %v2997_v5 = vpack.c.bf16 %v2989_v3, %v2989_v3  ;;  %v5732_v11 = vpop.eup %4696 }
 0xfee   : > { %v2978_v13 = vsel %vm1072_vm4, %v5732_v11, 0.0 }
 0xfef   : > { %4299 = vmatmul.mubr.msk.bf16.vlgmr.msra.gmra.mrb[64].mxu1 %vm1072_vm4, %v2997_v5  ;;  %v2998_v7 = vpack.c.bf16 %v2990_v6, %v2990_v6  ;;  %v4626_v5 = vld [vmem:[%s5901_s11 + $0x10] sm:$0xff]  }
 0xff0   : > { %4310 = vmatprep.mubr.msk.bf16.mxu1 %vm4975_vm0, %v4974_v0 }
 0xff1   : > { %4305 = vmatmul.mubr.msk.bf16.vlgmr.msra.gmra.mrb[72].mxu0 %vm1072_vm4, %v2998_v7  ;;  %4577 = vrot.lane.b32.xlu0 %v5638_v50, %s4976_s14  ;;  %s5979_s14 = sld [smem:[#allocation36_spill]] }
 0xff2   : > { %4316 = vmatprep.mubr.msk.bf16.mxu0 %vm4975_vm0, %v4974_v0 }
 0xff7   : > { %s5848_s20 = scalar_lea.hbm %s5979_s14, %s3961_s0 }
0x1009   : > { %2979 = vadd.xlane.f32.xlu1 %v2978_v13 }
0x101a   : > { %4587 = vrot.lane.b32.xlu1 %v5638_v50, %s4978_s13 }
0x1058   : > { %v2965_v14 = vpop.xlane.xlu0 %2964 }
0x1059   : > { %4698 = vrcp.f32 %v2965_v14 }
0x105c   : > { %v2968_v15 = vpop.xlane.xlu1 %2967 }
0x105d   : > { %4700 = vrcp.f32 %v2968_v15 }
0x1060   : > { %v2971_v16 = vpop.xlane.xlu0 %2970 }
0x1061   : > { %v2974_v17 = vpop.xlane.xlu1 %2973  ;;  %4702 = vrcp.f32 %v2971_v16 }
0x1062   : > { %4704 = vrcp.f32 %v2974_v17 }
0x1063   : > { %v4699_v12 = vpop.eup %4698 }
0x1064   : > { %v2991_v25 = vmul.f32 %v4699_v12, %v4683_v45 }
0x1065   : > { %v4583_v9 = vpop.permute.xlu1 %4582 }
0x1066   : > { %v4585_v21 = vunpack.i.h.bf16 %v4583_v9  ;;  %v4584_v22 = vunpack.i.l.bf16 %v4583_v9  ;;  %v2999_v33 = vpack.c.bf16 %v2991_v25, %v2991_v25 }
0x1067   : > { %v4701_v19 = vpop.eup %4700 }
0x1068   : > { %v2977_v18 = vpop.xlane.xlu0 %2976  ;;  %v2992_v26 = vmul.f32 %v4701_v19, %v4685_v49  ;;  %v2538_v28 = vpack.c.bf16 %v4585_v21, %v4585_v21  ;;  %v2537_v30 = vpack.c.bf16 %v4584_v22, %v4584_v22 }
0x1069   : > { %4706 = vrcp.f32 %v2977_v18 }
0x106a   : > { %v3000_v34 = vpack.c.bf16 %v2992_v26, %v2992_v26  ;;  %v3193_v36 = vsel %vm1540_vm5, %v2537_v30, 0  ;;  %v3239_v37 = vsel %vm1540_vm5, %v2538_v28, 0 }
0x106b   : > { %v4703_v32 = vpop.eup %4702 }
0x106c   : > { %v4578_v20 = vpop.permute.xlu0 %4577  ;;  %v4705_v35 = vpop.eup %4704  ;;  %v2993_v38 = vmul.f32 %v4703_v32, %v5709_v53 }
0x106d   : > { %v4580_v23 = vunpack.i.h.bf16 %v4578_v20  ;;  %v4579_v24 = vunpack.i.l.bf16 %v4578_v20  ;;  %v2994_v39 = vmul.f32 %v4705_v35, %v5711_v54 }
0x106e   : > { %v3001_v40 = vpack.c.bf16 %v2993_v38, %v2993_v38 }
0x106f   : > { %v2536_v50 = vpack.c.bf16 %v4580_v23, %v4580_v23  ;;  %v2535_v27 = vpack.c.bf16 %v4579_v24, %v4579_v24  ;;  %v3002_v2 = vpack.c.bf16 %v2994_v39, %v2994_v39  ;;  %v4627_v23 = vld [vmem:[%s5901_s11 + $0x18] sm:$0xff]  }
0x1071   : > { %v3101_v31 = vsel %vm1540_vm5, %v2535_v27, 0  ;;  %v3147_v29 = vsel %vm1540_vm5, %v2536_v50, 0 }
0x1072   : > { %4309 = vmatpush3.bf16.msra.mxu1 %v3101_v31  ;;  %4315 = vmatpush3.bf16.msra.mxu0 %v3147_v29 }
0x1073   : > { %4320 = vmatprep.subr.bf16.mxu1 %v4974_v0  ;;  %4326 = vmatprep.subr.bf16.mxu0 %v4974_v0  ;;  %v4707_v42 = vpop.eup %4706 }
0x1074   : > { %v2995_v46 = vmul.f32 %v4707_v42, %v5717_v57 }
0x1075   : > { %4311 = vmatmul.mubr.msk.bf16.vlgmr.msra.gmra.mrb[68].mxu1 %vm1072_vm4, %v2999_v33  ;;  %4317 = vmatmul.mubr.msk.bf16.vlgmr.msra.gmra.mrb[76].mxu0 %vm1072_vm4, %v3000_v34 }
0x1076   : > { %4321 = vmatpush3.bf16.msra.mxu1 %v3193_v36  ;;  %4327 = vmatpush3.bf16.msra.mxu0 %v3239_v37  ;;  %v3003_v53 = vpack.c.bf16 %v2995_v46, %v2995_v46 }
0x1077   : > { %4322 = vmatprep.mubr.msk.bf16.mxu1 %vm4975_vm0, %v4974_v0  ;;  %4328 = vmatprep.mubr.msk.bf16.mxu0 %vm4975_vm0, %v4974_v0 }
0x1078   : > { %4332 = vmatprep.subr.bf16.mxu1 %v4974_v0  ;;  %4338 = vmatprep.subr.bf16.mxu0 %v4974_v0 }
0x107d   : > { %4323 = vmatmul.mubr.msk.bf16.vlgmr.msra.gmra.mrb[72].mxu1 %vm1072_vm4, %v3001_v40  ;;  %4329 = vmatmul.mubr.msk.bf16.vlgmr.msra.gmra.mrb[80].mxu0 %vm1072_vm4, %v3002_v2 }
0x107e   : > { %4334 = vmatprep.mubr.msk.bf16.mxu1 %vm4975_vm0, %v4974_v0  ;;  %4340 = vmatprep.mubr.msk.bf16.mxu0 %vm4975_vm0, %v4974_v0 }
0x1096   : > { %v2980_v41 = vpop.xlane.xlu1 %2979 }
0x1097   : > { %4708 = vrcp.f32 %v2980_v41 }
0x109a   : > { %v4588_v43 = vpop.permute.xlu1 %4587 }
0x109b   : > { %v4590_v44 = vunpack.i.h.bf16 %v4588_v43  ;;  %v4589_v45 = vunpack.i.l.bf16 %v4588_v43 }
0x109d   : > { %v2540_v47 = vpack.c.bf16 %v4590_v44, %v4590_v44  ;;  %v2539_v48 = vpack.c.bf16 %v4589_v45, %v4589_v45 }
0x109f   : > { %v3285_v49 = vsel %vm1540_vm5, %v2539_v48, 0  ;;  %v3331_v51 = vsel %vm1540_vm5, %v2540_v47, 0  ;;  %v3933_v47 = vld [vmem:[%s5902_s12 + $0x1] ss:$0 sm:$0xff] }
0x10a0   : > { %4333 = vmatpush3.bf16.msra.mxu1 %v3285_v49  ;;  %4339 = vmatpush3.bf16.msra.mxu0 %v3331_v51 }
0x10a1   : > { %v4709_v52 = vpop.eup %4708  ;;  %4344 = vmatprep.subr.bf16.mxu1 %v4974_v0  ;;  %4352 = vmatprep.subr.bf16.mxu0 %v4974_v0 }
0x10a2   : > { %v2996_v54 = vmul.f32 %v4709_v52, %v5732_v11 }
0x10a3   : > { %4335 = vmatmul.mubr.msk.bf16.vlgmr.msra.gmra.mrb[76].mxu1 %vm1072_vm4, %v3003_v53 }
0x10a4   : > { %v3004_v55 = vpack.c.bf16 %v2996_v54, %v2996_v54  ;;  %4348 = vmatprep.mubr.msk.bf16.mxu1 %vm4975_vm0, %v4974_v0  ;;  %4345 = vmatpush3.bf16.msra.mxu1 %v4626_v5 }
0x10a5   : > { %4346 = vmatprep.subr.bf16.mxu1 %v4974_v0 }
0x10a6   : > { %4341 = vmatmul.mubr.msk.bf16.vlgmr.msra.gmra.mrb[84].mxu0 %vm1072_vm4, %v3004_v55 }
0x10a7   : > { %4356 = vmatprep.mubr.msk.bf16.mxu0 %vm4975_vm0, %v4974_v0 }
0x10a8   : > { %4347 = vmatpush3.bf16.msra.mxu1 %v4627_v23  ;;  %v3940_v23 = vld [vmem:[%s5974_s18 + $0x1] ss:$0 sm:$0xff] }
0x10a9   : > { %4360 = vmatprep.subr.bf16.mxu1 %v4974_v0 }
0x10c2   : > { %v3045_v56 = vpop.f32.mrb[64].mxu1 }
0x10c3   : > { %v4300_v57 = vpop.f32.mrb[65].mxu1 }
0x10c4   : > { %v3048_v59 = vpop.f32.mrb[66].mxu1  ;;  %v3091_v60 = vpop.f32.mrb[72].mxu0 }
0x10c5   : > { %v4301_v62 = vpop.f32.mrb[67].mxu1  ;;  %v4306_v63 = vpop.f32.mrb[73].mxu0 }
0x10c6   : > { %v3094_v1 = vpop.f32.mrb[74].mxu0 }
0x10c7   : > { %v4307_v3 = vpop.f32.mrb[75].mxu0 }
0x1148   : > { %v3137_v4 = vpop.f32.mrb[68].mxu1  ;;  %v3183_v6 = vpop.f32.mrb[76].mxu0 }
0x1149   : > { %v4591_v7 = vpack.i.bf16 %v3183_v6, %v3137_v4  ;;  %v4312_v10 = vpop.f32.mrb[69].mxu1  ;;  %v4318_v8 = vpop.f32.mrb[77].mxu0 }
0x114a   : > { %v3140_v11 = vpop.f32.mrb[70].mxu1  ;;  %v3186_v13 = vpop.f32.mrb[78].mxu0  ;;  %v4629_v10 = vld [vmem:[#allocation11 + $0x18] sm:$0xff]   ;;  %v4630_v8 = vld [vmem:[%s5907_s17 + $0x20] sm:$0xff]  }
0x114b   : > { %v4313_v14 = vpop.f32.mrb[71].mxu1  ;;  %4592 = vrot.lane.b32.xlu1 %v4591_v7, %s4979_s24  ;;  %v4319_v15 = vpop.f32.mrb[79].mxu0  ;;  %v4628_v7 = vld [vmem:[#allocation11 + $0x10] sm:$0xff]   ;;  %s4886_s24 = sshll.u32 %s4982_s1, 4  ;;  %s4887_s24 = int_to_ptr.vmem [resolvable:$false] %s4886_s24 }
0x114c   : > { %4353 = vmatpush3.bf16.msra.mxu0 %v4628_v7  ;;  %v4631_v11 = vld [vmem:[%s5907_s17 + $0x28] sm:$0xff]  }
0x114d   : > { %4354 = vmatprep.subr.bf16.mxu0 %v4974_v0 }
0x1150   : > { %v3229_v16 = vpop.f32.mrb[72].mxu1  ;;  %v3275_v17 = vpop.f32.mrb[80].mxu0  ;;  %4355 = vmatpush3.bf16.msra.mxu0 %v4629_v10 }
0x1151   : > { %v4596_v18 = vpack.i.bf16 %v3275_v17, %v3229_v16  ;;  %v4324_v9 = vpop.f32.mrb[73].mxu1  ;;  %v4330_v12 = vpop.f32.mrb[81].mxu0 }
0x1152   : > { %v3232_v19 = vpop.f32.mrb[74].mxu1  ;;  %v3278_v20 = vpop.f32.mrb[82].mxu0 }
0x1153   : > { %v4325_v21 = vpop.f32.mrb[75].mxu1  ;;  %4597 = vrot.lane.b32.xlu0 %v4596_v18, %s4980_s16  ;;  %v4331_v22 = vpop.f32.mrb[83].mxu0  ;;  %v3939_v19 = vld [vmem:[%s5973_s23 + $0x1] ss:$0 sm:$0xff]  ;;  %s5977_s16 = sld [smem:[#allocation20_spill]] }
0x1159   : > { %s682_s27 = sand.u32 1, %s5977_s16   ;;  %s4888_s16 = scalar_lea.vmem %s4887_s24, 32 }
0x115a   : > { %s683_s30 = scalar_lea.vmem [#allocation13], %s682_s27  ;;  %s3693_s13 = scalar_lea.sflag [#allocation4], %s682_s27 }
0x115b   : > { %s3705_s19 = sshll.u32 %s683_s30, 4  ;;  %s5850_s19 = int_to_ptr.vmem [resolvable:$true] %s3705_s19 }
0x115c   : > { %s4882_s25 = scalar_lea.vmem %s5850_s19, 16  ;;  %p4889_p5 = scmp.lt.s32.totalorder %s5850_s19, %s4887_s24 }
0x115d   : > { %p4883_p13 = scmp.ne.s32.totalorder %s5850_s19, %s4882_s25  ;;  %p4890_p10 = scmp.lt.s32.totalorder %s4888_s16, %s4882_s25 }
0x115f   : > { %p4884_p6 = pnand %p4883_p13, %p5980_p1  ;;  %p4891_p0 = por %p4890_p10, %p4889_p5 }
0x1161   : > { %p4885_p9 = pneg %p4884_p6 }
0x1163   : > { %p4892_p2 = pnand %p4891_p0, %p4885_p9 }
0x1176   : > { %v3321_v24 = vpop.f32.mrb[76].mxu1 }
0x1177   : > { %v4336_v25 = vpop.f32.mrb[77].mxu1 }
0x1178   : > { %v3324_v26 = vpop.f32.mrb[78].mxu1 }
0x1179   : > { %v4337_v50 = vpop.f32.mrb[79].mxu1  ;;  %v3367_v27 = vpop.f32.mrb[84].mxu0 }
0x117a   : > { %v4601_v28 = vpack.i.bf16 %v3367_v27, %v3321_v24  ;;  %v4342_v30 = vpop.f32.mrb[85].mxu0  ;;  %v4632_v27 = vld [vmem:[%s5907_s17 + $0x30] sm:$0xff]  }
0x117b   : > { %v3370_v31 = vpop.f32.mrb[86].mxu0  ;;  %v3942_v30 = vld [vmem:[%s5975_s3 + $0x1] ss:$0 sm:$0xff] }
0x117c   : > { %4602 = vrot.lane.b32.xlu1 %v4601_v28, %s4981_s26  ;;  %v4343_v29 = vpop.f32.mrb[87].mxu0  ;;  %v4633_v28 = vld [vmem:[%s5907_s17 + $0x38] sm:$0xff]  }
0x11bd   : > { %v4593_v32 = vpop.permute.xlu1 %4592 }
0x11be   : > { %v4595_v34 = vunpack.i.h.bf16 %v4593_v32  ;;  %v4594_v35 = vunpack.i.l.bf16 %v4593_v32 }
0x11c0   : > { %v3398_v39 = vsel %vm1072_vm4, %v3091_v60, %v4595_v34  ;;  %v3397_v40 = vsel %vm1072_vm4, %v3045_v56, %v4594_v35 }
0x11c5   : > { %v4598_v33 = vpop.permute.xlu0 %4597 }
0x11c6   : > { %v4600_v36 = vunpack.i.h.bf16 %v4598_v33  ;;  %v4599_v37 = vunpack.i.l.bf16 %v4598_v33 }
0x11c8   : > { %v3400_v42 = vsel %vm1932_vm6, %v3398_v39, %v4600_v36  ;;  %v3399_v43 = vsel %vm1932_vm6, %v3397_v40, %v4599_v37 }
0x11ee   : > { %v4603_v38 = vpop.permute.xlu1 %4602 }
0x11ef   : > { %v4605_v2 = vunpack.i.h.bf16 %v4603_v38  ;;  %v4604_v41 = vunpack.i.l.bf16 %v4603_v38 }
0x11f1   : > { %v3402_v44 = vsel %vm1935_vm7, %v3400_v42, %v4605_v2  ;;  %v3401_v45 = vsel %vm1935_vm7, %v3399_v43, %v4604_v41 }
0x11f2   : > { %v3403_v46 = vpack.c.bf16 %v3402_v44, %v3401_v45 }
0x11f4   : > { %4349 = vmatmul.mubr.msk.bf16.vlgmr.msra.gmra.mrb[80].mxu1 %vm748_vm3, %v3403_v46 }
0x11f5   : > { %4368 = vmatprep.mubr.msk.bf16.mxu1 %vm4975_vm0, %v4974_v0  ;;  %4361 = vmatpush3.bf16.msra.mxu1 %v4630_v8 }
0x11f6   : > { %4362 = vmatprep.subr.bf16.mxu1 %v4974_v0 }
0x11f9   : > { %4363 = vmatpush3.bf16.msra.mxu1 %v4631_v11 }
0x11fa   : > { %4364 = vmatprep.subr.bf16.mxu1 %v4974_v0 }
0x11fd   : > { %4365 = vmatpush3.bf16.msra.mxu1 %v4632_v27 }
0x11fe   : > { %4366 = vmatprep.subr.bf16.mxu1 %v4974_v0  ;;  %v3955_v0 = vld [vmem:[%s5976_s28 + $0x1] ss:$0 sm:$0xff] }
0x1201   : > { %4367 = vmatpush3.bf16.msra.mxu1 %v4633_v28 }
0x12c7   : > { %v3466_v48 = vpop.f32.mrb[80].mxu1 }
0x12c8   : > { %v3467_v49 = vadd.f32 %v3933_v47, %v3466_v48  ;;  %v4350_v51 = vpop.f32.mrb[81].mxu1 }
0x12c9   : > { %v3469_v52 = vpop.f32.mrb[82].mxu1 }
0x12ca   : > { %v5796_v53 = vadd.f32 %v3467_v49, %v5583_v58  ;;  %v3470_v54 = vadd.f32 %v3933_v47, %v3469_v52  ;;  %v4351_v55 = vpop.f32.mrb[83].mxu1 }
0x12cc   : > { %v5799_v56 = vadd.f32 %v3470_v54, %v5586_v61  ;;  %v3479_v57 = vsel %vm748_vm3, %v5796_v53, 0.0 }
0x12cd   : > { %3480 = vadd.xlane.f32.xlu0 %v3479_v57 }
0x12ce   : > { %v3482_v59 = vsel %vm748_vm3, %v5799_v56, 0.0 }
0x12cf   : > { %3483 = vadd.xlane.f32.xlu1 %v3482_v59 }
0x135a   : > { %v3481_v60 = vpop.xlane.xlu0 %3480 }
0x135b   : > { %v3485_v62 = vmul.f32 0.03125, %v3481_v60 }
0x135c   : > { %v3484_v63 = vpop.xlane.xlu1 %3483 }
0x135d   : > { %v3487_v1 = vsub.f32 %v5796_v53, %v3485_v62  ;;  %v3486_v58 = vmul.f32 0.03125, %v3484_v63 }
0x135f   : > { %v3488_v3 = vsub.f32 %v5799_v56, %v3486_v58  ;;  %v3489_v4 = vmul.f32 %v3487_v1, %v3487_v1 }
0x1361   : > { %v3491_v61 = vsel %vm748_vm3, %v3489_v4, 0.0  ;;  %v3490_v6 = vmul.f32 %v3488_v3, %v3488_v3 }
0x1362   : > { %3492 = vadd.xlane.f32.xlu0 %v3491_v61 }
0x1363   : > { %v3494_v5 = vsel %vm748_vm3, %v3490_v6, 0.0 }
0x1366   : > { %3495 = vadd.xlane.f32.xlu0 %v3494_v5 }
0x13ef   : > { %v3493_v13 = vpop.xlane.xlu0 %3492 }
0x13f0   : > { %v3497_v14 = vmul.f32 0.03125, %v3493_v13 }
0x13f2   : > { %v3499_v15 = vadd.f32 1e-05, %v3497_v14 }
0x13f3   : > { %v3496_v16 = vpop.xlane.xlu0 %3495 }
0x13f4   : > { %4710 = vrsqrt.f32 %v3499_v15  ;;  %v3498_v17 = vmul.f32 0.03125, %v3496_v16 }
0x13f6   : > { %v3500_v18 = vadd.f32 1e-05, %v3498_v17 }
0x13f8   : > { %4712 = vrsqrt.f32 %v3500_v18 }
0x13fe   : > { %v4711_v9 = vpop.eup %4710 }
0x13ff   : > { %v3503_v12 = vmul.f32 %v4711_v9, %v3487_v1 }
0x1401   : > { %v3511_v21 = vmul.f32 %v3939_v19, %v3503_v12 }
0x1402   : > { %v4713_v20 = vpop.eup %4712 }
0x1403   : > { %v3504_v22 = vmul.f32 %v4713_v20, %v3488_v3  ;;  %v3519_v25 = vadd.f32 %v3940_v23, %v3511_v21 }
0x1405   : > { %v3512_v24 = vmul.f32 %v3939_v19, %v3504_v22 }
0x1407   : > { %v3520_v26 = vadd.f32 %v3940_v23, %v3512_v24 }
0x1409   : > { %v3521_v50 = vpack.c.bf16 %v3520_v26, %v3519_v25 }
0x140b   : > { %4357 = vmatmul.mubr.msk.bf16.vlgmr.msra.gmra.mrb[88].mxu0 %vm748_vm3, %v3521_v50 }
0x14de   : > { %v3584_v31 = vpop.f32.mrb[88].mxu0 }
0x14df   : > { %v3585_v29 = vadd.f32 %v3942_v30, %v3584_v31  ;;  %v4358_v32 = vpop.f32.mrb[89].mxu0 }
0x14e0   : > { %v3587_v33 = vpop.f32.mrb[90].mxu0 }
0x14e1   : > { %v3588_v34 = vadd.f32 %v3942_v30, %v3587_v33  ;;  %v4359_v35 = vpop.f32.mrb[91].mxu0  ;;  %v3591_v36 = vmax.f32 %v3585_v29, 0.0 }
0x14e3   : > { %v3592_v37 = vmax.f32 %v3588_v34, 0.0 }
0x14e5   : > { %v3593_v38 = vpack.c.bf16 %v3592_v37, %v3591_v36 }
0x14e7   : > { %4369 = vmatmul.mubr.msk.bf16.vlgmr.msra.gmra.mrb[84].mxu1 %vm2162_vm8, %v3593_v38 }
0x15ba   : > { %v3672_v39 = vpop.f32.mrb[84].mxu1 }
0x15bb   : > { %v3673_v40 = vadd.f32 %v3955_v0, %v3672_v39  ;;  %v4370_v2 = vpop.f32.mrb[85].mxu1 }
0x15bc   : > { %v3675_v41 = vpop.f32.mrb[86].mxu1 }
0x15bd   : > { %v3679_v42 = vadd.f32 %v3673_v40, %v5796_v53  ;;  %v3676_v43 = vadd.f32 %v3955_v0, %v3675_v41  ;;  %v4371_v44 = vpop.f32.mrb[87].mxu1 }
0x15bf   : > { %v3680_v45 = vadd.f32 %v3676_v43, %v5799_v56  ;;  %v3681_v46 = vsel %vm748_vm3, %v3679_v42, 0.0 }
0x15c1   : > { %v3682_v47 = vsel %vm748_vm3, %v3680_v45, 0.0 }
0x15c2   : > { %v3683_v48 = vadd.f32 %v3682_v47, %v3681_v46 }
0x15c4   : > { %v3684_v49 = vrot.slane %v3683_v48, 4 }
0x15c6   : > { %v3685_v51 = vadd.f32 %v3684_v49, %v3683_v48 }
0x15c8   : > { %v3686_v52 = vrot.slane %v3685_v51, 2 }
0x15ca   : > { %v3687_v54 = vadd.f32 %v3686_v52, %v3685_v51 }
0x15cc   : > { %v3688_v55 = vrot.slane %v3687_v54, 1 }
0x15ce   : > { %v3689_v53 = vadd.f32 %v3688_v55, %v3687_v54 }
0x15d0   : > { %3691 = vst.msk [vmem:[%s683_s30] sm:$0x1] %vm3690_vm9, %v3689_v53 }
0x15d1   : > { %4895 = shalt.err (!%p4892_p2)
}
0x15d2   : > { %s4896_s26 = scalar_lea.hbm %s5848_s20, 16  ;;  %s4900_s0 = scalar_lea.hbm %s5979_s14, 32 }
0x15d3   : > { %p4897_p3 = scmp.ne.s32.totalorder %s5848_s20, %s4896_s26  ;;  %p4901_p7 = scmp.lt.u32.totalorder %s5848_s20, %s5979_s14 }
0x15d4   : > { %p4902_p8 = scmp.lt.u32.totalorder %s4900_s0, %s4896_s26  ;;  %p4904_p13 = scmp.lt.u32.totalorder %s4896_s26, %s5848_s20 }
0x15d5   : > { %p4898_p4 = pnand %p4897_p3, %p5980_p1 }
0x15d6   : > { %p4903_p11 = por %p4902_p8, %p4901_p7 }
0x15d7   : > { %p4899_p12 = pneg %p4898_p4 }
0x15d8   : > { %p4905_p6 = por %p4904_p13, %p4903_p11 }
0x15da   : > { %p4906_p9 = pnand %p4905_p6, %p4899_p12 }
0x15dc   : > { %4909 = shalt.err (!%p4906_p9)
}
0x15dd   : > { %4396 = dma.vmem_to_hbm [thread:$0]  (%p5980_p1), %s5850_s19, 16, %s5848_s20, %s3693_s13  }
0x15de PF: > { %s5981_s21 = sld [smem:[#allocation22_spill]]  ;;  %s5982_s25 = sld [smem:[#allocation19_spill]] }
0x15df   : > { %s5983_s1 = sld [smem:[#allocation26_spill]] }
0x15e4   : > { %p4433_p5 = scmp.ge.s32.totalorder %s5981_s21, 2  ;;  %s3717_s24 = sand.u32 1, %s5982_s25  }
0x15e5   : > { %p5984_p10 = scmp.ne.s32.totalorder %s5983_s1, 0  ;;  %s3718_s16 = scalar_lea.sflag [#allocation4], %s3717_s24 }
0x15e7   : > { %p4418_p0 = pnand %p4433_p5, %p5984_p10 }
0x15e9   : > { %4943 = dma.done.wait (!%p4418_p0), %s3718_s16, 16  }
0x15ea   : > { %4945 = vsyncadd (!%p4418_p0), %s3718_s16, 4294967280  ;;  %s5985_s21 = sld [smem:[#allocation23_spill]]  ;;  %s5986_s0 = sld [smem:[#allocation20_spill]] }
0x15eb   : > { %s5987_s30 = sld [smem:[#allocation21_spill]]  ;;  %s5988_s20 = sld [smem:[#allocation24_spill]] }
0x15f0   : > { %p33_p2 = scmp.ge.s32.totalorder %s5985_s21, 4  }
0x15f2   :  { %35 = sbr.rel (!%p33_p2) target bundleno = 18 (0x12), region = 172 }
0x15f9   :  { %3722 = vsyncpa [#allocation3], 1 }
0x15fa   :  { %3724 = vsyncpa [#allocation3 + $0x1], 1 }
0x15fb   :  { %3725 = vsyncpa [#allocation6], 1 }
0x15fc   :  { %3726 = vsyncpa [#allocation9], 1 }
0x15fd   :  { %3727 = vsyncpa [#allocation12], 1 }
0x15fe   :  { %3728 = vsyncpa [#allocation4], 1 }
0x15ff   :  { %3730 = vsyncpa [#allocation4 + $0x1], 1 }

// kernel: tpu_custom_call.1
= control target key start
LH: loop header
LB: loop body
LE: loop exit
PB: predicated region body
PF: predicated region fallthrough
CT: control target
= control target key end

     0   :  { %s5890_s0 = inlined_call_operand.vmem [shape: f32[32,4], index: 0, kind: input, shape index: {}]   ;;  %s5891_s1 = inlined_call_operand.hbm [shape: f32[16,32], index: 1, kind: input, shape index: {}]   ;;  %s5892_s2 = inlined_call_operand.vmem [shape: bf16[4,32], index: 2, kind: input, shape index: {}]   ;;  %s5893_s3 = inlined_call_operand.hbm [shape: f32[2,1,32], index: 3, kind: input, shape index: {}]   ;;  %s5894_s4 = inlined_call_operand.hbm [shape: f32[2,1,32], index: 4, kind: input, shape index: {}]   ;;  %s5895_s5 = inlined_call_operand.vmem [shape: bf16[2,32,32], index: 5, kind: input, shape index: {}]   ;;  %s5896_s6 = inlined_call_operand.hbm [shape: f32[2,1,32], index: 6, kind: input, shape index: {}]   ;;  %s5897_s7 = inlined_call_operand.vmem [shape: bf16[2,32,32], index: 7, kind: input, shape index: {}]   ;;  %s5898_s8 = inlined_call_operand.hbm [shape: f32[2,1,32], index: 8, kind: input, shape index: {}]   ;;  %s5899_s9 = inlined_call_operand.vmem [shape: bf16[2,32,32], index: 9, kind: input, shape index: {}]   ;;  %s5900_s10 = inlined_call_operand.vmem [shape: f32[2,1,32], index: 10, kind: input, shape index: {}]   ;;  %s5901_s11 = inlined_call_operand.vmem [shape: bf16[2,32,32], index: 11, kind: input, shape index: {}]   ;;  %s5902_s12 = inlined_call_operand.vmem [shape: f32[2,1,32], index: 12, kind: input, shape index: {}]   ;;  %s5903_s13 = inlined_call_operand.vmem [shape: f32[2,1,32], index: 13, kind: input, shape index: {}]   ;;  %s5904_s14 = inlined_call_operand.vmem [shape: f32[2,1,32], index: 14, kind: input, shape index: {}]   ;;  %s5905_s15 = inlined_call_operand.hbm [shape: bf16[2,32,64], index: 15, kind: input, shape index: {}]   ;;  %s5906_s16 = inlined_call_operand.vmem [shape: f32[2,1,64], index: 16, kind: input, shape index: {}]   ;;  %s5907_s17 = inlined_call_operand.vmem [shape: bf16[2,64,32], index: 17, kind: input, shape index: {}]   ;;  %s5908_s18 = inlined_call_operand.vmem [shape: f32[2,1,32], index: 18, kind: input, shape index: {}]   ;;  %s5909_s19 = inlined_call_operand.hbm [shape: f32[2,1,32], index: 19, kind: output, shape index: {}]  }
   0x1   :  { %5934 = sst [smem:[#allocation27_spill]] %s5890_s0 }
   0x2   :  { %5935 = sst [smem:[#allocation28_spill]] %s5891_s1 }
   0x3   :  { %5936 = sst [smem:[#allocation29_spill]] %s5892_s2 }
   0x4   :  { %5937 = sst [smem:[#allocation30_spill]] %s5893_s3 }
   0x5   :  { %5938 = sst [smem:[#allocation31_spill]] %s5896_s6 }
   0x6   :  { %5939 = sst [smem:[#allocation32_spill]] %s5903_s13 }
   0x7   :  { %5940 = sst [smem:[#allocation33_spill]] %s5904_s14 }
   0x8   :  { %5941 = sst [smem:[#allocation34_spill]] %s5906_s16 }
   0x9   :  { %5942 = sst [smem:[#allocation35_spill]] %s5908_s18 }
   0xa   :  { %5943 = sst [smem:[#allocation36_spill]] %s5909_s19 }
   0xb   :  { %24 = vsyncpa [#allocation3], 0 }
   0xc   :  { %25 = vsyncpa [#allocation6], 0 }
   0xd   :  { %26 = vsyncpa [#allocation9], 0 }
   0xe   :  { %27 = vsyncpa [#allocation12], 0 }
   0xf   :  { %28 = vsyncpa [#allocation4], 0 }
  0x10   :  { %30 = vsyncpa [#allocation4 + $0x1], 0  ;;  %s5083_s0 = smov 0   ;;  %s5085_s30 = smov 0  }
  0x11   :  { %s5087_s20 = smov 0   ;;  %s5089_s21 = smov 0  }
  0x12 LB: > { %5944 = sst [smem:[#allocation19_spill]] %s4948_s0  ;;  %s5104_s1 = sadd.s32 4294967295, %s4960_s21   ;;  %s4960_s21 = sphi %s5089_s21, %s5985_s21   ;;  %s4956_s20 = sphi %s5087_s20, %s5988_s20   ;;  %s4952_s30 = sphi %s5085_s30, %s5987_s30   ;;  %s4948_s0 = sphi %s5083_s0, %s5986_s0  }
  0x13   : > { %5945 = sst [smem:[#allocation20_spill]] %s4952_s30  ;;  %s3820_s22 = sadd.s32 4294967294, %s4960_s21  }
  0x14   : > { %5946 = sst [smem:[#allocation21_spill]] %s4956_s20  ;;  %s5108_s2 = sadd.s32 1, %s4960_s21  }
  0x15   : > { %5947 = sst [smem:[#allocation22_spill]] %s4960_s21  ;;  %s447_s23 = sadd.s32 1, %s4956_s20 }
  0x16   : > { %5948 = sst [smem:[#allocation23_spill]] %s5108_s2  ;;  %s444_s24 = ssub.s32 %s4960_s21, %s5108_s2 }
  0x17   : > { %p457_p0 = scmp.ne.s32.totalorder %s4956_s20, %s4952_s30  ;;  %p445_p1 = scmp.eq.s32.totalorder %s444_s24, 0 }
  0x18   : > { %p458_p2 = scmp.eq.s32.totalorder %s5104_s1, 1  ;;  %p463_p3 = scmp.ne.s32.totalorder %s4952_s30, %s4948_s0 }
  0x19   : > { %p464_p4 = scmp.eq.s32.totalorder %s3820_s22, 1  ;;  %p3821_p7 = scmp.ge.s32.totalorder %s4960_s21, 1 }
  0x1a   : > { %s5119_s25 = scalar_select %p445_p1, %s4956_s20, %s447_s23  }
  0x1b   : > { %p5121_p5 = por %p458_p2, %p457_p0  ;;  %p5125_p6 = por %p464_p4, %p463_p3 }
  0x1c   : > { %5949 = sst [smem:[#allocation24_spill]] %s5119_s25  ;;  %p471_p8 = scmp.lt.s32.totalorder %s4960_s21, 3 }
  0x1d   : > { %s5950_s3 = scalar_select %p5121_p5, 1, 0 }
  0x1e   : > { %s5952_s26 = scalar_select %p5125_p6, 1, 0 }
  0x1f   : > { %5951 = sst [smem:[#allocation25_spill]] %s5950_s3  ;;  %p5921_p9 = scmp.eq.s32.totalorder %s5104_s1, 0 }
  0x20   : > { %5953 = sst [smem:[#allocation26_spill]] %s5952_s26  ;;  %p5132_p10 = pnand %p3821_p7, %p471_p8 }
  0x21   : > { %s4962_s28 = smov [#allocation5]   ;;  %s4963_s23 = smov [#allocation8]  }
  0x22   : > { %s5954_s27 = scalar_select %p5132_p10, 1, 0 }
  0x23   : > { %s499_s29 = sshll.u32 %s4962_s28, 4  ;;  %p4398_p11 = pneg %p5132_p10  ;;  %s5138_s29 = int_to_ptr.vmem [resolvable:$true] %s499_s29 }
  0x24   : > { %s528_s24 = sshll.u32 %s4963_s23, 4  ;;  %s4964_s25 = smov [#allocation2]   ;;  %s5146_s24 = int_to_ptr.vmem [resolvable:$true] %s528_s24 }
  0x25   : > { %p5142_p12 = pnand %p5921_p9, %p4398_p11  ;;  %s5148_s20 = sshll.u32 %s4964_s25, 4  ;;  %s484_s20 = int_to_ptr.vmem [resolvable:$true] %s5148_s20 }
  0x26   : > { %s5956_s28 = sld [smem:[#allocation30_spill]] }
  0x27   : > { %p5158_p0 = pneg %p5142_p12 }
  0x2c   : > { %s4714_s0 = scalar_lea.hbm %s5956_s28, 32 }
  0x2d   : > { %p4715_p13 = scmp.ne.s32.totalorder %s5956_s28, %s4714_s0  ;;  %p4721_p3 = scmp.lt.u32.totalorder %s4714_s0, %s5956_s28 }
  0x2f   : > { %p4717_p1 = pnand %p5158_p0, %p4715_p13 }
  0x31   : > { %p4718_p2 = pneg %p4717_p1 }
  0x33   : > { %p4723_p4 = pnand %p4721_p3, %p4718_p2 }
  0x35   : > { %4726 = shalt.err (!%p4723_p4)
}
  0x36   : > { %s4727_s19 = scalar_lea.vmem %s5138_s29, 32  ;;  %p4735_p9 = scmp.lt.s32.totalorder %s5138_s29, %s5138_s29 }
  0x37   : > { %p4728_p7 = scmp.ne.s32.totalorder %s5138_s29, %s4727_s19  ;;  %p4736_p6 = scmp.lt.s32.totalorder %s4727_s19, %s4727_s19 }
  0x39   : > { %p4730_p8 = pnand %p4728_p7, %p5158_p0  ;;  %p4737_p13 = por %p4736_p6, %p4735_p9 }
  0x3b   : > { %p4731_p11 = pneg %p4730_p8 }
  0x3d   : > { %p4738_p1 = pnand %p4737_p13, %p4731_p11 }
  0x3f   : > { %4741 = shalt.err (!%p4738_p1)
}
  0x40   : > { %s5928_s21 = smov 16   ;;  %s5930_s0 = smov 1  }
  0x41   : > { %4404 = dma.hbm_to_vmem [thread:$0]  (!%p5142_p12), %s5956_s28, 32, %s5138_s29, [#allocation6], %s5928_s21, %s5928_s21, %s5930_s0  }
  0x42   : > { %s5958_s6 = sld [smem:[#allocation31_spill]] }
  0x48   : > { %s4742_s19 = scalar_lea.hbm %s5958_s6, 32 }
  0x49   : > { %p4743_p6 = scmp.ne.s32.totalorder %s5958_s6, %s4742_s19  ;;  %p4749_p3 = scmp.lt.u32.totalorder %s4742_s19, %s5958_s6 }
  0x4b   : > { %p4745_p9 = pnand %p4743_p6, %p5158_p0 }
  0x4d   : > { %p4746_p2 = pneg %p4745_p9 }
  0x4f   : > { %p4751_p4 = pnand %p4749_p3, %p4746_p2 }
  0x51   : > { %4754 = shalt.err (!%p4751_p4)
}
  0x52   : > { %s4755_s29 = scalar_lea.vmem %s5146_s24, 32  ;;  %p4763_p13 = scmp.lt.s32.totalorder %s5146_s24, %s5146_s24 }
  0x53   : > { %p4756_p7 = scmp.ne.s32.totalorder %s5146_s24, %s4755_s29  ;;  %p4764_p1 = scmp.lt.s32.totalorder %s4755_s29, %s4755_s29 }
  0x55   : > { %p4758_p8 = pnand %p4756_p7, %p5158_p0  ;;  %p4765_p6 = por %p4764_p1, %p4763_p13 }
  0x57   : > { %p4759_p11 = pneg %p4758_p8 }
  0x59   : > { %p4766_p9 = pnand %p4765_p6, %p4759_p11 }
  0x5b   : > { %4769 = shalt.err (!%p4766_p9)
}
  0x5c   : > { %4410 = dma.hbm_to_vmem [thread:$0]  (!%p5142_p12), %s5958_s6, 32, %s5146_s24, [#allocation9], %s5928_s21, %s5928_s21, %s5930_s0  }
  0x5d   : > { %s5959_s2 = sld [smem:[#allocation28_spill]] }
  0x63   : > { %s4770_s26 = scalar_lea.hbm %s5959_s2, 256 }
  0x64   : > { %p4771_p2 = scmp.ne.s32.totalorder %s5959_s2, %s4770_s26  ;;  %p4777_p7 = scmp.lt.u32.totalorder %s4770_s26, %s5959_s2 }
  0x66   : > { %p4773_p3 = pnand %p4771_p2, %p5158_p0 }
  0x68   : > { %p4774_p4 = pneg %p4773_p3 }
  0x6a   : > { %p4779_p8 = pnand %p4777_p7, %p4774_p4 }
  0x6c   : > { %4782 = shalt.err (!%p4779_p8)
}
  0x6d   : > { %s4783_s14 = scalar_lea.vmem %s484_s20, 256  ;;  %p4791_p6 = scmp.lt.s32.totalorder %s484_s20, %s484_s20 }
  0x6e   : > { %p4784_p11 = scmp.ne.s32.totalorder %s484_s20, %s4783_s14  ;;  %p4792_p9 = scmp.lt.s32.totalorder %s4783_s14, %s4783_s14 }
  0x70   : > { %p4786_p13 = pnand %p4784_p11, %p5158_p0  ;;  %p4793_p5 = por %p4792_p9, %p4791_p6 }
  0x72   : > { %p4787_p1 = pneg %p4786_p13 }
  0x74   : > { %p4794_p10 = pnand %p4793_p5, %p4787_p1 }
  0x76   : > { %4797 = shalt.err (!%p4794_p10)
}
  0x77   : > { %s4967_s24 = smov 128   ;;  %s4968_s16 = smov 8  }
  0x78   : > { %4401 = dma.hbm_to_vmem [thread:$0]  (!%p5142_p12), %s5959_s2, 256, %s484_s20, [#allocation3], %s4967_s24, %s4967_s24, %s4968_s16  }
  0x79   : > { %s4969_s26 = smov [#allocation7]   ;;  %s4970_s25 = smov [#allocation10]  }
  0x7a   : > { %s512_s23 = sshll.u32 %s4969_s26, 4  ;;  %s544_s19 = sshll.u32 %s4970_s25, 4  ;;  %s513_s23 = int_to_ptr.vmem [resolvable:$true] %s512_s23  ;;  %s545_s19 = int_to_ptr.vmem [resolvable:$true] %s544_s19 }
  0x7b   : > { %s4798_s14 = scalar_lea.hbm %s5894_s4, 32 }
  0x7c   : > { %p4799_p5 = scmp.ne.s32.totalorder %s5894_s4, %s4798_s14  ;;  %p4805_p3 = scmp.lt.u32.totalorder %s4798_s14, %s5894_s4 }
  0x7e   : > { %p4801_p10 = pnand %p4799_p5, %p5158_p0 }
  0x80   : > { %p4802_p2 = pneg %p4801_p10 }
  0x82   : > { %p4807_p4 = pnand %p4805_p3, %p4802_p2 }
  0x84   : > { %4810 = shalt.err (!%p4807_p4)
}
  0x85   : > { %s4811_s20 = scalar_lea.vmem %s513_s23, 32  ;;  %p4819_p13 = scmp.lt.s32.totalorder %s513_s23, %s513_s23 }
  0x86   : > { %p4812_p7 = scmp.ne.s32.totalorder %s513_s23, %s4811_s20  ;;  %p4820_p1 = scmp.lt.s32.totalorder %s4811_s20, %s4811_s20 }
  0x88   : > { %p4814_p8 = pnand %p4812_p7, %p5158_p0  ;;  %p4821_p6 = por %p4820_p1, %p4819_p13 }
  0x8a   : > { %p4815_p11 = pneg %p4814_p8 }
  0x8c   : > { %p4822_p9 = pnand %p4821_p6, %p4815_p11 }
  0x8e   : > { %4825 = shalt.err (!%p4822_p9)
}
  0x8f   : > { %s5960_s6 = smov 1   ;;  %s5961_s21 = smov 16  }
  0x90   : > { %4407 = dma.hbm_to_vmem [thread:$0]  (!%p5142_p12), %s5894_s4, 32, %s513_s23, [#allocation6], %s5961_s21, %s5961_s21, %s5960_s6  }
  0x91   : > { %s4826_s16 = scalar_lea.hbm %s5898_s8, 32 }
  0x92   : > { %p4827_p5 = scmp.ne.s32.totalorder %s5898_s8, %s4826_s16  ;;  %p4833_p3 = scmp.lt.u32.totalorder %s4826_s16, %s5898_s8 }
  0x94   : > { %p4829_p10 = pnand %p4827_p5, %p5158_p0 }
  0x96   : > { %p4830_p2 = pneg %p4829_p10 }
  0x98   : > { %p4835_p4 = pnand %p4833_p3, %p4830_p2 }
  0x9a   : > { %4838 = shalt.err (!%p4835_p4)
}
  0x9b   : > { %s4839_s29 = scalar_lea.vmem %s545_s19, 32  ;;  %p4847_p13 = scmp.lt.s32.totalorder %s545_s19, %s545_s19 }
  0x9c   : > { %p4840_p7 = scmp.ne.s32.totalorder %s545_s19, %s4839_s29  ;;  %p4848_p1 = scmp.lt.s32.totalorder %s4839_s29, %s4839_s29 }
  0x9e   : > { %p4842_p8 = pnand %p4840_p7, %p5158_p0  ;;  %p4849_p6 = por %p4848_p1, %p4847_p13 }
  0xa0   : > { %p4843_p11 = pneg %p4842_p8 }
  0xa2   : > { %p4850_p9 = pnand %p4849_p6, %p4843_p11 }
  0xa4   : > { %4853 = shalt.err (!%p4850_p9)
}
  0xa5   : > { %4413 = dma.hbm_to_vmem [thread:$0]  (!%p5142_p12), %s5898_s8, 32, %s545_s19, [#allocation9], %s5961_s21, %s5961_s21, %s5960_s6  }
  0xa6   : > { %s4971_s20 = smov [#allocation11]   ;;  %s4854_s24 = scalar_lea.hbm %s5905_s15, 512 }
  0xa7   : > { %s575_s13 = sshll.u32 %s4971_s20, 4  ;;  %p4855_p5 = scmp.ne.s32.totalorder %s5905_s15, %s4854_s24  ;;  %s576_s13 = int_to_ptr.vmem [resolvable:$true] %s575_s13 }
  0xa8   : > { %p4861_p3 = scmp.lt.u32.totalorder %s4854_s24, %s5905_s15 }
  0xa9   : > { %p4857_p10 = pnand %p4855_p5, %p5158_p0 }
  0xab   : > { %p4858_p2 = pneg %p4857_p10 }
  0xad   : > { %p4863_p4 = pnand %p4861_p3, %p4858_p2 }
  0xaf   : > { %4866 = shalt.err (!%p4863_p4)
}
  0xb0   : > { %s4867_s19 = scalar_lea.vmem %s576_s13, 512  ;;  %p4875_p13 = scmp.lt.s32.totalorder %s576_s13, %s576_s13 }
  0xb1   : > { %p4868_p7 = scmp.ne.s32.totalorder %s576_s13, %s4867_s19  ;;  %p4876_p1 = scmp.lt.s32.totalorder %s4867_s19, %s4867_s19 }
  0xb3   : > { %p4870_p8 = pnand %p4868_p7, %p5158_p0  ;;  %p4877_p6 = por %p4876_p1, %p4875_p13 }
  0xb5   : > { %p4871_p11 = pneg %p4870_p8 }
  0xb7   : > { %p4878_p9 = pnand %p4877_p6, %p4871_p11 }
  0xb9   : > { %4881 = shalt.err (!%p4878_p9)
}
  0xba   : > { %s4972_s6 = smov 64   ;;  %s4973_s21 = smov 4  }
  0xbb   : > { %4416 = dma.hbm_to_vmem [thread:$0]  (!%p5142_p12), %s5905_s15, 512, %s576_s13, [#allocation12], %s4972_s6, %s4972_s6, %s4973_s21  }
  0xbc   : > { %p5962_p5 = scmp.ne.s32.totalorder %s5954_s27, 0 }
  0xbd   : > { %p5963_p10 = scmp.eq.s32.totalorder (!%p5962_p5), %s5104_s1, 0 }
  0xbe   : > { %609 = sbr.rel (%p5962_p5) target bundleno = 5598 (0x15de), region = 96 }
  0xc5   : > { %4927 = dma.done.wait (%p5963_p10), [#allocation3], 256   ;;  %p5964_p0 = pmov %p5963_p10 }
  0xc7   : > { %4929 = vsyncadd (%p5964_p0), [#allocation3], 4294967040  ;;  %p5965_p2 = pmov %p5964_p0 }
  0xc8   : > { %p5966_p3 = pmov %p5964_p0 }
  0xc9   : > { %4931 = dma.done.wait (%p5965_p2), [#allocation6], 64  }
  0xca   : > { %4933 = vsyncadd (%p5966_p3), [#allocation6], 4294967232  ;;  %p5967_p4 = pmov %p5964_p0 }
  0xcb   : > { %p5968_p12 = pmov %p5964_p0 }
  0xcc   : > { %4935 = dma.done.wait (%p5967_p4), [#allocation9], 64  }
  0xcd   : > { %4937 = vsyncadd (%p5968_p12), [#allocation9], 4294967232  ;;  %p5969_p7 = pmov %p5964_p0 }
  0xce   : > { %p5970_p8 = pmov %p5964_p0 }
  0xcf   : > { %4939 = dma.done.wait (%p5969_p7), [#allocation12], 512  }
  0xd0   : > { %4941 = vsyncadd (%p5970_p8), [#allocation12], 4294966784  ;;  %s3836_s3 = sshll.u32 %s5104_s1, 1  ;;  %v4974_v0 = vmov 0.0   ;;  %vm4975_vm0 = vmmov 0   ;;  %vm701_vm1 = vcmask 1041408  }
  0xd1   : > { %4070 = vmatprep.subr.bf16.mxu0 %v4974_v0  ;;  %4072 = vmatprep.mubr.msk.bf16.mxu0 %vm4975_vm0, %v4974_v0  ;;  %p685_p11 = scmp.lt.s32.totalorder %s3836_s3, 3  ;;  %s5971_s14 = sld [smem:[#allocation27_spill]]  ;;  %vm697_vm2 = vcmask 31744   ;;  %v695_v6 = vld [vmem:[#allocation2] sm:$0xff]  ;;  %v696_v8 = vld [vmem:[#allocation2 + $0x8] sm:$0xff]  ;;  %vm748_vm3 = vcmask 261120  }
  0xd2   : > { %4092 = vmatprep.subr.bf16.mxu1 %v4974_v0  ;;  %4096 = vmatprep.mubr.msk.bf16.mxu1 %vm4975_vm0, %v4974_v0  ;;  %s5972_s0 = sld [smem:[#allocation29_spill]]  ;;  %v4606_v26 = vld [vmem:[%s5895_s5] sm:$0xff]   ;;  %v4608_v28 = vld [vmem:[%s5895_s5 + $0x8] sm:$0xff]   ;;  %v3839_v38 = vld [vmem:[#allocation5] ss:$0 sm:$0xff]  ;;  %vm1072_vm4 = vcmask 64512  }
  0xd3   : > { %s5990_s3 = smov (!%p685_p11, %s3836_s3), 3  ;;  %v4607_v27 = vld [vmem:[%s5899_s9] sm:$0xff]   ;;  %v4609_v29 = vld [vmem:[%s5899_s9 + $0x8] sm:$0xff]   ;;  %v3840_v42 = vld [vmem:[#allocation7] ss:$0 sm:$0xff]  ;;  %s4978_s13 = smov 104  }
  0xd4   : > { %s3837_s27 = sshll.u32 %s5990_s3, 3  ;;  %4093 = vmatpush3.bf16.msra.mxu1 %v4607_v27  ;;  %v4610_v46 = vld [vmem:[%s5897_s7] sm:$0xff]   ;;  %v4611_v48 = vld [vmem:[%s5897_s7 + $0x8] sm:$0xff]   ;;  %v3841_v49 = vld [vmem:[#allocation8] ss:$0 sm:$0xff]  ;;  %vm1540_vm5 = vcmask 1043456  }
  0xd5   : > { %4094 = vmatprep.subr.bf16.mxu1 %v4974_v0  ;;  %v3849_v52 = vld [vmem:[%s5900_s10] ss:$0 sm:$0xff]  ;;  %s4979_s24 = smov 8   ;;  %s4980_s16 = smov 16   ;;  %vm1932_vm6 = vcmask 130048   ;;  %vm1935_vm7 = vcmask 195584  }
  0xd6   : > { %s4981_s26 = smov 24   ;;  %s5973_s23 = sld [smem:[#allocation32_spill]]  ;;  %vm2162_vm8 = vcmask 523264   ;;  %vm3690_vm9 = vcmask 253952  }
  0xd7   : > { %s688_s20 = scalar_lea.vmem %s5971_s14, %s3837_s27  ;;  %s4976_s14 = smov 120  }
  0xd8   : > { %v694_v1 = vld [vmem:[%s5972_s0] sm:$0x3]  ;;  %v692_v3 = vld [vmem:[%s688_s20 + $0x8] sm:$0xff]  ;;  %4095 = vmatpush3.bf16.msra.mxu1 %v4609_v29  ;;  %s5974_s18 = sld [smem:[#allocation33_spill]]  ;;  %s5975_s3 = sld [smem:[#allocation34_spill]] }
  0xd9   : > { %v691_v2 = vld [vmem:[%s688_s20] sm:$0xff]  ;;  %v703_v4 = vsel %vm701_vm1, %v694_v1, 0  ;;  %4106 = vmatprep.subr.bf16.mxu1 %v4974_v0  ;;  %v3845_v1 = vld [vmem:[#allocation10] ss:$0 sm:$0xff]  ;;  %s4977_s20 = smov 112   ;;  %s5976_s28 = sld [smem:[#allocation35_spill]] }
  0xda   : > { %v693_v5 = vpack.c.bf16 %v692_v3, %v691_v2  ;;  %4071 = vmatpush3.bf16.msra.mxu0 %v703_v4  ;;  %s5978_s22 = sld [smem:[#allocation25_spill]]  ;;  %s3961_s0 = sshll.u32 %s5104_s1, 4 }
  0xdb   : > { %4076 = vmatprep.subr.bf16.mxu0 %v4974_v0  ;;  %s4982_s1 = smov [#allocation13]  }
  0xdd   : > { %4073 = vmatmul.mubr.msk.bf16.vlgmr.msra.gmra.mrb[0].mxu0 %vm697_vm2, %v693_v5 }
  0xde   : > { %4080 = vmatprep.mubr.msk.bf16.mxu0 %vm4975_vm0, %v4974_v0  ;;  %4077 = vmatpush3.bf16.msra.mxu0 %v4606_v26 }
  0xdf   : > { %4078 = vmatprep.subr.bf16.mxu0 %v4974_v0 }
  0xe0   : > { %p5980_p1 = scmp.ne.s32.totalorder %s5978_s22, 0 }
  0xe2   : > { %4079 = vmatpush3.bf16.msra.mxu0 %v4608_v28 }
  0xe3   : > { %4084 = vmatprep.subr.bf16.mxu0 %v4974_v0 }
 0x1b0   : > { %v739_v7 = vpop.f32.mrb[0].mxu0 }
 0x1b1   : > { %v5321_v9 = vadd.f32 %v739_v7, %v695_v6  ;;  %v4074_v10 = vpop.f32.mrb[1].mxu0 }
 0x1b2   : > { %v742_v11 = vpop.f32.mrb[2].mxu0 }
 0x1b3   : > { %v5323_v12 = vadd.f32 %v742_v11, %v696_v8  ;;  %v4075_v13 = vpop.f32.mrb[3].mxu0  ;;  %v749_v14 = vsel %vm748_vm3, %v5321_v9, 0.0 }
 0x1b4   : > { %750 = vadd.xlane.f32.xlu0 %v749_v14 }
 0x1b5   : > { %v752_v15 = vsel %vm748_vm3, %v5323_v12, 0.0 }
 0x1b8   : > { %753 = vadd.xlane.f32.xlu0 %v752_v15 }
 0x241   : > { %v751_v16 = vpop.xlane.xlu0 %750 }
 0x242   : > { %v756_v17 = vmul.f32 0.03125, %v751_v16 }
 0x244   : > { %v758_v18 = vsub.f32 %v5321_v9, %v756_v17 }
 0x245   : > { %v754_v19 = vpop.xlane.xlu0 %753 }
 0x246   : > { %v757_v20 = vmul.f32 0.03125, %v754_v19  ;;  %v760_v21 = vmul.f32 %v758_v18, %v758_v18 }
 0x248   : > { %v759_v22 = vsub.f32 %v5323_v12, %v757_v20  ;;  %v762_v23 = vsel %vm748_vm3, %v760_v21, 0.0 }
 0x249   : > { %763 = vadd.xlane.f32.xlu1 %v762_v23 }
 0x24a   : > { %v761_v24 = vmul.f32 %v759_v22, %v759_v22 }
 0x24c   : > { %v765_v25 = vsel %vm748_vm3, %v761_v24, 0.0 }
 0x24d   : > { %766 = vadd.xlane.f32.xlu1 %v765_v25 }
 0x2d6   : > { %v764_v30 = vpop.xlane.xlu1 %763 }
 0x2d7   : > { %v768_v31 = vmul.f32 0.03125, %v764_v30 }
 0x2d9   : > { %v770_v32 = vadd.f32 1e-05, %v768_v31 }
 0x2da   : > { %v767_v33 = vpop.xlane.xlu1 %766 }
 0x2db   : > { %4634 = vrsqrt.f32 %v770_v32  ;;  %v769_v34 = vmul.f32 0.03125, %v767_v33 }
 0x2dd   : > { %v771_v35 = vadd.f32 1e-05, %v769_v34 }
 0x2df   : > { %4636 = vrsqrt.f32 %v771_v35 }
 0x2e5   : > { %v4635_v36 = vpop.eup %4634 }
 0x2e6   : > { %v774_v37 = vmul.f32 %v4635_v36, %v758_v18 }
 0x2e8   : > { %v782_v40 = vmul.f32 %v3839_v38, %v774_v37 }
 0x2e9   : > { %v4637_v39 = vpop.eup %4636 }
 0x2ea   : > { %v775_v41 = vmul.f32 %v4637_v39, %v759_v22  ;;  %v790_v44 = vadd.f32 %v3840_v42, %v782_v40 }
 0x2ec   : > { %v783_v43 = vmul.f32 %v3839_v38, %v775_v41 }
 0x2ee   : > { %v791_v45 = vadd.f32 %v3840_v42, %v783_v43 }
 0x2f0   : > { %v792_v47 = vpack.c.bf16 %v791_v45, %v790_v44 }
 0x2f2   : > { %4081 = vmatmul.mubr.msk.bf16.vlgmr.msra.gmra.mrb[4].mxu0 %vm748_vm3, %v792_v47  ;;  %4097 = vmatmul.mubr.msk.bf16.vlgmr.msra.gmra.mrb[0].mxu1 %vm748_vm3, %v792_v47 }
 0x2f3   : > { %4085 = vmatpush3.bf16.msra.mxu0 %v4610_v46  ;;  %4088 = vmatprep.mubr.msk.bf16.mxu0 %vm4975_vm0, %v4974_v0 }
 0x2f4   : > { %4086 = vmatprep.subr.bf16.mxu0 %v4974_v0  ;;  %4108 = vmatprep.mubr.msk.bf16.mxu1 %vm4975_vm0, %v4974_v0 }
 0x2f7   : > { %4087 = vmatpush3.bf16.msra.mxu0 %v4611_v48 }
 0x2f8   : > { %4100 = vmatprep.subr.bf16.mxu0 %v4974_v0 }
 0x2fa   : > { %4089 = vmatmul.mubr.msk.bf16.vlgmr.msra.gmra.mrb[8].mxu0 %vm748_vm3, %v792_v47 }
 0x2fb   : > { %4102 = vmatprep.mubr.msk.bf16.mxu0 %vm4975_vm0, %v4974_v0 }
 0x3c5   : > { %v853_v50 = vpop.f32.mrb[4].mxu0  ;;  %v981_v51 = vpop.f32.mrb[0].mxu1 }
 0x3c6   : > { %v4082_v53 = vpop.f32.mrb[5].mxu0  ;;  %v4098_v54 = vpop.f32.mrb[1].mxu1  ;;  %v854_v57 = vadd.f32 %v3841_v49, %v853_v50  ;;  %v5371_v62 = vadd.f32 %v3849_v52, %v981_v51 }
 0x3c7   : > { %v856_v55 = vpop.f32.mrb[6].mxu0  ;;  %v984_v56 = vpop.f32.mrb[2].mxu1 }
 0x3c8   : > { %v857_v58 = vadd.f32 %v3841_v49, %v856_v55  ;;  %v5369_v59 = vadd.f32 %v3849_v52, %v984_v56  ;;  %v4083_v60 = vpop.f32.mrb[7].mxu0  ;;  %v4099_v61 = vpop.f32.mrb[3].mxu1  ;;  %v1008_v16 = vpack.c.bf16 %v854_v57, %v854_v57  ;;  %v1064_v52 = vpack.c.bf16 %v5371_v62, %v5371_v62 }
 0x3ca   : > { %v4491_v63 = vpack.i.bf16 %v857_v58, %v854_v57  ;;  %v5375_v2 = vpack.i.bf16 %v5369_v59, %v5371_v62  ;;  %v1009_v17 = vpack.c.bf16 %v857_v58, %v857_v58  ;;  %v1065_v53 = vpack.c.bf16 %v5369_v59, %v5369_v59 }
 0x3cb   : > { %v1542_v56 = vsel %vm1540_vm5, %v1064_v52, 0 }
 0x3cc   : > { %4492 = vrot.lane.b32.xlu1 %v4491_v63, %s4976_s14  ;;  %v1588_v57 = vsel %vm1540_vm5, %v1065_v53, 0 }
 0x3cd   : > { %v917_v3 = vpop.f32.mrb[8].mxu0 }
 0x3ce   : > { %v918_v4 = vadd.f32 %v3845_v1, %v917_v3  ;;  %v4090_v5 = vpop.f32.mrb[9].mxu0 }
 0x3cf   : > { %v920_v6 = vpop.f32.mrb[10].mxu0 }
 0x3d0   : > { %v921_v7 = vadd.f32 %v3845_v1, %v920_v6  ;;  %v4091_v8 = vpop.f32.mrb[11].mxu0  ;;  %v1036_v10 = vpack.c.bf16 %v918_v4, %v918_v4 }
 0x3d2   : > { %v1077_v11 = vsel %vm1072_vm4, %v1036_v10, 0  ;;  %v4496_v13 = vpack.i.bf16 %v921_v7, %v918_v4  ;;  %v1037_v14 = vpack.c.bf16 %v921_v7, %v921_v7 }
 0x3d3   : > { %4101 = vmatpush3.bf16.xpose.msra.mxu0 %v1077_v11 }
 0x3d4   : > { %4497 = vrot.lane.b32.xlu1 %v4496_v13, %s4977_s20  ;;  %4487 = vrot.lane.b32.xlu0 %v4496_v13, %s4976_s14  ;;  %v1123_v15 = vsel %vm1072_vm4, %v1037_v14, 0 }
 0x3d5   : > { %4107 = vmatpush3.bf16.xpose.msra.mxu1 %v1123_v15  ;;  %4112 = vmatprep.subr.bf16.mxu0 %v4974_v0 }
 0x3d6   : > { %4118 = vmatprep.subr.bf16.mxu1 %v4974_v0 }
 0x3d8   : > { %4502 = vrot.lane.b32.xlu1 %v4491_v63, %s4977_s20  ;;  %4507 = vrot.lane.b32.xlu0 %v4496_v13, %s4978_s13 }
 0x3da   : > { %4103 = vmatmul.mubr.msk.bf16.vlgmr.msra.gmra.mrb[12].mxu0 %vm1072_vm4, %v1008_v16 }
 0x3db   : > { %4114 = vmatprep.mubr.msk.bf16.mxu0 %vm4975_vm0, %v4974_v0 }
 0x3dc   : > { %4512 = vrot.lane.b32.xlu1 %v4491_v63, %s4978_s13  ;;  %4109 = vmatmul.mubr.msk.bf16.vlgmr.msra.gmra.mrb[4].mxu1 %vm1072_vm4, %v1009_v17 }
 0x3dd   : > { %4120 = vmatprep.mubr.msk.bf16.mxu1 %vm4975_vm0, %v4974_v0 }
 0x43e   : > { %v4493_v18 = vpop.permute.xlu1 %4492 }
 0x43f   : > { %v4494_v29 = vunpack.i.l.bf16 %v4493_v18  ;;  %v4495_v30 = vunpack.i.h.bf16 %v4493_v18 }
 0x441   : > { %v1010_v34 = vpack.c.bf16 %v4494_v29, %v4494_v29  ;;  %v1011_v35 = vpack.c.bf16 %v4495_v30, %v4495_v30 }
 0x446   : > { %v4488_v19 = vpop.permute.xlu0 %4487  ;;  %v4498_v22 = vpop.permute.xlu1 %4497 }
 0x447   : > { %v4490_v20 = vunpack.i.h.bf16 %v4488_v19  ;;  %v4489_v21 = vunpack.i.l.bf16 %v4488_v19  ;;  %v4499_v25 = vunpack.i.l.bf16 %v4498_v22  ;;  %v4500_v28 = vunpack.i.h.bf16 %v4498_v22 }
 0x449   : > { %v1039_v23 = vpack.c.bf16 %v4490_v20, %v4490_v20  ;;  %v1038_v24 = vpack.c.bf16 %v4489_v21, %v4489_v21  ;;  %v1040_v31 = vpack.c.bf16 %v4499_v25, %v4499_v25  ;;  %v1041_v32 = vpack.c.bf16 %v4500_v28, %v4500_v28 }
 0x44a   : > { %v4508_v33 = vpop.permute.xlu0 %4507  ;;  %v4503_v36 = vpop.permute.xlu1 %4502 }
 0x44b   : > { %v1169_v26 = vsel %vm1072_vm4, %v1038_v24, 0  ;;  %v1215_v27 = vsel %vm1072_vm4, %v1039_v23, 0  ;;  %v4509_v37 = vunpack.i.l.bf16 %v4508_v33  ;;  %v1261_v38 = vsel %vm1072_vm4, %v1040_v31, 0 }
 0x44c   : > { %4113 = vmatpush3.bf16.xpose.msra.mxu0 %v1169_v26  ;;  %4119 = vmatpush3.bf16.xpose.msra.mxu1 %v1215_v27  ;;  %v4510_v39 = vunpack.i.h.bf16 %v4508_v33  ;;  %v1307_v40 = vsel %vm1072_vm4, %v1041_v32, 0  ;;  %v4504_v41 = vunpack.i.l.bf16 %v4503_v36  ;;  %v4505_v42 = vunpack.i.h.bf16 %v4503_v36 }
 0x44d   : > { %4124 = vmatprep.subr.bf16.mxu0 %v4974_v0  ;;  %4130 = vmatprep.subr.bf16.mxu1 %v4974_v0  ;;  %v1042_v43 = vpack.c.bf16 %v4509_v37, %v4509_v37 }
 0x44e   : > { %v1043_v44 = vpack.c.bf16 %v4510_v39, %v4510_v39  ;;  %v1012_v45 = vpack.c.bf16 %v4504_v41, %v4504_v41  ;;  %v1013_v46 = vpack.c.bf16 %v4505_v42, %v4505_v42  ;;  %v4513_v47 = vpop.permute.xlu1 %4512 }
 0x44f   : > { %v1353_v48 = vsel %vm1072_vm4, %v1042_v43, 0  ;;  %v4514_v50 = vunpack.i.l.bf16 %v4513_v47  ;;  %v4515_v51 = vunpack.i.h.bf16 %v4513_v47 }
 0x450   : > { %v1399_v49 = vsel %vm1072_vm4, %v1043_v44, 0 }
 0x451   : > { %v1014_v54 = vpack.c.bf16 %v4514_v50, %v4514_v50  ;;  %v1015_v55 = vpack.c.bf16 %v4515_v51, %v4515_v51 }
 0x453   : > { %4115 = vmatmul.mubr.msk.bf16.vlgmr.msra.gmra.mrb[16].mxu0 %vm1072_vm4, %v1010_v34  ;;  %4121 = vmatmul.mubr.msk.bf16.vlgmr.msra.gmra.mrb[8].mxu1 %vm1072_vm4, %v1011_v35 }
 0x454   : > { %4125 = vmatpush3.bf16.xpose.msra.mxu0 %v1261_v38  ;;  %4131 = vmatpush3.bf16.xpose.msra.mxu1 %v1307_v40 }
 0x455   : > { %4126 = vmatprep.mubr.msk.bf16.mxu0 %vm4975_vm0, %v4974_v0  ;;  %4132 = vmatprep.mubr.msk.bf16.mxu1 %vm4975_vm0, %v4974_v0 }
 0x456   : > { %4136 = vmatprep.subr.bf16.mxu0 %v4974_v0  ;;  %4142 = vmatprep.subr.bf16.mxu1 %v4974_v0 }
 0x45b   : > { %4127 = vmatmul.mubr.msk.bf16.vlgmr.msra.gmra.mrb[20].mxu0 %vm1072_vm4, %v1012_v45  ;;  %4133 = vmatmul.mubr.msk.bf16.vlgmr.msra.gmra.mrb[12].mxu1 %vm1072_vm4, %v1013_v46 }
 0x45c   : > { %4137 = vmatpush3.bf16.xpose.msra.mxu0 %v1353_v48  ;;  %4143 = vmatpush3.bf16.xpose.msra.mxu1 %v1399_v49 }
 0x45d   : > { %4138 = vmatprep.mubr.msk.bf16.mxu0 %vm4975_vm0, %v4974_v0  ;;  %4144 = vmatprep.mubr.msk.bf16.mxu1 %vm4975_vm0, %v4974_v0 }
 0x45e   : > { %4148 = vmatprep.subr.bf16.mxu0 %v4974_v0  ;;  %4154 = vmatprep.subr.bf16.mxu1 %v4974_v0 }
 0x463   : > { %4139 = vmatmul.mubr.msk.bf16.vlgmr.msra.gmra.mrb[24].mxu0 %vm1072_vm4, %v1014_v54  ;;  %4145 = vmatmul.mubr.msk.bf16.vlgmr.msra.gmra.mrb[16].mxu1 %vm1072_vm4, %v1015_v55 }
 0x464   : > { %4149 = vmatpush3.bf16.msra.mxu0 %v1542_v56  ;;  %4155 = vmatpush3.bf16.msra.mxu1 %v1588_v57 }
 0x465   : > { %4150 = vmatprep.mubr.msk.bf16.mxu0 %vm4975_vm0, %v4974_v0  ;;  %4156 = vmatprep.mubr.msk.bf16.mxu1 %vm4975_vm0, %v4974_v0 }
 0x466   : > { %4160 = vmatprep.subr.bf16.mxu0 %v4974_v0  ;;  %4166 = vmatprep.subr.bf16.mxu1 %v4974_v0 }
 0x4ad   : > { %v1113_v58 = vpop.f32.mrb[12].mxu0 }
 0x4ae   : > { %v4104_v59 = vpop.f32.mrb[13].mxu0  ;;  %v1441_v60 = vsel %vm1072_vm4, %v1113_v58, -inf }
 0x4af   : > { %v1159_v61 = vpop.f32.mrb[4].mxu1  ;;  %1442 = vmax.xlane.f32.xlu0 %v1441_v60  ;;  %v1116_v62 = vpop.f32.mrb[14].mxu0 }
 0x4b0   : > { %v4105_v63 = vpop.f32.mrb[15].mxu0  ;;  %v4110_v1 = vpop.f32.mrb[5].mxu1  ;;  %v1444_v3 = vsel %vm1072_vm4, %v1159_v61, -inf }
 0x4b1   : > { %1445 = vmax.xlane.f32.xlu1 %v1444_v3  ;;  %v1162_v4 = vpop.f32.mrb[6].mxu1 }
 0x4b2   : > { %v4111_v5 = vpop.f32.mrb[7].mxu1 }
 0x526   : > { %v1205_v6 = vpop.f32.mrb[16].mxu0  ;;  %v1251_v7 = vpop.f32.mrb[8].mxu1 }
 0x527   : > { %v4116_v8 = vpop.f32.mrb[17].mxu0  ;;  %v1447_v10 = vsel %vm1072_vm4, %v1205_v6, -inf  ;;  %v4122_v11 = vpop.f32.mrb[9].mxu1  ;;  %v1450_v17 = vsel %vm1072_vm4, %v1251_v7, -inf }
 0x528   : > { %1448 = vmax.xlane.f32.xlu0 %v1447_v10  ;;  %v1208_v13 = vpop.f32.mrb[18].mxu0  ;;  %v1254_v14 = vpop.f32.mrb[10].mxu1 }
 0x529   : > { %v4117_v15 = vpop.f32.mrb[19].mxu0  ;;  %v4123_v16 = vpop.f32.mrb[11].mxu1 }
 0x52c   : > { %1451 = vmax.xlane.f32.xlu0 %v1450_v17 }
 0x52e   : > { %v1297_v18 = vpop.f32.mrb[20].mxu0  ;;  %v1343_v19 = vpop.f32.mrb[12].mxu1 }
 0x52f   : > { %v4128_v20 = vpop.f32.mrb[21].mxu0  ;;  %v1453_v21 = vsel %vm1072_vm4, %v1297_v18, -inf  ;;  %v4134_v22 = vpop.f32.mrb[13].mxu1  ;;  %v1456_v23 = vsel %vm1072_vm4, %v1343_v19, -inf }
 0x530   : > { %1454 = vmax.xlane.f32.xlu0 %v1453_v21  ;;  %v1300_v24 = vpop.f32.mrb[22].mxu0  ;;  %1457 = vmax.xlane.f32.xlu1 %v1456_v23  ;;  %v1346_v25 = vpop.f32.mrb[14].mxu1 }
 0x531   : > { %v4129_v26 = vpop.f32.mrb[23].mxu0  ;;  %v4135_v27 = vpop.f32.mrb[15].mxu1 }
 0x536   : > { %v1389_v28 = vpop.f32.mrb[24].mxu0  ;;  %v5437_v29 = vpop.f32.mrb[16].mxu1 }
 0x537   : > { %v4140_v30 = vpop.f32.mrb[25].mxu0  ;;  %v1459_v31 = vsel %vm1072_vm4, %v1389_v28, -inf  ;;  %v4146_v32 = vpop.f32.mrb[17].mxu1  ;;  %v1462_v33 = vsel %vm1072_vm4, %v5437_v29, -inf }
 0x538   : > { %1460 = vmax.xlane.f32.xlu0 %v1459_v31  ;;  %v1392_v34 = vpop.f32.mrb[26].mxu0  ;;  %1463 = vmax.xlane.f32.xlu1 %v1462_v33  ;;  %v1438_v35 = vpop.f32.mrb[18].mxu1 }
 0x539   : > { %v4141_v36 = vpop.f32.mrb[27].mxu0  ;;  %v4147_v37 = vpop.f32.mrb[19].mxu1 }
 0x53c   : > { %v1443_v38 = vpop.xlane.xlu0 %1442 }
 0x53d   : > { %v1465_v39 = vsub.f32 %v1113_v58, %v1443_v38 }
 0x53e   : > { %v1446_v40 = vpop.xlane.xlu1 %1445 }
 0x53f   : > { %v1473_v41 = vmul.f32 1.442695, %v1465_v39  ;;  %v1466_v42 = vsub.f32 %v1159_v61, %v1446_v40 }
 0x541   : > { %4638 = vpow2.f32 %v1473_v41  ;;  %v1475_v43 = vmul.f32 1.442695, %v1466_v42 }
 0x543   : > { %4640 = vpow2.f32 %v1475_v43 }
 0x54b   : > { %v4639_v44 = vpop.eup %4638 }
 0x54c   : > { %v1489_v45 = vsel %vm1072_vm4, %v4639_v44, 0.0 }
 0x54d   : > { %v4641_v46 = vpop.eup %4640  ;;  %1490 = vadd.xlane.f32.xlu0 %v1489_v45 }
 0x54e   : > { %v1492_v47 = vsel %vm1072_vm4, %v4641_v46, 0.0 }
 0x54f   : > { %1493 = vadd.xlane.f32.xlu1 %v1492_v47 }
 0x5b5   : > { %v1449_v48 = vpop.xlane.xlu0 %1448 }
 0x5b6   : > { %v1467_v49 = vsub.f32 %v1205_v6, %v1449_v48 }
 0x5b8   : > { %v1477_v50 = vmul.f32 1.442695, %v1467_v49 }
 0x5b9   : > { %v1452_v51 = vpop.xlane.xlu0 %1451 }
 0x5ba   : > { %4642 = vpow2.f32 %v1477_v50  ;;  %v1468_v52 = vsub.f32 %v1251_v7, %v1452_v51 }
 0x5bc   : > { %v1479_v53 = vmul.f32 1.442695, %v1468_v52 }
 0x5bd   : > { %v1455_v54 = vpop.xlane.xlu0 %1454  ;;  %v1458_v55 = vpop.xlane.xlu1 %1457 }
 0x5be   : > { %4644 = vpow2.f32 %v1479_v53  ;;  %v1469_v56 = vsub.f32 %v1297_v18, %v1455_v54  ;;  %v1470_v57 = vsub.f32 %v1343_v19, %v1458_v55 }
 0x5c0   : > { %v1481_v58 = vmul.f32 1.442695, %v1469_v56  ;;  %v1483_v59 = vmul.f32 1.442695, %v1470_v57 }
 0x5c2   : > { %4646 = vpow2.f32 %v1481_v58 }
 0x5c3   : > { %4648 = vpow2.f32 %v1483_v59 }
 0x5c4   : > { %v4643_v60 = vpop.eup %4642 }
 0x5c5   : > { %v1461_v61 = vpop.xlane.xlu0 %1460  ;;  %v1495_v62 = vsel %vm1072_vm4, %v4643_v60, 0.0  ;;  %v1464_v13 = vpop.xlane.xlu1 %1463 }
 0x5c6   : > { %v1471_v63 = vsub.f32 %v1389_v28, %v1461_v61  ;;  %1496 = vadd.xlane.f32.xlu0 %v1495_v62  ;;  %v1472_v22 = vsub.f32 %v5437_v29, %v1464_v13 }
 0x5c8   : > { %v4645_v1 = vpop.eup %4644  ;;  %v1485_v3 = vmul.f32 1.442695, %v1471_v63  ;;  %v1487_v23 = vmul.f32 1.442695, %v1472_v22 }
 0x5c9   : > { %v1498_v4 = vsel %vm1072_vm4, %v4645_v1, 0.0 }
 0x5ca   : > { %4650 = vpow2.f32 %v1485_v3  ;;  %1499 = vadd.xlane.f32.xlu1 %v1498_v4 }
 0x5cc   : > { %v5446_v5 = vpop.eup %4646 }
 0x5cd   : > { %v5448_v6 = vpop.eup %4648  ;;  %v1501_v7 = vsel %vm1072_vm4, %v5446_v5, 0.0 }
 0x5ce   : > { %v1504_v8 = vsel %vm1072_vm4, %v5448_v6, 0.0  ;;  %1502 = vadd.xlane.f32.xlu0 %v1501_v7 }
 0x5cf   : > { %1505 = vadd.xlane.f32.xlu1 %v1504_v8 }
 0x5d4   : > { %v5454_v10 = vpop.eup %4650 }
 0x5d5   : > { %v1507_v11 = vsel %vm1072_vm4, %v5454_v10, 0.0 }
 0x5d6   : > { %1508 = vadd.xlane.f32.xlu0 %v1507_v11 }
 0x5da   : > { %v1491_v14 = vpop.xlane.xlu0 %1490 }
 0x5db   : > { %4652 = vrcp.f32 %v1491_v14 }
 0x5dc   : > { %v1494_v15 = vpop.xlane.xlu1 %1493 }
 0x5dd   : > { %4654 = vrcp.f32 %v1494_v15 }
 0x5de   : > { %4656 = vpow2.f32 %v1487_v23 }
 0x5e0   : > { %4522 = vrot.lane.b32.xlu1 %v5375_v2, %s4977_s20 }
 0x5e5   : > { %v4653_v16 = vpop.eup %4652 }
 0x5e6   : > { %v1521_v17 = vmul.f32 %v4653_v16, %v4639_v44 }
 0x5e7   : > { %v4655_v18 = vpop.eup %4654 }
 0x5e8   : > { %v1522_v19 = vmul.f32 %v4655_v18, %v4641_v46  ;;  %v1529_v20 = vpack.c.bf16 %v1521_v17, %v1521_v17  ;;  %v5469_v24 = vpop.eup %4656 }
 0x5e9   : > { %v1510_v25 = vsel %vm1072_vm4, %v5469_v24, 0.0 }
 0x5ea   : > { %4151 = vmatmul.mubr.msk.bf16.vlgmr.msra.gmra.mrb[28].mxu0 %vm1072_vm4, %v1529_v20  ;;  %v1530_v21 = vpack.c.bf16 %v1522_v19, %v1522_v19  ;;  %v4612_v20 = vld [vmem:[%s5901_s11] sm:$0xff]  }
 0x5eb   : > { %4162 = vmatprep.mubr.msk.bf16.mxu0 %vm4975_vm0, %v4974_v0 }
 0x5ec   : > { %4157 = vmatmul.mubr.msk.bf16.vlgmr.msra.gmra.mrb[20].mxu1 %vm1072_vm4, %v1530_v21  ;;  %4517 = vrot.lane.b32.xlu0 %v5375_v2, %s4976_s14 }
 0x5ed   : > { %4168 = vmatprep.mubr.msk.bf16.mxu1 %vm4975_vm0, %v4974_v0 }
 0x604   : > { %1511 = vadd.xlane.f32.xlu1 %v1510_v25 }
 0x615   : > { %4527 = vrot.lane.b32.xlu1 %v5375_v2, %s4978_s13 }
 0x653   : > { %v1497_v26 = vpop.xlane.xlu0 %1496 }
 0x654   : > { %4658 = vrcp.f32 %v1497_v26 }
 0x657   : > { %v1500_v27 = vpop.xlane.xlu1 %1499 }
 0x658   : > { %4660 = vrcp.f32 %v1500_v27 }
 0x65b   : > { %v1503_v30 = vpop.xlane.xlu0 %1502 }
 0x65c   : > { %v1506_v28 = vpop.xlane.xlu1 %1505  ;;  %4662 = vrcp.f32 %v1503_v30 }
 0x65d   : > { %4664 = vrcp.f32 %v1506_v28 }
 0x65e   : > { %v4659_v32 = vpop.eup %4658 }
 0x65f   : > { %v1523_v39 = vmul.f32 %v4659_v32, %v4643_v60 }
 0x660   : > { %v4523_v29 = vpop.permute.xlu1 %4522 }
 0x661   : > { %v4525_v35 = vunpack.i.h.bf16 %v4523_v29  ;;  %v4524_v36 = vunpack.i.l.bf16 %v4523_v29  ;;  %v1531_v47 = vpack.c.bf16 %v1523_v39, %v1523_v39 }
 0x662   : > { %v4661_v33 = vpop.eup %4660 }
 0x663   : > { %v1509_v31 = vpop.xlane.xlu0 %1508  ;;  %v1524_v40 = vmul.f32 %v4661_v33, %v4645_v1  ;;  %v1069_v42 = vpack.c.bf16 %v4525_v35, %v4525_v35  ;;  %v1068_v43 = vpack.c.bf16 %v4524_v36, %v4524_v36 }
 0x664   : > { %4666 = vrcp.f32 %v1509_v31 }
 0x665   : > { %v1532_v48 = vpack.c.bf16 %v1524_v40, %v1524_v40  ;;  %v1726_v50 = vsel %vm1540_vm5, %v1068_v43, 0  ;;  %v1772_v51 = vsel %vm1540_vm5, %v1069_v42, 0 }
 0x666   : > { %v4663_v46 = vpop.eup %4662 }
 0x667   : > { %v4518_v34 = vpop.permute.xlu0 %4517  ;;  %v4665_v49 = vpop.eup %4664  ;;  %v1525_v53 = vmul.f32 %v4663_v46, %v5446_v5 }
 0x668   : > { %v4520_v37 = vunpack.i.h.bf16 %v4518_v34  ;;  %v4519_v38 = vunpack.i.l.bf16 %v4518_v34  ;;  %v1526_v52 = vmul.f32 %v4665_v49, %v5448_v6 }
 0x669   : > { %v1533_v54 = vpack.c.bf16 %v1525_v53, %v1525_v53 }
 0x66a   : > { %v1067_v2 = vpack.c.bf16 %v4520_v37, %v4520_v37  ;;  %v1066_v41 = vpack.c.bf16 %v4519_v38, %v4519_v38  ;;  %v1534_v55 = vpack.c.bf16 %v1526_v52, %v1526_v52  ;;  %v4613_v37 = vld [vmem:[%s5901_s11 + $0x8] sm:$0xff]  }
 0x66c   : > { %v1634_v44 = vsel %vm1540_vm5, %v1066_v41, 0  ;;  %v1680_v45 = vsel %vm1540_vm5, %v1067_v2, 0 }
 0x66d   : > { %4161 = vmatpush3.bf16.msra.mxu0 %v1634_v44  ;;  %4167 = vmatpush3.bf16.msra.mxu1 %v1680_v45 }
 0x66e   : > { %4172 = vmatprep.subr.bf16.mxu0 %v4974_v0  ;;  %4178 = vmatprep.subr.bf16.mxu1 %v4974_v0  ;;  %v4667_v57 = vpop.eup %4666 }
 0x66f   : > { %v1527_v61 = vmul.f32 %v4667_v57, %v5454_v10 }
 0x670   : > { %4163 = vmatmul.mubr.msk.bf16.vlgmr.msra.gmra.mrb[32].mxu0 %vm1072_vm4, %v1531_v47  ;;  %4169 = vmatmul.mubr.msk.bf16.vlgmr.msra.gmra.mrb[24].mxu1 %vm1072_vm4, %v1532_v48 }
 0x671   : > { %4173 = vmatpush3.bf16.msra.mxu0 %v1726_v50  ;;  %4179 = vmatpush3.bf16.msra.mxu1 %v1772_v51  ;;  %v1535_v5 = vpack.c.bf16 %v1527_v61, %v1527_v61 }
 0x672   : > { %4174 = vmatprep.mubr.msk.bf16.mxu0 %vm4975_vm0, %v4974_v0  ;;  %4180 = vmatprep.mubr.msk.bf16.mxu1 %vm4975_vm0, %v4974_v0 }
 0x673   : > { %4184 = vmatprep.subr.bf16.mxu0 %v4974_v0  ;;  %4190 = vmatprep.subr.bf16.mxu1 %v4974_v0 }
 0x678   : > { %4175 = vmatmul.mubr.msk.bf16.vlgmr.msra.gmra.mrb[36].mxu0 %vm1072_vm4, %v1533_v54  ;;  %4181 = vmatmul.mubr.msk.bf16.vlgmr.msra.gmra.mrb[28].mxu1 %vm1072_vm4, %v1534_v55 }
 0x679   : > { %4186 = vmatprep.mubr.msk.bf16.mxu0 %vm4975_vm0, %v4974_v0  ;;  %4192 = vmatprep.mubr.msk.bf16.mxu1 %vm4975_vm0, %v4974_v0 }
 0x691   : > { %v1512_v56 = vpop.xlane.xlu1 %1511 }
 0x692   : > { %4668 = vrcp.f32 %v1512_v56 }
 0x695   : > { %v4528_v58 = vpop.permute.xlu1 %4527 }
 0x696   : > { %v4530_v59 = vunpack.i.h.bf16 %v4528_v58  ;;  %v4529_v60 = vunpack.i.l.bf16 %v4528_v58 }
 0x698   : > { %v1071_v62 = vpack.c.bf16 %v4530_v59, %v4530_v59  ;;  %v1070_v63 = vpack.c.bf16 %v4529_v60, %v4529_v60 }
 0x69a   : > { %v1818_v1 = vsel %vm1540_vm5, %v1070_v63, 0  ;;  %v1864_v3 = vsel %vm1540_vm5, %v1071_v62, 0  ;;  %v3869_v62 = vld [vmem:[%s5902_s12] ss:$0 sm:$0xff] }
 0x69b   : > { %4185 = vmatpush3.bf16.msra.mxu0 %v1818_v1  ;;  %4191 = vmatpush3.bf16.msra.mxu1 %v1864_v3 }
 0x69c   : > { %v4669_v4 = vpop.eup %4668  ;;  %4196 = vmatprep.subr.bf16.mxu0 %v4974_v0  ;;  %4204 = vmatprep.subr.bf16.mxu1 %v4974_v0 }
 0x69d   : > { %v1528_v6 = vmul.f32 %v4669_v4, %v5469_v24 }
 0x69e   : > { %4187 = vmatmul.mubr.msk.bf16.vlgmr.msra.gmra.mrb[40].mxu0 %vm1072_vm4, %v1535_v5 }
 0x69f   : > { %v1536_v7 = vpack.c.bf16 %v1528_v6, %v1528_v6  ;;  %4200 = vmatprep.mubr.msk.bf16.mxu0 %vm4975_vm0, %v4974_v0  ;;  %4197 = vmatpush3.bf16.msra.mxu0 %v4612_v20 }
 0x6a0   : > { %4198 = vmatprep.subr.bf16.mxu0 %v4974_v0 }
 0x6a1   : > { %4193 = vmatmul.mubr.msk.bf16.vlgmr.msra.gmra.mrb[32].mxu1 %vm1072_vm4, %v1536_v7 }
 0x6a2   : > { %4208 = vmatprep.mubr.msk.bf16.mxu1 %vm4975_vm0, %v4974_v0 }
 0x6a3   : > { %4199 = vmatpush3.bf16.msra.mxu0 %v4613_v37  ;;  %v3874_v37 = vld [vmem:[%s5974_s18] ss:$0 sm:$0xff] }
 0x6a4   : > { %4212 = vmatprep.subr.bf16.mxu0 %v4974_v0 }
 0x6bd   : > { %v1578_v8 = vpop.f32.mrb[28].mxu0 }
 0x6be   : > { %v4152_v10 = vpop.f32.mrb[29].mxu0 }
 0x6bf   : > { %v1581_v11 = vpop.f32.mrb[30].mxu0  ;;  %v1624_v13 = vpop.f32.mrb[20].mxu1 }
 0x6c0   : > { %v4153_v14 = vpop.f32.mrb[31].mxu0  ;;  %v4158_v15 = vpop.f32.mrb[21].mxu1 }
 0x6c1   : > { %v1627_v16 = vpop.f32.mrb[22].mxu1 }
 0x6c2   : > { %v4159_v17 = vpop.f32.mrb[23].mxu1 }
 0x743   : > { %v1670_v18 = vpop.f32.mrb[32].mxu0  ;;  %v1716_v19 = vpop.f32.mrb[24].mxu1 }
 0x744   : > { %v4531_v21 = vpack.i.bf16 %v1716_v19, %v1670_v18  ;;  %v4164_v22 = vpop.f32.mrb[33].mxu0  ;;  %v4170_v23 = vpop.f32.mrb[25].mxu1 }
 0x745   : > { %v1673_v24 = vpop.f32.mrb[34].mxu0  ;;  %v1719_v25 = vpop.f32.mrb[26].mxu1  ;;  %v4615_v22 = vld [vmem:[#allocation11 + $0x8] sm:$0xff]  }
 0x746   : > { %v4171_v26 = vpop.f32.mrb[27].mxu1  ;;  %4532 = vrot.lane.b32.xlu1 %v4531_v21, %s4979_s24  ;;  %v4165_v27 = vpop.f32.mrb[35].mxu0  ;;  %v4614_v21 = vld [vmem:[#allocation11] sm:$0xff]   ;;  %v4616_v23 = vld [vmem:[%s5907_s17] sm:$0xff]   ;;  %v4617_v24 = vld [vmem:[%s5907_s17 + $0x8] sm:$0xff]  }
 0x747   : > { %4205 = vmatpush3.bf16.msra.mxu1 %v4614_v21 }
 0x748   : > { %4206 = vmatprep.subr.bf16.mxu1 %v4974_v0 }
 0x74b   : > { %v1762_v28 = vpop.f32.mrb[36].mxu0  ;;  %v1808_v30 = vpop.f32.mrb[28].mxu1  ;;  %4207 = vmatpush3.bf16.msra.mxu1 %v4615_v22 }
 0x74c   : > { %v4536_v31 = vpack.i.bf16 %v1808_v30, %v1762_v28  ;;  %v4176_v29 = vpop.f32.mrb[37].mxu0  ;;  %v4182_v32 = vpop.f32.mrb[29].mxu1  ;;  %4224 = vmatprep.subr.bf16.mxu1 %v4974_v0 }
 0x74d   : > { %v1765_v33 = vpop.f32.mrb[38].mxu0  ;;  %v1811_v34 = vpop.f32.mrb[30].mxu1 }
 0x74e   : > { %v4183_v35 = vpop.f32.mrb[31].mxu1  ;;  %4537 = vrot.lane.b32.xlu0 %v4536_v31, %s4980_s16  ;;  %v4177_v36 = vpop.f32.mrb[39].mxu0  ;;  %v3873_v33 = vld [vmem:[%s5973_s23] ss:$0 sm:$0xff] }
 0x771   : > { %v1854_v38 = vpop.f32.mrb[40].mxu0 }
 0x772   : > { %v4188_v39 = vpop.f32.mrb[41].mxu0 }
 0x773   : > { %v1857_v40 = vpop.f32.mrb[42].mxu0 }
 0x774   : > { %v4189_v2 = vpop.f32.mrb[43].mxu0  ;;  %v1900_v41 = vpop.f32.mrb[32].mxu1 }
 0x775   : > { %v4541_v42 = vpack.i.bf16 %v1900_v41, %v1854_v38  ;;  %v4194_v43 = vpop.f32.mrb[33].mxu1  ;;  %v4618_v41 = vld [vmem:[%s5907_s17 + $0x10] sm:$0xff]  }
 0x776   : > { %v1903_v44 = vpop.f32.mrb[34].mxu1  ;;  %v3875_v43 = vld [vmem:[%s5975_s3] ss:$0 sm:$0xff] }
 0x777   : > { %v4195_v45 = vpop.f32.mrb[35].mxu1  ;;  %4542 = vrot.lane.b32.xlu1 %v4541_v42, %s4981_s26  ;;  %v4619_v42 = vld [vmem:[%s5907_s17 + $0x18] sm:$0xff]  }
 0x7b8   : > { %v4533_v46 = vpop.permute.xlu1 %4532 }
 0x7b9   : > { %v4535_v48 = vunpack.i.h.bf16 %v4533_v46  ;;  %v4534_v49 = vunpack.i.l.bf16 %v4533_v46 }
 0x7bb   : > { %v1931_v53 = vsel %vm1072_vm4, %v1624_v13, %v4535_v48  ;;  %v1930_v54 = vsel %vm1072_vm4, %v1578_v8, %v4534_v49 }
 0x7c0   : > { %v4538_v47 = vpop.permute.xlu0 %4537 }
 0x7c1   : > { %v4540_v50 = vunpack.i.h.bf16 %v4538_v47  ;;  %v4539_v51 = vunpack.i.l.bf16 %v4538_v47 }
 0x7c3   : > { %v1934_v57 = vsel %vm1932_vm6, %v1931_v53, %v4540_v50  ;;  %v1933_v58 = vsel %vm1932_vm6, %v1930_v54, %v4539_v51  ;;  %v3879_v53 = vld [vmem:[%s5976_s28] ss:$0 sm:$0xff] }
 0x7e9   : > { %v4543_v52 = vpop.permute.xlu1 %4542 }
 0x7ea   : > { %v4545_v55 = vunpack.i.h.bf16 %v4543_v52  ;;  %v4544_v56 = vunpack.i.l.bf16 %v4543_v52 }
 0x7ec   : > { %v1937_v59 = vsel %vm1935_vm7, %v1934_v57, %v4545_v55  ;;  %v1936_v60 = vsel %vm1935_vm7, %v1933_v58, %v4544_v56 }
 0x7ed   : > { %v1938_v61 = vpack.c.bf16 %v1937_v59, %v1936_v60 }
 0x7ef   : > { %4201 = vmatmul.mubr.msk.bf16.vlgmr.msra.gmra.mrb[44].mxu0 %vm748_vm3, %v1938_v61 }
 0x7f0   : > { %4220 = vmatprep.mubr.msk.bf16.mxu0 %vm4975_vm0, %v4974_v0  ;;  %4213 = vmatpush3.bf16.msra.mxu0 %v4616_v23  ;;  %v3885_v23 = vld [vmem:[#allocation5 + $0x1] ss:$0 sm:$0xff] }
 0x7f1   : > { %4214 = vmatprep.subr.bf16.mxu0 %v4974_v0 }
 0x7f4   : > { %4215 = vmatpush3.bf16.msra.mxu0 %v4617_v24 }
 0x7f5   : > { %4216 = vmatprep.subr.bf16.mxu0 %v4974_v0 }
 0x7f8   : > { %4217 = vmatpush3.bf16.msra.mxu0 %v4618_v41 }
 0x7f9   : > { %4218 = vmatprep.subr.bf16.mxu0 %v4974_v0 }
 0x7fc   : > { %4219 = vmatpush3.bf16.msra.mxu0 %v4619_v42 }
 0x7fd   : > { %4240 = vmatprep.subr.bf16.mxu0 %v4974_v0 }
 0x8c2   : > { %v1999_v63 = vpop.f32.mrb[44].mxu0 }
 0x8c3   : > { %v2000_v1 = vadd.f32 %v3869_v62, %v1999_v63  ;;  %v4202_v3 = vpop.f32.mrb[45].mxu0 }
 0x8c4   : > { %v2002_v4 = vpop.f32.mrb[46].mxu0 }
 0x8c5   : > { %v5533_v5 = vadd.f32 %v2000_v1, %v5321_v9  ;;  %v2003_v6 = vadd.f32 %v3869_v62, %v2002_v4  ;;  %v4203_v7 = vpop.f32.mrb[47].mxu0 }
 0x8c7   : > { %v5536_v8 = vadd.f32 %v2003_v6, %v5323_v12  ;;  %v2010_v10 = vsel %vm748_vm3, %v5533_v5, 0.0 }
 0x8c8   : > { %2011 = vadd.xlane.f32.xlu0 %v2010_v10 }
 0x8c9   : > { %v2013_v11 = vsel %vm748_vm3, %v5536_v8, 0.0 }
 0x8ca   : > { %2014 = vadd.xlane.f32.xlu1 %v2013_v11 }
 0x955   : > { %v2012_v13 = vpop.xlane.xlu0 %2011 }
 0x956   : > { %v2016_v14 = vmul.f32 0.03125, %v2012_v13 }
 0x957   : > { %v2015_v15 = vpop.xlane.xlu1 %2014 }
 0x958   : > { %v2018_v16 = vsub.f32 %v5533_v5, %v2016_v14  ;;  %v2017_v9 = vmul.f32 0.03125, %v2015_v15  ;;  %v4620_v14 = vld [vmem:[%s5895_s5 + $0x10] sm:$0xff]  }
 0x959   : > { %v4621_v15 = vld [vmem:[%s5899_s9 + $0x10] sm:$0xff]  }
 0x95a   : > { %v2019_v17 = vsub.f32 %v5536_v8, %v2017_v9  ;;  %v2020_v18 = vmul.f32 %v2018_v16, %v2018_v16  ;;  %v4623_v9 = vld [vmem:[%s5899_s9 + $0x18] sm:$0xff]  }
 0x95c   : > { %v2022_v12 = vsel %vm748_vm3, %v2020_v18, 0.0  ;;  %v2021_v19 = vmul.f32 %v2019_v17, %v2019_v17 }
 0x95d   : > { %2023 = vadd.xlane.f32.xlu0 %v2022_v12 }
 0x95e   : > { %v2025_v20 = vsel %vm748_vm3, %v2021_v19, 0.0 }
 0x961   : > { %2026 = vadd.xlane.f32.xlu0 %v2025_v20 }
 0x9ea   : > { %v2024_v25 = vpop.xlane.xlu0 %2023 }
 0x9eb   : > { %v2028_v26 = vmul.f32 0.03125, %v2024_v25 }
 0x9ed   : > { %v2030_v27 = vadd.f32 1e-05, %v2028_v26 }
 0x9ee   : > { %v2027_v28 = vpop.xlane.xlu0 %2026 }
 0x9ef   : > { %4670 = vrsqrt.f32 %v2030_v27  ;;  %v2029_v30 = vmul.f32 0.03125, %v2027_v28  ;;  %v3886_v28 = vld [vmem:[#allocation7 + $0x1] ss:$0 sm:$0xff] }
 0x9f1   : > { %v2031_v31 = vadd.f32 1e-05, %v2029_v30 }
 0x9f3   : > { %4672 = vrsqrt.f32 %v2031_v31 }
 0x9f9   : > { %v4671_v29 = vpop.eup %4670 }
 0x9fa   : > { %v2034_v32 = vmul.f32 %v4671_v29, %v2018_v16  ;;  %v4622_v16 = vld [vmem:[%s5895_s5 + $0x18] sm:$0xff]  }
 0x9fc   : > { %v2042_v35 = vmul.f32 %v3873_v33, %v2034_v32  ;;  %v4624_v32 = vld [vmem:[%s5897_s7 + $0x10] sm:$0xff]  }
 0x9fd   : > { %v4673_v34 = vpop.eup %4672 }
 0x9fe   : > { %v2035_v36 = vmul.f32 %v4673_v34, %v2019_v17  ;;  %v2050_v39 = vadd.f32 %v3874_v37, %v2042_v35  ;;  %v4625_v34 = vld [vmem:[%s5897_s7 + $0x18] sm:$0xff]   ;;  %v3891_v35 = vld [vmem:[#allocation8 + $0x1] ss:$0 sm:$0xff] }
 0xa00   : > { %v2043_v38 = vmul.f32 %v3873_v33, %v2035_v36 }
 0xa02   : > { %v2051_v40 = vadd.f32 %v3874_v37, %v2043_v38  ;;  %v3908_v38 = vld [vmem:[%s5900_s10 + $0x1] ss:$0 sm:$0xff] }
 0xa04   : > { %v2052_v2 = vpack.c.bf16 %v2051_v40, %v2050_v39 }
 0xa06   : > { %4209 = vmatmul.mubr.msk.bf16.vlgmr.msra.gmra.mrb[36].mxu1 %vm748_vm3, %v2052_v2 }
 0xa07   : > { %4228 = vmatprep.mubr.msk.bf16.mxu1 %vm4975_vm0, %v4974_v0  ;;  %4225 = vmatpush3.bf16.msra.mxu1 %v4620_v14 }
 0xa08   : > { %4226 = vmatprep.subr.bf16.mxu1 %v4974_v0 }
 0xa0b   : > { %4227 = vmatpush3.bf16.msra.mxu1 %v4622_v16 }
 0xa0c   : > { %4232 = vmatprep.subr.bf16.mxu1 %v4974_v0 }
 0xad9   : > { %v2113_v44 = vpop.f32.mrb[36].mxu1 }
 0xada   : > { %v2114_v45 = vadd.f32 %v3875_v43, %v2113_v44  ;;  %v4210_v46 = vpop.f32.mrb[37].mxu1 }
 0xadb   : > { %v2116_v47 = vpop.f32.mrb[38].mxu1 }
 0xadc   : > { %v2117_v48 = vadd.f32 %v3875_v43, %v2116_v47  ;;  %v4211_v49 = vpop.f32.mrb[39].mxu1  ;;  %v2120_v50 = vmax.f32 %v2114_v45, 0.0 }
 0xadd   : > { %v3899_v49 = vld [vmem:[#allocation10 + $0x1] ss:$0 sm:$0xff] }
 0xade   : > { %v2121_v51 = vmax.f32 %v2117_v48, 0.0 }
 0xae0   : > { %v2122_v52 = vpack.c.bf16 %v2121_v51, %v2120_v50 }
 0xae2   : > { %4221 = vmatmul.mubr.msk.bf16.vlgmr.msra.gmra.mrb[48].mxu0 %vm2162_vm8, %v2122_v52 }
 0xae3   : > { %4244 = vmatprep.mubr.msk.bf16.mxu0 %vm4975_vm0, %v4974_v0  ;;  %4241 = vmatpush3.bf16.msra.mxu0 %v4621_v15 }
 0xae4   : > { %4242 = vmatprep.subr.bf16.mxu0 %v4974_v0 }
 0xae7   : > { %4243 = vmatpush3.bf16.msra.mxu0 %v4623_v9 }
 0xae8   : > { %4254 = vmatprep.subr.bf16.mxu0 %v4974_v0 }
 0xbb5   : > { %v2200_v54 = vpop.f32.mrb[48].mxu0 }
 0xbb6   : > { %v2201_v55 = vadd.f32 %v3879_v53, %v2200_v54  ;;  %v4222_v56 = vpop.f32.mrb[49].mxu0 }
 0xbb7   : > { %v2203_v57 = vpop.f32.mrb[50].mxu0 }
 0xbb8   : > { %v5583_v58 = vadd.f32 %v2201_v55, %v5533_v5  ;;  %v2204_v59 = vadd.f32 %v3879_v53, %v2203_v57  ;;  %v4223_v60 = vpop.f32.mrb[51].mxu0 }
 0xbba   : > { %v5586_v61 = vadd.f32 %v2204_v59, %v5536_v8  ;;  %v2213_v62 = vsel %vm748_vm3, %v5583_v58, 0.0 }
 0xbbb   : > { %2214 = vadd.xlane.f32.xlu0 %v2213_v62 }
 0xbbc   : > { %v2216_v63 = vsel %vm748_vm3, %v5586_v61, 0.0 }
 0xbbd   : > { %2217 = vadd.xlane.f32.xlu1 %v2216_v63 }
 0xc48   : > { %v2215_v1 = vpop.xlane.xlu0 %2214 }
 0xc49   : > { %v2219_v3 = vmul.f32 0.03125, %v2215_v1 }
 0xc4a   : > { %v2218_v4 = vpop.xlane.xlu1 %2217 }
 0xc4b   : > { %v2221_v6 = vsub.f32 %v5583_v58, %v2219_v3  ;;  %v2220_v5 = vmul.f32 0.03125, %v2218_v4 }
 0xc4d   : > { %v2222_v7 = vsub.f32 %v5586_v61, %v2220_v5  ;;  %v2223_v10 = vmul.f32 %v2221_v6, %v2221_v6 }
 0xc4f   : > { %v2225_v8 = vsel %vm748_vm3, %v2223_v10, 0.0  ;;  %v2224_v11 = vmul.f32 %v2222_v7, %v2222_v7 }
 0xc50   : > { %2226 = vadd.xlane.f32.xlu0 %v2225_v8 }
 0xc51   : > { %v2228_v13 = vsel %vm748_vm3, %v2224_v11, 0.0 }
 0xc52   : > { %2229 = vadd.xlane.f32.xlu1 %v2228_v13 }
 0xcdd   : > { %v2227_v17 = vpop.xlane.xlu0 %2226 }
 0xcde   : > { %v2231_v18 = vmul.f32 0.03125, %v2227_v17 }
 0xcdf   : > { %v2230_v12 = vpop.xlane.xlu1 %2229 }
 0xce0   : > { %v2233_v19 = vadd.f32 1e-05, %v2231_v18  ;;  %v2232_v20 = vmul.f32 0.03125, %v2230_v12 }
 0xce2   : > { %4674 = vrsqrt.f32 %v2233_v19  ;;  %v2234_v21 = vadd.f32 1e-05, %v2232_v20 }
 0xce4   : > { %4676 = vrsqrt.f32 %v2234_v21 }
 0xcec   : > { %v4675_v22 = vpop.eup %4674 }
 0xced   : > { %v2237_v24 = vmul.f32 %v4675_v22, %v2221_v6 }
 0xcee   : > { %v4677_v25 = vpop.eup %4676 }
 0xcef   : > { %v2245_v26 = vmul.f32 %v3885_v23, %v2237_v24  ;;  %v2238_v27 = vmul.f32 %v4677_v25, %v2222_v7 }
 0xcf1   : > { %v2246_v30 = vmul.f32 %v3885_v23, %v2238_v27  ;;  %v2253_v31 = vadd.f32 %v3886_v28, %v2245_v26 }
 0xcf3   : > { %v2254_v29 = vadd.f32 %v3886_v28, %v2246_v30 }
 0xcf5   : > { %v2255_v33 = vpack.c.bf16 %v2254_v29, %v2253_v31 }
 0xcf7   : > { %4229 = vmatmul.mubr.msk.bf16.vlgmr.msra.gmra.mrb[40].mxu1 %vm748_vm3, %v2255_v33  ;;  %4245 = vmatmul.mubr.msk.bf16.vlgmr.msra.gmra.mrb[52].mxu0 %vm748_vm3, %v2255_v33 }
 0xcf8   : > { %4233 = vmatpush3.bf16.msra.mxu1 %v4624_v32  ;;  %4236 = vmatprep.mubr.msk.bf16.mxu1 %vm4975_vm0, %v4974_v0 }
 0xcf9   : > { %4234 = vmatprep.subr.bf16.mxu1 %v4974_v0  ;;  %4256 = vmatprep.mubr.msk.bf16.mxu0 %vm4975_vm0, %v4974_v0 }
 0xcfc   : > { %4235 = vmatpush3.bf16.msra.mxu1 %v4625_v34 }
 0xcfd   : > { %4248 = vmatprep.subr.bf16.mxu1 %v4974_v0 }
 0xcff   : > { %4237 = vmatmul.mubr.msk.bf16.vlgmr.msra.gmra.mrb[44].mxu1 %vm748_vm3, %v2255_v33 }
 0xd00   : > { %4250 = vmatprep.mubr.msk.bf16.mxu1 %vm4975_vm0, %v4974_v0 }
 0xdca   : > { %v2318_v36 = vpop.f32.mrb[40].mxu1  ;;  %v2450_v37 = vpop.f32.mrb[52].mxu0 }
 0xdcb   : > { %v4230_v39 = vpop.f32.mrb[41].mxu1  ;;  %v4246_v40 = vpop.f32.mrb[53].mxu0  ;;  %v2319_v42 = vadd.f32 %v3891_v35, %v2318_v36  ;;  %v5634_v47 = vadd.f32 %v3908_v38, %v2450_v37 }
 0xdcc   : > { %v2321_v2 = vpop.f32.mrb[42].mxu1  ;;  %v2453_v41 = vpop.f32.mrb[54].mxu0 }
 0xdcd   : > { %v2322_v43 = vadd.f32 %v3891_v35, %v2321_v2  ;;  %v5632_v44 = vadd.f32 %v3908_v38, %v2453_v41  ;;  %v4231_v45 = vpop.f32.mrb[43].mxu1  ;;  %v4247_v46 = vpop.f32.mrb[55].mxu0  ;;  %v2477_v1 = vpack.c.bf16 %v2319_v42, %v2319_v42  ;;  %v2533_v38 = vpack.c.bf16 %v5634_v47, %v5634_v47 }
 0xdcf   : > { %v4551_v48 = vpack.i.bf16 %v2322_v43, %v2319_v42  ;;  %v5638_v50 = vpack.i.bf16 %v5632_v44, %v5634_v47  ;;  %v2478_v3 = vpack.c.bf16 %v2322_v43, %v2322_v43  ;;  %v2534_v39 = vpack.c.bf16 %v5632_v44, %v5632_v44 }
 0xdd0   : > { %v3009_v41 = vsel %vm1540_vm5, %v2533_v38, 0 }
 0xdd1   : > { %4552 = vrot.lane.b32.xlu1 %v4551_v48, %s4976_s14  ;;  %v3055_v42 = vsel %vm1540_vm5, %v2534_v39, 0 }
 0xdd2   : > { %v2384_v51 = vpop.f32.mrb[44].mxu1 }
 0xdd3   : > { %v2385_v52 = vadd.f32 %v3899_v49, %v2384_v51  ;;  %v4238_v53 = vpop.f32.mrb[45].mxu1 }
 0xdd4   : > { %v2387_v54 = vpop.f32.mrb[46].mxu1 }
 0xdd5   : > { %v2388_v55 = vadd.f32 %v3899_v49, %v2387_v54  ;;  %v4239_v56 = vpop.f32.mrb[47].mxu1  ;;  %v2505_v57 = vpack.c.bf16 %v2385_v52, %v2385_v52 }
 0xdd7   : > { %v2545_v59 = vsel %vm1072_vm4, %v2505_v57, 0  ;;  %v4556_v60 = vpack.i.bf16 %v2388_v55, %v2385_v52  ;;  %v2506_v62 = vpack.c.bf16 %v2388_v55, %v2388_v55 }
 0xdd8   : > { %4249 = vmatpush3.bf16.xpose.msra.mxu1 %v2545_v59 }
 0xdd9   : > { %4557 = vrot.lane.b32.xlu1 %v4556_v60, %s4977_s20  ;;  %4547 = vrot.lane.b32.xlu0 %v4556_v60, %s4976_s14  ;;  %v2591_v63 = vsel %vm1072_vm4, %v2506_v62, 0 }
 0xdda   : > { %4255 = vmatpush3.bf16.xpose.msra.mxu0 %v2591_v63  ;;  %4260 = vmatprep.subr.bf16.mxu1 %v4974_v0 }
 0xddb   : > { %4266 = vmatprep.subr.bf16.mxu0 %v4974_v0 }
 0xddd   : > { %4562 = vrot.lane.b32.xlu1 %v4551_v48, %s4977_s20  ;;  %4567 = vrot.lane.b32.xlu0 %v4556_v60, %s4978_s13 }
 0xddf   : > { %4251 = vmatmul.mubr.msk.bf16.vlgmr.msra.gmra.mrb[48].mxu1 %vm1072_vm4, %v2477_v1 }
 0xde0   : > { %4262 = vmatprep.mubr.msk.bf16.mxu1 %vm4975_vm0, %v4974_v0 }
 0xde1   : > { %4572 = vrot.lane.b32.xlu1 %v4551_v48, %s4978_s13  ;;  %4257 = vmatmul.mubr.msk.bf16.vlgmr.msra.gmra.mrb[56].mxu0 %vm1072_vm4, %v2478_v3 }
 0xde2   : > { %4268 = vmatprep.mubr.msk.bf16.mxu0 %vm4975_vm0, %v4974_v0 }
 0xe43   : > { %v4553_v4 = vpop.permute.xlu1 %4552 }
 0xe44   : > { %v4554_v9 = vunpack.i.l.bf16 %v4553_v4  ;;  %v4555_v17 = vunpack.i.h.bf16 %v4553_v4 }
 0xe46   : > { %v2479_v20 = vpack.c.bf16 %v4554_v9, %v4554_v9  ;;  %v2480_v21 = vpack.c.bf16 %v4555_v17, %v4555_v17 }
 0xe4b   : > { %v4548_v6 = vpop.permute.xlu0 %4547  ;;  %v4558_v10 = vpop.permute.xlu1 %4557 }
 0xe4c   : > { %v4550_v5 = vunpack.i.h.bf16 %v4548_v6  ;;  %v4549_v7 = vunpack.i.l.bf16 %v4548_v6  ;;  %v4559_v13 = vunpack.i.l.bf16 %v4558_v10  ;;  %v4560_v16 = vunpack.i.h.bf16 %v4558_v10 }
 0xe4e   : > { %v2508_v8 = vpack.c.bf16 %v4550_v5, %v4550_v5  ;;  %v2507_v11 = vpack.c.bf16 %v4549_v7, %v4549_v7  ;;  %v2509_v18 = vpack.c.bf16 %v4559_v13, %v4559_v13  ;;  %v2510_v12 = vpack.c.bf16 %v4560_v16, %v4560_v16 }
 0xe4f   : > { %v4568_v19 = vpop.permute.xlu0 %4567  ;;  %v4563_v22 = vpop.permute.xlu1 %4562 }
 0xe50   : > { %v2637_v14 = vsel %vm1072_vm4, %v2507_v11, 0  ;;  %v2683_v15 = vsel %vm1072_vm4, %v2508_v8, 0  ;;  %v4569_v23 = vunpack.i.l.bf16 %v4568_v19  ;;  %v2729_v24 = vsel %vm1072_vm4, %v2509_v18, 0 }
 0xe51   : > { %4261 = vmatpush3.bf16.xpose.msra.mxu1 %v2637_v14  ;;  %4267 = vmatpush3.bf16.xpose.msra.mxu0 %v2683_v15  ;;  %v4570_v25 = vunpack.i.h.bf16 %v4568_v19  ;;  %v2775_v26 = vsel %vm1072_vm4, %v2510_v12, 0  ;;  %v4564_v27 = vunpack.i.l.bf16 %v4563_v22  ;;  %v4565_v28 = vunpack.i.h.bf16 %v4563_v22 }
 0xe52   : > { %4272 = vmatprep.subr.bf16.mxu1 %v4974_v0  ;;  %4278 = vmatprep.subr.bf16.mxu0 %v4974_v0  ;;  %v2511_v30 = vpack.c.bf16 %v4569_v23, %v4569_v23 }
 0xe53   : > { %v2512_v31 = vpack.c.bf16 %v4570_v25, %v4570_v25  ;;  %v2481_v29 = vpack.c.bf16 %v4564_v27, %v4564_v27  ;;  %v2482_v32 = vpack.c.bf16 %v4565_v28, %v4565_v28  ;;  %v4573_v33 = vpop.permute.xlu1 %4572 }
 0xe54   : > { %v2821_v34 = vsel %vm1072_vm4, %v2511_v30, 0  ;;  %v4574_v36 = vunpack.i.l.bf16 %v4573_v33  ;;  %v4575_v37 = vunpack.i.h.bf16 %v4573_v33 }
 0xe55   : > { %v2867_v35 = vsel %vm1072_vm4, %v2512_v31, 0 }
 0xe56   : > { %v2483_v40 = vpack.c.bf16 %v4574_v36, %v4574_v36  ;;  %v2484_v2 = vpack.c.bf16 %v4575_v37, %v4575_v37 }
 0xe58   : > { %4263 = vmatmul.mubr.msk.bf16.vlgmr.msra.gmra.mrb[52].mxu1 %vm1072_vm4, %v2479_v20  ;;  %4269 = vmatmul.mubr.msk.bf16.vlgmr.msra.gmra.mrb[60].mxu0 %vm1072_vm4, %v2480_v21 }
 0xe59   : > { %4273 = vmatpush3.bf16.xpose.msra.mxu1 %v2729_v24  ;;  %4279 = vmatpush3.bf16.xpose.msra.mxu0 %v2775_v26 }
 0xe5a   : > { %4274 = vmatprep.mubr.msk.bf16.mxu1 %vm4975_vm0, %v4974_v0  ;;  %4280 = vmatprep.mubr.msk.bf16.mxu0 %vm4975_vm0, %v4974_v0 }
 0xe5b   : > { %4284 = vmatprep.subr.bf16.mxu1 %v4974_v0  ;;  %4290 = vmatprep.subr.bf16.mxu0 %v4974_v0 }
 0xe60   : > { %4275 = vmatmul.mubr.msk.bf16.vlgmr.msra.gmra.mrb[56].mxu1 %vm1072_vm4, %v2481_v29  ;;  %4281 = vmatmul.mubr.msk.bf16.vlgmr.msra.gmra.mrb[64].mxu0 %vm1072_vm4, %v2482_v32 }
 0xe61   : > { %4285 = vmatpush3.bf16.xpose.msra.mxu1 %v2821_v34  ;;  %4291 = vmatpush3.bf16.xpose.msra.mxu0 %v2867_v35 }
 0xe62   : > { %4286 = vmatprep.mubr.msk.bf16.mxu1 %vm4975_vm0, %v4974_v0  ;;  %4292 = vmatprep.mubr.msk.bf16.mxu0 %vm4975_vm0, %v4974_v0 }
 0xe63   : > { %4296 = vmatprep.subr.bf16.mxu1 %v4974_v0  ;;  %4302 = vmatprep.subr.bf16.mxu0 %v4974_v0 }
 0xe68   : > { %4287 = vmatmul.mubr.msk.bf16.vlgmr.msra.gmra.mrb[60].mxu1 %vm1072_vm4, %v2483_v40  ;;  %4293 = vmatmul.mubr.msk.bf16.vlgmr.msra.gmra.mrb[68].mxu0 %vm1072_vm4, %v2484_v2 }
 0xe69   : > { %4297 = vmatpush3.bf16.msra.mxu1 %v3009_v41  ;;  %4303 = vmatpush3.bf16.msra.mxu0 %v3055_v42 }
 0xe6a   : > { %4298 = vmatprep.mubr.msk.bf16.mxu1 %vm4975_vm0, %v4974_v0  ;;  %4304 = vmatprep.mubr.msk.bf16.mxu0 %vm4975_vm0, %v4974_v0 }
 0xe6b   : > { %4308 = vmatprep.subr.bf16.mxu1 %v4974_v0  ;;  %4314 = vmatprep.subr.bf16.mxu0 %v4974_v0 }
 0xeb2   : > { %v2581_v43 = vpop.f32.mrb[48].mxu1 }
 0xeb3   : > { %v4252_v44 = vpop.f32.mrb[49].mxu1  ;;  %v2909_v45 = vsel %vm1072_vm4, %v2581_v43, -inf }
 0xeb4   : > { %2910 = vmax.xlane.f32.xlu0 %v2909_v45  ;;  %v2584_v46 = vpop.f32.mrb[50].mxu1  ;;  %v2627_v47 = vpop.f32.mrb[56].mxu0 }
 0xeb5   : > { %v4253_v48 = vpop.f32.mrb[51].mxu1  ;;  %v4258_v49 = vpop.f32.mrb[57].mxu0  ;;  %v2912_v51 = vsel %vm1072_vm4, %v2627_v47, -inf }
 0xeb6   : > { %2913 = vmax.xlane.f32.xlu1 %v2912_v51  ;;  %v2630_v52 = vpop.f32.mrb[58].mxu0 }
 0xeb7   : > { %v4259_v53 = vpop.f32.mrb[59].mxu0 }
 0xf2b   : > { %v2673_v54 = vpop.f32.mrb[52].mxu1  ;;  %v2719_v55 = vpop.f32.mrb[60].mxu0 }
 0xf2c   : > { %v4264_v56 = vpop.f32.mrb[53].mxu1  ;;  %v2915_v57 = vsel %vm1072_vm4, %v2673_v54, -inf  ;;  %v4270_v59 = vpop.f32.mrb[61].mxu0  ;;  %v2918_v3 = vsel %vm1072_vm4, %v2719_v55, -inf }
 0xf2d   : > { %2916 = vmax.xlane.f32.xlu0 %v2915_v57  ;;  %v2676_v60 = vpop.f32.mrb[54].mxu1  ;;  %v2722_v62 = vpop.f32.mrb[62].mxu0 }
 0xf2e   : > { %v4265_v63 = vpop.f32.mrb[55].mxu1  ;;  %v4271_v1 = vpop.f32.mrb[63].mxu0 }
 0xf31   : > { %2919 = vmax.xlane.f32.xlu0 %v2918_v3 }
 0xf33   : > { %v2765_v4 = vpop.f32.mrb[56].mxu1  ;;  %v2811_v6 = vpop.f32.mrb[64].mxu0 }
 0xf34   : > { %v4276_v5 = vpop.f32.mrb[57].mxu1  ;;  %v2921_v7 = vsel %vm1072_vm4, %v2765_v4, -inf  ;;  %v4282_v10 = vpop.f32.mrb[65].mxu0  ;;  %v2924_v11 = vsel %vm1072_vm4, %v2811_v6, -inf }
 0xf35   : > { %v2768_v8 = vpop.f32.mrb[58].mxu1  ;;  %2922 = vmax.xlane.f32.xlu0 %v2921_v7  ;;  %2925 = vmax.xlane.f32.xlu1 %v2924_v11  ;;  %v2814_v13 = vpop.f32.mrb[66].mxu0 }
 0xf36   : > { %v4277_v14 = vpop.f32.mrb[59].mxu1  ;;  %v4283_v15 = vpop.f32.mrb[67].mxu0 }
 0xf3b   : > { %v2857_v16 = vpop.f32.mrb[60].mxu1  ;;  %v5700_v9 = vpop.f32.mrb[68].mxu0 }
 0xf3c   : > { %v4288_v17 = vpop.f32.mrb[61].mxu1  ;;  %v2927_v18 = vsel %vm1072_vm4, %v2857_v16, -inf  ;;  %v4294_v12 = vpop.f32.mrb[69].mxu0  ;;  %v2930_v20 = vsel %vm1072_vm4, %v5700_v9, -inf }
 0xf3d   : > { %v2860_v19 = vpop.f32.mrb[62].mxu1  ;;  %2928 = vmax.xlane.f32.xlu0 %v2927_v18  ;;  %2931 = vmax.xlane.f32.xlu1 %v2930_v20  ;;  %v2906_v21 = vpop.f32.mrb[70].mxu0 }
 0xf3e   : > { %v4289_v22 = vpop.f32.mrb[63].mxu1  ;;  %v4295_v23 = vpop.f32.mrb[71].mxu0 }
 0xf41   : > { %v2911_v24 = vpop.xlane.xlu0 %2910 }
 0xf42   : > { %v2933_v25 = vsub.f32 %v2581_v43, %v2911_v24 }
 0xf43   : > { %v2914_v26 = vpop.xlane.xlu1 %2913 }
 0xf44   : > { %v2941_v27 = vmul.f32 1.442695, %v2933_v25  ;;  %v2934_v28 = vsub.f32 %v2627_v47, %v2914_v26 }
 0xf46   : > { %4678 = vpow2.f32 %v2941_v27  ;;  %v2943_v30 = vmul.f32 1.442695, %v2934_v28 }
 0xf48   : > { %4680 = vpow2.f32 %v2943_v30 }
 0xf50   : > { %v4679_v31 = vpop.eup %4678 }
 0xf51   : > { %v2957_v29 = vsel %vm1072_vm4, %v4679_v31, 0.0 }
 0xf52   : > { %v4681_v32 = vpop.eup %4680  ;;  %2958 = vadd.xlane.f32.xlu0 %v2957_v29 }
 0xf53   : > { %v2960_v33 = vsel %vm1072_vm4, %v4681_v32, 0.0 }
 0xf54   : > { %2961 = vadd.xlane.f32.xlu1 %v2960_v33 }
 0xfba   : > { %v2917_v34 = vpop.xlane.xlu0 %2916 }
 0xfbb   : > { %v2935_v35 = vsub.f32 %v2673_v54, %v2917_v34 }
 0xfbd   : > { %v2945_v36 = vmul.f32 1.442695, %v2935_v35 }
 0xfbe   : > { %v2920_v37 = vpop.xlane.xlu0 %2919 }
 0xfbf   : > { %4682 = vpow2.f32 %v2945_v36  ;;  %v2936_v38 = vsub.f32 %v2719_v55, %v2920_v37 }
 0xfc1   : > { %v2947_v39 = vmul.f32 1.442695, %v2936_v38 }
 0xfc2   : > { %v2923_v40 = vpop.xlane.xlu0 %2922  ;;  %v2926_v41 = vpop.xlane.xlu1 %2925 }
 0xfc3   : > { %4684 = vpow2.f32 %v2947_v39  ;;  %v2937_v2 = vsub.f32 %v2765_v4, %v2923_v40  ;;  %v2938_v42 = vsub.f32 %v2811_v6, %v2926_v41 }
 0xfc5   : > { %v2949_v43 = vmul.f32 1.442695, %v2937_v2  ;;  %v2951_v44 = vmul.f32 1.442695, %v2938_v42 }
 0xfc7   : > { %4686 = vpow2.f32 %v2949_v43 }
 0xfc8   : > { %4688 = vpow2.f32 %v2951_v44 }
 0xfc9   : > { %v4683_v45 = vpop.eup %4682 }
 0xfca   : > { %v2929_v46 = vpop.xlane.xlu0 %2928  ;;  %v2963_v47 = vsel %vm1072_vm4, %v4683_v45, 0.0  ;;  %v2932_v60 = vpop.xlane.xlu1 %2931 }
 0xfcb   : > { %v2939_v48 = vsub.f32 %v2857_v16, %v2929_v46  ;;  %2964 = vadd.xlane.f32.xlu0 %v2963_v47  ;;  %v2940_v10 = vsub.f32 %v5700_v9, %v2932_v60 }
 0xfcd   : > { %v4685_v49 = vpop.eup %4684  ;;  %v2953_v51 = vmul.f32 1.442695, %v2939_v48  ;;  %v2955_v8 = vmul.f32 1.442695, %v2940_v10 }
 0xfce   : > { %v2966_v52 = vsel %vm1072_vm4, %v4685_v49, 0.0 }
 0xfcf   : > { %4690 = vpow2.f32 %v2953_v51  ;;  %2967 = vadd.xlane.f32.xlu1 %v2966_v52 }
 0xfd1   : > { %v5709_v53 = vpop.eup %4686 }
 0xfd2   : > { %v5711_v54 = vpop.eup %4688  ;;  %v2969_v55 = vsel %vm1072_vm4, %v5709_v53, 0.0 }
 0xfd3   : > { %2970 = vadd.xlane.f32.xlu0 %v2969_v55  ;;  %v2972_v56 = vsel %vm1072_vm4, %v5711_v54, 0.0 }
 0xfd4   : > { %2973 = vadd.xlane.f32.xlu1 %v2972_v56 }
 0xfd9   : > { %v5717_v57 = vpop.eup %4690 }
 0xfda   : > { %v2975_v59 = vsel %vm1072_vm4, %v5717_v57, 0.0 }
 0xfdb   : > { %2976 = vadd.xlane.f32.xlu0 %v2975_v59 }
 0xfdf   : > { %v2959_v62 = vpop.xlane.xlu0 %2958 }
 0xfe0   : > { %4692 = vrcp.f32 %v2959_v62 }
 0xfe1   : > { %v2962_v63 = vpop.xlane.xlu1 %2961 }
 0xfe2   : > { %4694 = vrcp.f32 %v2962_v63 }
 0xfe3   : > { %4696 = vpow2.f32 %v2955_v8 }
 0xfe5   : > { %4582 = vrot.lane.b32.xlu1 %v5638_v50, %s4977_s20 }
 0xfea   : > { %v4693_v1 = vpop.eup %4692 }
 0xfeb   : > { %v2989_v3 = vmul.f32 %v4693_v1, %v4679_v31 }
 0xfec   : > { %v4695_v4 = vpop.eup %4694 }
 0xfed   : > { %v2990_v6 = vmul.f32 %v4695_v4, %v4681_v32  ;;  %v2997_v5 = vpack.c.bf16 %v2989_v3, %v2989_v3  ;;  %v5732_v11 = vpop.eup %4696 }
 0xfee   : > { %v2978_v13 = vsel %vm1072_vm4, %v5732_v11, 0.0 }
 0xfef   : > { %4299 = vmatmul.mubr.msk.bf16.vlgmr.msra.gmra.mrb[64].mxu1 %vm1072_vm4, %v2997_v5  ;;  %v2998_v7 = vpack.c.bf16 %v2990_v6, %v2990_v6  ;;  %v4626_v5 = vld [vmem:[%s5901_s11 + $0x10] sm:$0xff]  }
 0xff0   : > { %4310 = vmatprep.mubr.msk.bf16.mxu1 %vm4975_vm0, %v4974_v0 }
 0xff1   : > { %4305 = vmatmul.mubr.msk.bf16.vlgmr.msra.gmra.mrb[72].mxu0 %vm1072_vm4, %v2998_v7  ;;  %4577 = vrot.lane.b32.xlu0 %v5638_v50, %s4976_s14  ;;  %s5979_s14 = sld [smem:[#allocation36_spill]] }
 0xff2   : > { %4316 = vmatprep.mubr.msk.bf16.mxu0 %vm4975_vm0, %v4974_v0 }
 0xff7   : > { %s5848_s20 = scalar_lea.hbm %s5979_s14, %s3961_s0 }
0x1009   : > { %2979 = vadd.xlane.f32.xlu1 %v2978_v13 }
0x101a   : > { %4587 = vrot.lane.b32.xlu1 %v5638_v50, %s4978_s13 }
0x1058   : > { %v2965_v14 = vpop.xlane.xlu0 %2964 }
0x1059   : > { %4698 = vrcp.f32 %v2965_v14 }
0x105c   : > { %v2968_v15 = vpop.xlane.xlu1 %2967 }
0x105d   : > { %4700 = vrcp.f32 %v2968_v15 }
0x1060   : > { %v2971_v16 = vpop.xlane.xlu0 %2970 }
0x1061   : > { %v2974_v17 = vpop.xlane.xlu1 %2973  ;;  %4702 = vrcp.f32 %v2971_v16 }
0x1062   : > { %4704 = vrcp.f32 %v2974_v17 }
0x1063   : > { %v4699_v12 = vpop.eup %4698 }
0x1064   : > { %v2991_v25 = vmul.f32 %v4699_v12, %v4683_v45 }
0x1065   : > { %v4583_v9 = vpop.permute.xlu1 %4582 }
0x1066   : > { %v4585_v21 = vunpack.i.h.bf16 %v4583_v9  ;;  %v4584_v22 = vunpack.i.l.bf16 %v4583_v9  ;;  %v2999_v33 = vpack.c.bf16 %v2991_v25, %v2991_v25 }
0x1067   : > { %v4701_v19 = vpop.eup %4700 }
0x1068   : > { %v2977_v18 = vpop.xlane.xlu0 %2976  ;;  %v2992_v26 = vmul.f32 %v4701_v19, %v4685_v49  ;;  %v2538_v28 = vpack.c.bf16 %v4585_v21, %v4585_v21  ;;  %v2537_v30 = vpack.c.bf16 %v4584_v22, %v4584_v22 }
0x1069   : > { %4706 = vrcp.f32 %v2977_v18 }
0x106a   : > { %v3000_v34 = vpack.c.bf16 %v2992_v26, %v2992_v26  ;;  %v3193_v36 = vsel %vm1540_vm5, %v2537_v30, 0  ;;  %v3239_v37 = vsel %vm1540_vm5, %v2538_v28, 0 }
0x106b   : > { %v4703_v32 = vpop.eup %4702 }
0x106c   : > { %v4578_v20 = vpop.permute.xlu0 %4577  ;;  %v4705_v35 = vpop.eup %4704  ;;  %v2993_v38 = vmul.f32 %v4703_v32, %v5709_v53 }
0x106d   : > { %v4580_v23 = vunpack.i.h.bf16 %v4578_v20  ;;  %v4579_v24 = vunpack.i.l.bf16 %v4578_v20  ;;  %v2994_v39 = vmul.f32 %v4705_v35, %v5711_v54 }
0x106e   : > { %v3001_v40 = vpack.c.bf16 %v2993_v38, %v2993_v38 }
0x106f   : > { %v2536_v50 = vpack.c.bf16 %v4580_v23, %v4580_v23  ;;  %v2535_v27 = vpack.c.bf16 %v4579_v24, %v4579_v24  ;;  %v3002_v2 = vpack.c.bf16 %v2994_v39, %v2994_v39  ;;  %v4627_v23 = vld [vmem:[%s5901_s11 + $0x18] sm:$0xff]  }
0x1071   : > { %v3101_v31 = vsel %vm1540_vm5, %v2535_v27, 0  ;;  %v3147_v29 = vsel %vm1540_vm5, %v2536_v50, 0 }
0x1072   : > { %4309 = vmatpush3.bf16.msra.mxu1 %v3101_v31  ;;  %4315 = vmatpush3.bf16.msra.mxu0 %v3147_v29 }
0x1073   : > { %4320 = vmatprep.subr.bf16.mxu1 %v4974_v0  ;;  %4326 = vmatprep.subr.bf16.mxu0 %v4974_v0  ;;  %v4707_v42 = vpop.eup %4706 }
0x1074   : > { %v2995_v46 = vmul.f32 %v4707_v42, %v5717_v57 }
0x1075   : > { %4311 = vmatmul.mubr.msk.bf16.vlgmr.msra.gmra.mrb[68].mxu1 %vm1072_vm4, %v2999_v33  ;;  %4317 = vmatmul.mubr.msk.bf16.vlgmr.msra.gmra.mrb[76].mxu0 %vm1072_vm4, %v3000_v34 }
0x1076   : > { %4321 = vmatpush3.bf16.msra.mxu1 %v3193_v36  ;;  %4327 = vmatpush3.bf16.msra.mxu0 %v3239_v37  ;;  %v3003_v53 = vpack.c.bf16 %v2995_v46, %v2995_v46 }
0x1077   : > { %4322 = vmatprep.mubr.msk.bf16.mxu1 %vm4975_vm0, %v4974_v0  ;;  %4328 = vmatprep.mubr.msk.bf16.mxu0 %vm4975_vm0, %v4974_v0 }
0x1078   : > { %4332 = vmatprep.subr.bf16.mxu1 %v4974_v0  ;;  %4338 = vmatprep.subr.bf16.mxu0 %v4974_v0 }
0x107d   : > { %4323 = vmatmul.mubr.msk.bf16.vlgmr.msra.gmra.mrb[72].mxu1 %vm1072_vm4, %v3001_v40  ;;  %4329 = vmatmul.mubr.msk.bf16.vlgmr.msra.gmra.mrb[80].mxu0 %vm1072_vm4, %v3002_v2 }
0x107e   : > { %4334 = vmatprep.mubr.msk.bf16.mxu1 %vm4975_vm0, %v4974_v0  ;;  %4340 = vmatprep.mubr.msk.bf16.mxu0 %vm4975_vm0, %v4974_v0 }
0x1096   : > { %v2980_v41 = vpop.xlane.xlu1 %2979 }
0x1097   : > { %4708 = vrcp.f32 %v2980_v41 }
0x109a   : > { %v4588_v43 = vpop.permute.xlu1 %4587 }
0x109b   : > { %v4590_v44 = vunpack.i.h.bf16 %v4588_v43  ;;  %v4589_v45 = vunpack.i.l.bf16 %v4588_v43 }
0x109d   : > { %v2540_v47 = vpack.c.bf16 %v4590_v44, %v4590_v44  ;;  %v2539_v48 = vpack.c.bf16 %v4589_v45, %v4589_v45 }
0x109f   : > { %v3285_v49 = vsel %vm1540_vm5, %v2539_v48, 0  ;;  %v3331_v51 = vsel %vm1540_vm5, %v2540_v47, 0  ;;  %v3933_v47 = vld [vmem:[%s5902_s12 + $0x1] ss:$0 sm:$0xff] }
0x10a0   : > { %4333 = vmatpush3.bf16.msra.mxu1 %v3285_v49  ;;  %4339 = vmatpush3.bf16.msra.mxu0 %v3331_v51 }
0x10a1   : > { %v4709_v52 = vpop.eup %4708  ;;  %4344 = vmatprep.subr.bf16.mxu1 %v4974_v0  ;;  %4352 = vmatprep.subr.bf16.mxu0 %v4974_v0 }
0x10a2   : > { %v2996_v54 = vmul.f32 %v4709_v52, %v5732_v11 }
0x10a3   : > { %4335 = vmatmul.mubr.msk.bf16.vlgmr.msra.gmra.mrb[76].mxu1 %vm1072_vm4, %v3003_v53 }
0x10a4   : > { %v3004_v55 = vpack.c.bf16 %v2996_v54, %v2996_v54  ;;  %4348 = vmatprep.mubr.msk.bf16.mxu1 %vm4975_vm0, %v4974_v0  ;;  %4345 = vmatpush3.bf16.msra.mxu1 %v4626_v5 }
0x10a5   : > { %4346 = vmatprep.subr.bf16.mxu1 %v4974_v0 }
0x10a6   : > { %4341 = vmatmul.mubr.msk.bf16.vlgmr.msra.gmra.mrb[84].mxu0 %vm1072_vm4, %v3004_v55 }
0x10a7   : > { %4356 = vmatprep.mubr.msk.bf16.mxu0 %vm4975_vm0, %v4974_v0 }
0x10a8   : > { %4347 = vmatpush3.bf16.msra.mxu1 %v4627_v23  ;;  %v3940_v23 = vld [vmem:[%s5974_s18 + $0x1] ss:$0 sm:$0xff] }
0x10a9   : > { %4360 = vmatprep.subr.bf16.mxu1 %v4974_v0 }
0x10c2   : > { %v3045_v56 = vpop.f32.mrb[64].mxu1 }
0x10c3   : > { %v4300_v57 = vpop.f32.mrb[65].mxu1 }
0x10c4   : > { %v3048_v59 = vpop.f32.mrb[66].mxu1  ;;  %v3091_v60 = vpop.f32.mrb[72].mxu0 }
0x10c5   : > { %v4301_v62 = vpop.f32.mrb[67].mxu1  ;;  %v4306_v63 = vpop.f32.mrb[73].mxu0 }
0x10c6   : > { %v3094_v1 = vpop.f32.mrb[74].mxu0 }
0x10c7   : > { %v4307_v3 = vpop.f32.mrb[75].mxu0 }
0x1148   : > { %v3137_v4 = vpop.f32.mrb[68].mxu1  ;;  %v3183_v6 = vpop.f32.mrb[76].mxu0 }
0x1149   : > { %v4591_v7 = vpack.i.bf16 %v3183_v6, %v3137_v4  ;;  %v4312_v10 = vpop.f32.mrb[69].mxu1  ;;  %v4318_v8 = vpop.f32.mrb[77].mxu0 }
0x114a   : > { %v3140_v11 = vpop.f32.mrb[70].mxu1  ;;  %v3186_v13 = vpop.f32.mrb[78].mxu0  ;;  %v4629_v10 = vld [vmem:[#allocation11 + $0x18] sm:$0xff]   ;;  %v4630_v8 = vld [vmem:[%s5907_s17 + $0x20] sm:$0xff]  }
0x114b   : > { %v4313_v14 = vpop.f32.mrb[71].mxu1  ;;  %4592 = vrot.lane.b32.xlu1 %v4591_v7, %s4979_s24  ;;  %v4319_v15 = vpop.f32.mrb[79].mxu0  ;;  %v4628_v7 = vld [vmem:[#allocation11 + $0x10] sm:$0xff]   ;;  %s4886_s24 = sshll.u32 %s4982_s1, 4  ;;  %s4887_s24 = int_to_ptr.vmem [resolvable:$false] %s4886_s24 }
0x114c   : > { %4353 = vmatpush3.bf16.msra.mxu0 %v4628_v7  ;;  %v4631_v11 = vld [vmem:[%s5907_s17 + $0x28] sm:$0xff]  }
0x114d   : > { %4354 = vmatprep.subr.bf16.mxu0 %v4974_v0 }
0x1150   : > { %v3229_v16 = vpop.f32.mrb[72].mxu1  ;;  %v3275_v17 = vpop.f32.mrb[80].mxu0  ;;  %4355 = vmatpush3.bf16.msra.mxu0 %v4629_v10 }
0x1151   : > { %v4596_v18 = vpack.i.bf16 %v3275_v17, %v3229_v16  ;;  %v4324_v9 = vpop.f32.mrb[73].mxu1  ;;  %v4330_v12 = vpop.f32.mrb[81].mxu0 }
0x1152   : > { %v3232_v19 = vpop.f32.mrb[74].mxu1  ;;  %v3278_v20 = vpop.f32.mrb[82].mxu0 }
0x1153   : > { %v4325_v21 = vpop.f32.mrb[75].mxu1  ;;  %4597 = vrot.lane.b32.xlu0 %v4596_v18, %s4980_s16  ;;  %v4331_v22 = vpop.f32.mrb[83].mxu0  ;;  %v3939_v19 = vld [vmem:[%s5973_s23 + $0x1] ss:$0 sm:$0xff]  ;;  %s5977_s16 = sld [smem:[#allocation20_spill]] }
0x1159   : > { %s682_s27 = sand.u32 1, %s5977_s16   ;;  %s4888_s16 = scalar_lea.vmem %s4887_s24, 32 }
0x115a   : > { %s683_s30 = scalar_lea.vmem [#allocation13], %s682_s27  ;;  %s3693_s13 = scalar_lea.sflag [#allocation4], %s682_s27 }
0x115b   : > { %s3705_s19 = sshll.u32 %s683_s30, 4  ;;  %s5850_s19 = int_to_ptr.vmem [resolvable:$true] %s3705_s19 }
0x115c   : > { %s4882_s25 = scalar_lea.vmem %s5850_s19, 16  ;;  %p4889_p5 = scmp.lt.s32.totalorder %s5850_s19, %s4887_s24 }
0x115d   : > { %p4883_p13 = scmp.ne.s32.totalorder %s5850_s19, %s4882_s25  ;;  %p4890_p10 = scmp.lt.s32.totalorder %s4888_s16, %s4882_s25 }
0x115f   : > { %p4884_p6 = pnand %p4883_p13, %p5980_p1  ;;  %p4891_p0 = por %p4890_p10, %p4889_p5 }
0x1161   : > { %p4885_p9 = pneg %p4884_p6 }
0x1163   : > { %p4892_p2 = pnand %p4891_p0, %p4885_p9 }
0x1176   : > { %v3321_v24 = vpop.f32.mrb[76].mxu1 }
0x1177   : > { %v4336_v25 = vpop.f32.mrb[77].mxu1 }
0x1178   : > { %v3324_v26 = vpop.f32.mrb[78].mxu1 }
0x1179   : > { %v4337_v50 = vpop.f32.mrb[79].mxu1  ;;  %v3367_v27 = vpop.f32.mrb[84].mxu0 }
0x117a   : > { %v4601_v28 = vpack.i.bf16 %v3367_v27, %v3321_v24  ;;  %v4342_v30 = vpop.f32.mrb[85].mxu0  ;;  %v4632_v27 = vld [vmem:[%s5907_s17 + $0x30] sm:$0xff]  }
0x117b   : > { %v3370_v31 = vpop.f32.mrb[86].mxu0  ;;  %v3942_v30 = vld [vmem:[%s5975_s3 + $0x1] ss:$0 sm:$0xff] }
0x117c   : > { %4602 = vrot.lane.b32.xlu1 %v4601_v28, %s4981_s26  ;;  %v4343_v29 = vpop.f32.mrb[87].mxu0  ;;  %v4633_v28 = vld [vmem:[%s5907_s17 + $0x38] sm:$0xff]  }
0x11bd   : > { %v4593_v32 = vpop.permute.xlu1 %4592 }
0x11be   : > { %v4595_v34 = vunpack.i.h.bf16 %v4593_v32  ;;  %v4594_v35 = vunpack.i.l.bf16 %v4593_v32 }
0x11c0   : > { %v3398_v39 = vsel %vm1072_vm4, %v3091_v60, %v4595_v34  ;;  %v3397_v40 = vsel %vm1072_vm4, %v3045_v56, %v4594_v35 }
0x11c5   : > { %v4598_v33 = vpop.permute.xlu0 %4597 }
0x11c6   : > { %v4600_v36 = vunpack.i.h.bf16 %v4598_v33  ;;  %v4599_v37 = vunpack.i.l.bf16 %v4598_v33 }
0x11c8   : > { %v3400_v42 = vsel %vm1932_vm6, %v3398_v39, %v4600_v36  ;;  %v3399_v43 = vsel %vm1932_vm6, %v3397_v40, %v4599_v37 }
0x11ee   : > { %v4603_v38 = vpop.permute.xlu1 %4602 }
0x11ef   : > { %v4605_v2 = vunpack.i.h.bf16 %v4603_v38  ;;  %v4604_v41 = vunpack.i.l.bf16 %v4603_v38 }
0x11f1   : > { %v3402_v44 = vsel %vm1935_vm7, %v3400_v42, %v4605_v2  ;;  %v3401_v45 = vsel %vm1935_vm7, %v3399_v43, %v4604_v41 }
0x11f2   : > { %v3403_v46 = vpack.c.bf16 %v3402_v44, %v3401_v45 }
0x11f4   : > { %4349 = vmatmul.mubr.msk.bf16.vlgmr.msra.gmra.mrb[80].mxu1 %vm748_vm3, %v3403_v46 }
0x11f5   : > { %4368 = vmatprep.mubr.msk.bf16.mxu1 %vm4975_vm0, %v4974_v0  ;;  %4361 = vmatpush3.bf16.msra.mxu1 %v4630_v8 }
0x11f6   : > { %4362 = vmatprep.subr.bf16.mxu1 %v4974_v0 }
0x11f9   : > { %4363 = vmatpush3.bf16.msra.mxu1 %v4631_v11 }
0x11fa   : > { %4364 = vmatprep.subr.bf16.mxu1 %v4974_v0 }
0x11fd   : > { %4365 = vmatpush3.bf16.msra.mxu1 %v4632_v27 }
0x11fe   : > { %4366 = vmatprep.subr.bf16.mxu1 %v4974_v0  ;;  %v3955_v0 = vld [vmem:[%s5976_s28 + $0x1] ss:$0 sm:$0xff] }
0x1201   : > { %4367 = vmatpush3.bf16.msra.mxu1 %v4633_v28 }
0x12c7   : > { %v3466_v48 = vpop.f32.mrb[80].mxu1 }
0x12c8   : > { %v3467_v49 = vadd.f32 %v3933_v47, %v3466_v48  ;;  %v4350_v51 = vpop.f32.mrb[81].mxu1 }
0x12c9   : > { %v3469_v52 = vpop.f32.mrb[82].mxu1 }
0x12ca   : > { %v5796_v53 = vadd.f32 %v3467_v49, %v5583_v58  ;;  %v3470_v54 = vadd.f32 %v3933_v47, %v3469_v52  ;;  %v4351_v55 = vpop.f32.mrb[83].mxu1 }
0x12cc   : > { %v5799_v56 = vadd.f32 %v3470_v54, %v5586_v61  ;;  %v3479_v57 = vsel %vm748_vm3, %v5796_v53, 0.0 }
0x12cd   : > { %3480 = vadd.xlane.f32.xlu0 %v3479_v57 }
0x12ce   : > { %v3482_v59 = vsel %vm748_vm3, %v5799_v56, 0.0 }
0x12cf   : > { %3483 = vadd.xlane.f32.xlu1 %v3482_v59 }
0x135a   : > { %v3481_v60 = vpop.xlane.xlu0 %3480 }
0x135b   : > { %v3485_v62 = vmul.f32 0.03125, %v3481_v60 }
0x135c   : > { %v3484_v63 = vpop.xlane.xlu1 %3483 }
0x135d   : > { %v3487_v1 = vsub.f32 %v5796_v53, %v3485_v62  ;;  %v3486_v58 = vmul.f32 0.03125, %v3484_v63 }
0x135f   : > { %v3488_v3 = vsub.f32 %v5799_v56, %v3486_v58  ;;  %v3489_v4 = vmul.f32 %v3487_v1, %v3487_v1 }
0x1361   : > { %v3491_v61 = vsel %vm748_vm3, %v3489_v4, 0.0  ;;  %v3490_v6 = vmul.f32 %v3488_v3, %v3488_v3 }
0x1362   : > { %3492 = vadd.xlane.f32.xlu0 %v3491_v61 }
0x1363   : > { %v3494_v5 = vsel %vm748_vm3, %v3490_v6, 0.0 }
0x1366   : > { %3495 = vadd.xlane.f32.xlu0 %v3494_v5 }
0x13ef   : > { %v3493_v13 = vpop.xlane.xlu0 %3492 }
0x13f0   : > { %v3497_v14 = vmul.f32 0.03125, %v3493_v13 }
0x13f2   : > { %v3499_v15 = vadd.f32 1e-05, %v3497_v14 }
0x13f3   : > { %v3496_v16 = vpop.xlane.xlu0 %3495 }
0x13f4   : > { %4710 = vrsqrt.f32 %v3499_v15  ;;  %v3498_v17 = vmul.f32 0.03125, %v3496_v16 }
0x13f6   : > { %v3500_v18 = vadd.f32 1e-05, %v3498_v17 }
0x13f8   : > { %4712 = vrsqrt.f32 %v3500_v18 }
0x13fe   : > { %v4711_v9 = vpop.eup %4710 }
0x13ff   : > { %v3503_v12 = vmul.f32 %v4711_v9, %v3487_v1 }
0x1401   : > { %v3511_v21 = vmul.f32 %v3939_v19, %v3503_v12 }
0x1402   : > { %v4713_v20 = vpop.eup %4712 }
0x1403   : > { %v3504_v22 = vmul.f32 %v4713_v20, %v3488_v3  ;;  %v3519_v25 = vadd.f32 %v3940_v23, %v3511_v21 }
0x1405   : > { %v3512_v24 = vmul.f32 %v3939_v19, %v3504_v22 }
0x1407   : > { %v3520_v26 = vadd.f32 %v3940_v23, %v3512_v24 }
0x1409   : > { %v3521_v50 = vpack.c.bf16 %v3520_v26, %v3519_v25 }
0x140b   : > { %4357 = vmatmul.mubr.msk.bf16.vlgmr.msra.gmra.mrb[88].mxu0 %vm748_vm3, %v3521_v50 }
0x14de   : > { %v3584_v31 = vpop.f32.mrb[88].mxu0 }
0x14df   : > { %v3585_v29 = vadd.f32 %v3942_v30, %v3584_v31  ;;  %v4358_v32 = vpop.f32.mrb[89].mxu0 }
0x14e0   : > { %v3587_v33 = vpop.f32.mrb[90].mxu0 }
0x14e1   : > { %v3588_v34 = vadd.f32 %v3942_v30, %v3587_v33  ;;  %v4359_v35 = vpop.f32.mrb[91].mxu0  ;;  %v3591_v36 = vmax.f32 %v3585_v29, 0.0 }
0x14e3   : > { %v3592_v37 = vmax.f32 %v3588_v34, 0.0 }
0x14e5   : > { %v3593_v38 = vpack.c.bf16 %v3592_v37, %v3591_v36 }
0x14e7   : > { %4369 = vmatmul.mubr.msk.bf16.vlgmr.msra.gmra.mrb[84].mxu1 %vm2162_vm8, %v3593_v38 }
0x15ba   : > { %v3672_v39 = vpop.f32.mrb[84].mxu1 }
0x15bb   : > { %v3673_v40 = vadd.f32 %v3955_v0, %v3672_v39  ;;  %v4370_v2 = vpop.f32.mrb[85].mxu1 }
0x15bc   : > { %v3675_v41 = vpop.f32.mrb[86].mxu1 }
0x15bd   : > { %v3679_v42 = vadd.f32 %v3673_v40, %v5796_v53  ;;  %v3676_v43 = vadd.f32 %v3955_v0, %v3675_v41  ;;  %v4371_v44 = vpop.f32.mrb[87].mxu1 }
0x15bf   : > { %v3680_v45 = vadd.f32 %v3676_v43, %v5799_v56  ;;  %v3681_v46 = vsel %vm748_vm3, %v3679_v42, 0.0 }
0x15c1   : > { %v3682_v47 = vsel %vm748_vm3, %v3680_v45, 0.0 }
0x15c2   : > { %v3683_v48 = vadd.f32 %v3682_v47, %v3681_v46 }
0x15c4   : > { %v3684_v49 = vrot.slane %v3683_v48, 4 }
0x15c6   : > { %v3685_v51 = vadd.f32 %v3684_v49, %v3683_v48 }
0x15c8   : > { %v3686_v52 = vrot.slane %v3685_v51, 2 }
0x15ca   : > { %v3687_v54 = vadd.f32 %v3686_v52, %v3685_v51 }
0x15cc   : > { %v3688_v55 = vrot.slane %v3687_v54, 1 }
0x15ce   : > { %v3689_v53 = vadd.f32 %v3688_v55, %v3687_v54 }
0x15d0   : > { %3691 = vst.msk [vmem:[%s683_s30] sm:$0x1] %vm3690_vm9, %v3689_v53 }
0x15d1   : > { %4895 = shalt.err (!%p4892_p2)
}
0x15d2   : > { %s4896_s26 = scalar_lea.hbm %s5848_s20, 16  ;;  %s4900_s0 = scalar_lea.hbm %s5979_s14, 32 }
0x15d3   : > { %p4897_p3 = scmp.ne.s32.totalorder %s5848_s20, %s4896_s26  ;;  %p4901_p7 = scmp.lt.u32.totalorder %s5848_s20, %s5979_s14 }
0x15d4   : > { %p4902_p8 = scmp.lt.u32.totalorder %s4900_s0, %s4896_s26  ;;  %p4904_p13 = scmp.lt.u32.totalorder %s4896_s26, %s5848_s20 }
0x15d5   : > { %p4898_p4 = pnand %p4897_p3, %p5980_p1 }
0x15d6   : > { %p4903_p11 = por %p4902_p8, %p4901_p7 }
0x15d7   : > { %p4899_p12 = pneg %p4898_p4 }
0x15d8   : > { %p4905_p6 = por %p4904_p13, %p4903_p11 }
0x15da   : > { %p4906_p9 = pnand %p4905_p6, %p4899_p12 }
0x15dc   : > { %4909 = shalt.err (!%p4906_p9)
}
0x15dd   : > { %4396 = dma.vmem_to_hbm [thread:$0]  (%p5980_p1), %s5850_s19, 16, %s5848_s20, %s3693_s13  }
0x15de PF: > { %s5981_s21 = sld [smem:[#allocation22_spill]]  ;;  %s5982_s25 = sld [smem:[#allocation19_spill]] }
0x15df   : > { %s5983_s1 = sld [smem:[#allocation26_spill]] }
0x15e4   : > { %p4433_p5 = scmp.ge.s32.totalorder %s5981_s21, 2  ;;  %s3717_s24 = sand.u32 1, %s5982_s25  }
0x15e5   : > { %p5984_p10 = scmp.ne.s32.totalorder %s5983_s1, 0  ;;  %s3718_s16 = scalar_lea.sflag [#allocation4], %s3717_s24 }
0x15e7   : > { %p4418_p0 = pnand %p4433_p5, %p5984_p10 }
0x15e9   : > { %4943 = dma.done.wait (!%p4418_p0), %s3718_s16, 16  }
0x15ea   : > { %4945 = vsyncadd (!%p4418_p0), %s3718_s16, 4294967280  ;;  %s5985_s21 = sld [smem:[#allocation23_spill]]  ;;  %s5986_s0 = sld [smem:[#allocation20_spill]] }
0x15eb   : > { %s5987_s30 = sld [smem:[#allocation21_spill]]  ;;  %s5988_s20 = sld [smem:[#allocation24_spill]] }
0x15f0   : > { %p33_p2 = scmp.ge.s32.totalorder %s5985_s21, 4  }
0x15f2   :  { %35 = sbr.rel (!%p33_p2) target bundleno = 18 (0x12), region = 172 }
0x15f9   :  { %3722 = vsyncpa [#allocation3], 1 }
0x15fa   :  { %3724 = vsyncpa [#allocation3 + $0x1], 1 }
0x15fb   :  { %3725 = vsyncpa [#allocation6], 1 }
0x15fc   :  { %3726 = vsyncpa [#allocation9], 1 }
0x15fd   :  { %3727 = vsyncpa [#allocation12], 1 }
0x15fe   :  { %3728 = vsyncpa [#allocation4], 1 }
0x15ff   :  { %3730 = vsyncpa [#allocation4 + $0x1], 1 }

</bundles_post_ra>
